<compile_context>
chip_gen: v7x
topology: tpu7x:2x2x1
jax: 0.10.0
libtpu: 0.0.40
codegen_flags: <defaults>
</compile_context>

<pallas_src>
import functools

import numpy as np
import jax
import jax.numpy as jnp
from jax.experimental import pallas as pl
from jax.experimental.pallas import tpu as pltpu

IN_CHANS = 1
STEM = 32
C1 = 16
EXP = 6
MID = C1 * EXP          # 96
FEAT = 1280
NCLS = 5
CPAD = 128              # lane-dense padded channel width kept between all fused stages
FCHUNK = 256            # head FEAT chunk width

# slots inside the stacked (NW, 128, 128) bf16 weight tensor
W_STEM, W_SE1R, W_SE1E, W_PW1, W_EXP2, W_SE2R, W_SE2E, W_PW2 = range(8)
NW = 8

# rows inside the (VROWS, 128) f32 bias / depthwise-weight table
(R_STEM_B, R_DW1_B, R_SE1_B1, R_SE1_B2, R_PW1_B,
 R_EXP2_B, R_DW2_B, R_SE2_B1, R_SE2_B2, R_PW2_B, R_CLS_B) = range(11)
R_DW1_W = 16            # rows 16..24  : block1 dw weights (BN scale folded)
R_DW2_W = 32            # rows 32..40  : block2 dw weights (BN scale folded)
VROWS = 48


# ----------------------------- in-kernel helpers -----------------------------

def _row(ref, r):
    return ref[r:r + 1, :]                                   # (1, CPAD) f32


def _dw3x3_mxu(x, s_ref, vconst_ref, wrow0, M):
    """3x3 depthwise conv (stride 1, pad 1) on a flattened (M, CPAD) tile.

    Each of the 9 taps is a (M, M) 0/1 shift matrix (boundary masking folded in) applied on
    the MXU, followed by a per-channel weight multiply on the VPU. One (M, CPAD) tile live
    at a time -> no vreg spill of a (9M, CPAD) intermediate."""
    xb = x.astype(jnp.bfloat16)
    acc = None
    for k in range(9):
        sk = s_ref[k * M:(k + 1) * M, :]                     # (M, M) bf16, 8-aligned slice
        shifted = jnp.dot(sk, xb, preferred_element_type=jnp.float32)
        term = shifted * _row(vconst_ref, wrow0 + k)
        acc = term if acc is None else acc + term
    return acc


def _se_gate(x, w_r, b_r, w_e, b_e):
    """Squeeze-Excite gate: spatial mean -> 1x1 reduce (ReLU) -> 1x1 expand (sigmoid).

    The pooled vector is broadcast to 8 rows so both MXU matmuls keep >=8 sublanes."""
    pooled = jnp.mean(x, axis=0, keepdims=True)                              # (1, CPAD)
    p8 = jnp.broadcast_to(pooled, (8, CPAD)).astype(jnp.bfloat16)
    s = jnp.dot(p8, w_r, preferred_element_type=jnp.float32) + b_r
    s = jnp.maximum(s, 0.0).astype(jnp.bfloat16)
    g = jnp.dot(s, w_e, preferred_element_type=jnp.float32) + b_e
    return jax.nn.sigmoid(g[0:1, :])                                         # (1, CPAD)


# ----------------------------- fused kernel -----------------------------

def _fused_kernel(p_ref, wstack_ref, sstack_ref, vconst_ref,
                  head_w_ref, head_b_ref, cls_w_ref, o_ref, *, M):
    # ---- conv_stem 3x3/s2 (+folded bn1) + ReLU : one MXU matmul on tap planes ----
    x = jnp.dot(p_ref[0], wstack_ref[W_STEM], preferred_element_type=jnp.float32)
    x = jnp.maximum(x + _row(vconst_ref, R_STEM_B), 0.0)                     # (M, CPAD)

    # ---- block1: dw3x3 (+bn) + ReLU -> SE -> pw 32->16 (+bn, linear) ----
    x = _dw3x3_mxu(x, sstack_ref, vconst_ref, R_DW1_W, M)
    x = jnp.maximum(x + _row(vconst_ref, R_DW1_B), 0.0)
    x = x * _se_gate(x, wstack_ref[W_SE1R], _row(vconst_ref, R_SE1_B1),
                     wstack_ref[W_SE1E], _row(vconst_ref, R_SE1_B2))
    x1 = jnp.dot(x.astype(jnp.bfloat16), wstack_ref[W_PW1],
                 preferred_element_type=jnp.float32) + _row(vconst_ref, R_PW1_B)

    # ---- block2: expand 16->96 + ReLU -> dw3x3 + ReLU -> SE -> project + residual ----
    h = jnp.dot(x1.astype(jnp.bfloat16), wstack_ref[W_EXP2],
                preferred_element_type=jnp.float32)
    h = jnp.maximum(h + _row(vconst_ref, R_EXP2_B), 0.0)
    h = _dw3x3_mxu(h, sstack_ref, vconst_ref, R_DW2_W, M)
    h = jnp.maximum(h + _row(vconst_ref, R_DW2_B), 0.0)
    h = h * _se_gate(h, wstack_ref[W_SE2R], _row(vconst_ref, R_SE2_B1),
                     wstack_ref[W_SE2E], _row(vconst_ref, R_SE2_B2))
    x2 = (jnp.dot(h.astype(jnp.bfloat16), wstack_ref[W_PW2],
                  preferred_element_type=jnp.float32)
          + _row(vconst_ref, R_PW2_B) + x1)

    # ---- conv_head 1x1 (+bn2) + ReLU -> global avg pool -> classifier, FEAT-chunked ----
    # pool and the (linear) classifier commute, so the classifier matmul is applied per
    # chunk and only one (M, CPAD) accumulator is kept (no (M, 1280) intermediate).
    xh = x2.astype(jnp.bfloat16)
    acc = None
    for c0 in range(0, FEAT, FCHUNK):
        hc = jnp.dot(xh, head_w_ref[:, c0:c0 + FCHUNK],
                     preferred_element_type=jnp.float32)                      # (M, FCHUNK)
        hc = jnp.maximum(hc + head_b_ref[:, c0:c0 + FCHUNK], 0.0).astype(jnp.bfloat16)
        t = jnp.dot(hc, cls_w_ref[c0:c0 + FCHUNK, :],
                    preferred_element_type=jnp.float32)                       # (M, CPAD)
        acc = t if acc is None else acc + t
    logits = jnp.mean(acc, axis=0, keepdims=True) + _row(vconst_ref, R_CLS_B)
    o_ref[0] = logits


# ----------------------------- host-side glue -----------------------------

def _stem_patches(x_nhwc):
    """Stride-2 3x3 tap planes for the 1-channel stem: (B,H,W,1) -> (B, Ho*Wo, CPAD) bf16."""
    B, H, W, _ = x_nhwc.shape
    Ho, Wo = H // 2, W // 2
    xp = jnp.pad(x_nhwc[..., 0], ((0, 0), (1, 1), (1, 1)))
    taps = [xp[:, di:di + 2 * Ho:2, dj:dj + 2 * Wo:2]
            for di in range(3) for dj in range(3)]
    p = jnp.stack(taps, axis=-1).reshape(B, Ho * Wo, 9)
    p = jnp.pad(p, ((0, 0), (0, 0), (0, CPAD - 9)))
    return p.astype(jnp.bfloat16)


def _dw_shift_matrices(H, W):
    """9 stacked (M, M) 0/1 shift matrices for a 3x3/s1/p1 depthwise conv on the flattened
    spatial axis; out-of-image taps hit an all-zero row (boundary masking folded in)."""
    M = H * W
    s = np.zeros((9 * M, M), np.float32)
    k = 0
    for di in (-1, 0, 1):
        for dj in (-1, 0, 1):
            for i in range(H):
                for j in range(W):
                    ii, jj = i + di, j + dj
                    if 0 <= ii < H and 0 <= jj < W:
                        s[k * M + i * W + j, ii * W + jj] = 1.0
            k += 1
    return jnp.asarray(s, jnp.bfloat16)                       # (9M, M)


def efficientnet_forward(x_nchw, q):
    x = jnp.transpose(x_nchw, (0, 2, 3, 1)).astype(jnp.float32)     # NCHW -> NHWC
    B, H, W, _ = x.shape
    HO, WO = H // 2, W // 2
    M = HO * WO

    patches = _stem_patches(x)                                      # (B, M, CPAD) bf16
    sstack = _dw_shift_matrices(HO, WO)                             # (9M, M) bf16 constant

    def const_spec(a):
        zero = (0,) * a.ndim
        return pl.BlockSpec(a.shape, lambda b: zero)

    args = (patches, q["wstack"], sstack, q["vconst"],
            q["head_w"], q["head_b"], q["cls_w"])
    in_specs = [pl.BlockSpec((1, M, CPAD), lambda b: (b, 0, 0))]
    in_specs += [const_spec(a) for a in args[1:]]

    logits = pl.pallas_call(
        functools.partial(_fused_kernel, M=M),
        out_shape=jax.ShapeDtypeStruct((B, 1, CPAD), jnp.float32),
        grid=(B,),
        in_specs=in_specs,
        out_specs=pl.BlockSpec((1, 1, CPAD), lambda b: (b, 0, 0)),
        compiler_params=pltpu.CompilerParams(
            dimension_semantics=("parallel",)),                     # both TCs on v7x
    )(*args)
    return logits.reshape(B, CPAD)[:, :NCLS]


# ----------------------------- parameters -----------------------------

def _bn_fold(gamma, beta, mean, var, eps=1e-5):
    scale = gamma / jnp.sqrt(var + eps)
    return scale, beta - mean * scale


def init_params(key):
    keys = iter(jax.random.split(key, 64))

    def w_init(shape, fan_in):
        return jax.random.normal(next(keys), shape, jnp.float32) * (fan_in ** -0.5)

    def bn_init(c):
        gamma = 1.0 + 0.1 * jax.random.normal(next(keys), (c,), jnp.float32)
        beta = 0.1 * jax.random.normal(next(keys), (c,), jnp.float32)
        mean = 0.1 * jax.random.normal(next(keys), (c,), jnp.float32)
        var = 1.0 + 0.1 * jnp.abs(jax.random.normal(next(keys), (c,), jnp.float32))
        return _bn_fold(gamma, beta, mean, var)

    p = {}
    p["stem_w"] = w_init((3, 3, IN_CHANS, STEM), 9 * IN_CHANS)
    p["stem_bn"] = bn_init(STEM)
    p["b1_dw_w"] = w_init((3, 3, STEM), 9)
    p["b1_dw_bn"] = bn_init(STEM)
    p["b1_se_w1"] = w_init((STEM, STEM // 4), STEM)
    p["b1_se_b1"] = jnp.zeros((STEM // 4,), jnp.float32)
    p["b1_se_w2"] = w_init((STEM // 4, STEM), STEM // 4)
    p["b1_se_b2"] = jnp.zeros((STEM,), jnp.float32)
    p["b1_pw_w"] = w_init((STEM, C1), STEM)
    p["b1_pw_bn"] = bn_init(C1)
    p["b2_exp_w"] = w_init((C1, MID), C1)
    p["b2_exp_bn"] = bn_init(MID)
    p["b2_dw_w"] = w_init((3, 3, MID), 9)
    p["b2_dw_bn"] = bn_init(MID)
    p["b2_se_w1"] = w_init((MID, MID // 4), MID)
    p["b2_se_b1"] = jnp.zeros((MID // 4,), jnp.float32)
    p["b2_se_w2"] = w_init((MID // 4, MID), MID // 4)
    p["b2_se_b2"] = jnp.zeros((MID,), jnp.float32)
    p["b2_pw_w"] = w_init((MID, C1), MID)
    p["b2_pw_bn"] = bn_init(C1)
    p["head_w"] = w_init((C1, FEAT), C1)
    p["head_bn"] = bn_init(FEAT)
    p["cls_w"] = w_init((FEAT, NCLS), FEAT)
    p["cls_b"] = jnp.zeros((NCLS,), jnp.float32)
    return p


def _pad2(w, rows=CPAD, cols=CPAD):
    return jnp.pad(w, ((0, rows - w.shape[0]), (0, cols - w.shape[1])))


def _padv(v, n=CPAD):
    return jnp.pad(v, (0, n - v.shape[0]))


def pack_params(p):
    """Fold inference-mode BN scales into conv weights, zero-pad channel axes to the
    lane-dense 128 layout, stack the small weights, and cast matmul weights to bf16.
    Padded scale/bias lanes stay zero so padded channels remain zero through residuals."""
    def fold(w, bn):                                   # BN scale folded into output columns
        s, b = bn
        return w * s[None, :], b

    stem_w, stem_b = fold(p["stem_w"].reshape(9 * IN_CHANS, STEM), p["stem_bn"])
    dw1_w, dw1_b = fold(p["b1_dw_w"].reshape(9, STEM), p["b1_dw_bn"])
    pw1_w, pw1_b = fold(p["b1_pw_w"], p["b1_pw_bn"])
    exp2_w, exp2_b = fold(p["b2_exp_w"], p["b2_exp_bn"])
    dw2_w, dw2_b = fold(p["b2_dw_w"].reshape(9, MID), p["b2_dw_bn"])
    pw2_w, pw2_b = fold(p["b2_pw_w"], p["b2_pw_bn"])
    head_w, head_b = fold(p["head_w"], p["head_bn"])

    q = {}
    mats = [stem_w, p["b1_se_w1"], p["b1_se_w2"], pw1_w,
            exp2_w, p["b2_se_w1"], p["b2_se_w2"], pw2_w]
    q["wstack"] = jnp.stack([_pad2(m) for m in mats]).astype(jnp.bfloat16)   # (NW,128,128)

    rows = [jnp.zeros((CPAD,), jnp.float32) for _ in range(VROWS)]
    rows[R_STEM_B] = _padv(stem_b)
    rows[R_DW1_B] = _padv(dw1_b)
    rows[R_SE1_B1] = _padv(p["b1_se_b1"])
    rows[R_SE1_B2] = _padv(p["b1_se_b2"])
    rows[R_PW1_B] = _padv(pw1_b)
    rows[R_EXP2_B] = _padv(exp2_b)
    rows[R_DW2_B] = _padv(dw2_b)
    rows[R_SE2_B1] = _padv(p["b2_se_b1"])
    rows[R_SE2_B2] = _padv(p["b2_se_b2"])
    rows[R_PW2_B] = _padv(pw2_b)
    rows[R_CLS_B] = _padv(p["cls_b"])
    for k in range(9):
        rows[R_DW1_W + k] = _padv(dw1_w[k])
        rows[R_DW2_W + k] = _padv(dw2_w[k])
    q["vconst"] = jnp.stack(rows)                                            # (VROWS, 128) f32

    q["head_w"] = jnp.pad(head_w, ((0, CPAD - C1), (0, 0))).astype(jnp.bfloat16)   # (128, FEAT)
    q["head_b"] = head_b.reshape(1, FEAT)                                          # f32
    q["cls_w"] = jnp.pad(p["cls_w"], ((0, 0), (0, CPAD - NCLS))).astype(jnp.bfloat16)  # (FEAT,128)
    return q


if __name__ == "__main__":
    key = jax.random.PRNGKey(0)
    k_x, k_p = jax.random.split(key)
    x = jax.random.normal(k_x, (2, IN_CHANS, 16, 16), jnp.float32)   # NCHW like PyTorch
    params = pack_params(init_params(k_p))

    logits = jax.jit(efficientnet_forward)(x, params)
    logits = jax.block_until_ready(logits)

    assert logits.shape == (2, NCLS), logits.shape
    assert jnp.all(jnp.isfinite(logits))
    print("KERNEL_OK")
</pallas_src>

<mosaic_0001>
module attributes {stable_mosaic.version = 11 : i64} {
  func.func @_fused_kernel(%arg0: i32, %arg1: memref<1x64x128xbf16, #tpu.memory_space<vmem>>, %arg2: memref<8x128x128xbf16, #tpu.memory_space<vmem>>, %arg3: memref<576x64xbf16, #tpu.memory_space<vmem>>, %arg4: memref<48x128xf32, #tpu.memory_space<vmem>>, %arg5: memref<128x1280xbf16, #tpu.memory_space<vmem>>, %arg6: memref<1x1280xf32, #tpu.memory_space<vmem>>, %arg7: memref<1280x128xbf16, #tpu.memory_space<vmem>>, %arg8: memref<1x1x128xf32, #tpu.memory_space<vmem>>) attributes {dimension_semantics = [#tpu.dimension_semantics<parallel>], iteration_bounds = array<i64: 2>, scalar_prefetch = 0 : i64, scratch_operands = 0 : i64, tpu.core_type = #tpu.core_type<tc>, window_params = [{transform_indices = @transform_0, window_bounds = array<i64: 1, 64, 128>}, {pipeline_mode = #tpu.pipeline_mode<synchronous>, transform_indices = @transform_1, window_bounds = array<i64: 8, 128, 128>}, {pipeline_mode = #tpu.pipeline_mode<synchronous>, transform_indices = @transform_2, window_bounds = array<i64: 576, 64>}, {pipeline_mode = #tpu.pipeline_mode<synchronous>, transform_indices = @transform_3, window_bounds = array<i64: 48, 128>}, {pipeline_mode = #tpu.pipeline_mode<synchronous>, transform_indices = @transform_4, window_bounds = array<i64: 128, 1280>}, {pipeline_mode = #tpu.pipeline_mode<synchronous>, transform_indices = @transform_5, window_bounds = array<i64: 1, 1280>}, {pipeline_mode = #tpu.pipeline_mode<synchronous>, transform_indices = @transform_6, window_bounds = array<i64: 1280, 128>}, {transform_indices = @transform_7, window_bounds = array<i64: 1, 1, 128>}]} {
    %c0 = arith.constant 0 : index
    %c0_0 = arith.constant 0 : index
    %c0_1 = arith.constant 0 : index
    %0 = vector.load %arg1[%c0, %c0_0, %c0_1] : memref<1x64x128xbf16, #tpu.memory_space<vmem>>, vector<1x64x128xbf16>
    %1 = vector.shape_cast %0 : vector<1x64x128xbf16> to vector<64x128xbf16>
    %c0_2 = arith.constant 0 : index
    %c0_3 = arith.constant 0 : index
    %c0_4 = arith.constant 0 : index
    %2 = vector.load %arg2[%c0_2, %c0_3, %c0_4] : memref<8x128x128xbf16, #tpu.memory_space<vmem>>, vector<1x128x128xbf16>
    %3 = vector.shape_cast %2 : vector<1x128x128xbf16> to vector<128x128xbf16>
    %cst = arith.constant dense<0.000000e+00> : vector<64x128xf32>
    %4 = tpu.matmul %1, %3, %cst {dimension_numbers = #tpu.dot_dimension_numbers<[1], [0], [0], [1], [0, 0, 1, 1], [], []>} : vector<64x128xbf16>, vector<128x128xbf16>, vector<64x128xf32> -> vector<64x128xf32>
    %c0_5 = arith.constant 0 : index
    %c0_6 = arith.constant 0 : index
    %5 = vector.load %arg4[%c0_5, %c0_6] : memref<48x128xf32, #tpu.memory_space<vmem>>, vector<1x128xf32>
    %6 = vector.broadcast %5 : vector<1x128xf32> to vector<64x128xf32>
    %7 = arith.addf %4, %6 : vector<64x128xf32>
    %cst_7 = arith.constant 0.000000e+00 : f32
    %8 = vector.broadcast %cst_7 : f32 to vector<64x128xf32>
    %9 = arith.maximumf %7, %8 : vector<64x128xf32>
    %10 = arith.truncf %9 : vector<64x128xf32> to vector<64x128xbf16>
    %c0_8 = arith.constant 0 : index
    %c0_9 = arith.constant 0 : index
    %11 = vector.load %arg3[%c0_8, %c0_9] : memref<576x64xbf16, #tpu.memory_space<vmem>>, vector<64x64xbf16>
    %cst_10 = arith.constant dense<0.000000e+00> : vector<64x128xf32>
    %12 = tpu.matmul %11, %10, %cst_10 {dimension_numbers = #tpu.dot_dimension_numbers<[1], [0], [0], [1], [0, 0, 1, 1], [], []>} : vector<64x64xbf16>, vector<64x128xbf16>, vector<64x128xf32> -> vector<64x128xf32>
    %c16 = arith.constant 16 : index
    %c0_11 = arith.constant 0 : index
    %13 = vector.load %arg4[%c16, %c0_11] : memref<48x128xf32, #tpu.memory_space<vmem>>, vector<1x128xf32>
    %14 = vector.broadcast %13 : vector<1x128xf32> to vector<64x128xf32>
    %15 = arith.mulf %12, %14 : vector<64x128xf32>
    %c64 = arith.constant 64 : index
    %c0_12 = arith.constant 0 : index
    %16 = vector.load %arg3[%c64, %c0_12] : memref<576x64xbf16, #tpu.memory_space<vmem>>, vector<64x64xbf16>
    %cst_13 = arith.constant dense<0.000000e+00> : vector<64x128xf32>
    %17 = tpu.matmul %16, %10, %cst_13 {dimension_numbers = #tpu.dot_dimension_numbers<[1], [0], [0], [1], [0, 0, 1, 1], [], []>} : vector<64x64xbf16>, vector<64x128xbf16>, vector<64x128xf32> -> vector<64x128xf32>
    %c17 = arith.constant 17 : index
    %c0_14 = arith.constant 0 : index
    %18 = vector.load %arg4[%c17, %c0_14] : memref<48x128xf32, #tpu.memory_space<vmem>>, vector<1x128xf32>
    %19 = vector.broadcast %18 : vector<1x128xf32> to vector<64x128xf32>
    %20 = arith.mulf %17, %19 : vector<64x128xf32>
    %21 = arith.addf %15, %20 : vector<64x128xf32>
    %c128 = arith.constant 128 : index
    %c0_15 = arith.constant 0 : index
    %22 = vector.load %arg3[%c128, %c0_15] : memref<576x64xbf16, #tpu.memory_space<vmem>>, vector<64x64xbf16>
    %cst_16 = arith.constant dense<0.000000e+00> : vector<64x128xf32>
    %23 = tpu.matmul %22, %10, %cst_16 {dimension_numbers = #tpu.dot_dimension_numbers<[1], [0], [0], [1], [0, 0, 1, 1], [], []>} : vector<64x64xbf16>, vector<64x128xbf16>, vector<64x128xf32> -> vector<64x128xf32>
    %c18 = arith.constant 18 : index
    %c0_17 = arith.constant 0 : index
    %24 = vector.load %arg4[%c18, %c0_17] : memref<48x128xf32, #tpu.memory_space<vmem>>, vector<1x128xf32>
    %25 = vector.broadcast %24 : vector<1x128xf32> to vector<64x128xf32>
    %26 = arith.mulf %23, %25 : vector<64x128xf32>
    %27 = arith.addf %21, %26 : vector<64x128xf32>
    %c192 = arith.constant 192 : index
    %c0_18 = arith.constant 0 : index
    %28 = vector.load %arg3[%c192, %c0_18] : memref<576x64xbf16, #tpu.memory_space<vmem>>, vector<64x64xbf16>
    %cst_19 = arith.constant dense<0.000000e+00> : vector<64x128xf32>
    %29 = tpu.matmul %28, %10, %cst_19 {dimension_numbers = #tpu.dot_dimension_numbers<[1], [0], [0], [1], [0, 0, 1, 1], [], []>} : vector<64x64xbf16>, vector<64x128xbf16>, vector<64x128xf32> -> vector<64x128xf32>
    %c19 = arith.constant 19 : index
    %c0_20 = arith.constant 0 : index
    %30 = vector.load %arg4[%c19, %c0_20] : memref<48x128xf32, #tpu.memory_space<vmem>>, vector<1x128xf32>
    %31 = vector.broadcast %30 : vector<1x128xf32> to vector<64x128xf32>
    %32 = arith.mulf %29, %31 : vector<64x128xf32>
    %33 = arith.addf %27, %32 : vector<64x128xf32>
    %c256 = arith.constant 256 : index
    %c0_21 = arith.constant 0 : index
    %34 = vector.load %arg3[%c256, %c0_21] : memref<576x64xbf16, #tpu.memory_space<vmem>>, vector<64x64xbf16>
    %cst_22 = arith.constant dense<0.000000e+00> : vector<64x128xf32>
    %35 = tpu.matmul %34, %10, %cst_22 {dimension_numbers = #tpu.dot_dimension_numbers<[1], [0], [0], [1], [0, 0, 1, 1], [], []>} : vector<64x64xbf16>, vector<64x128xbf16>, vector<64x128xf32> -> vector<64x128xf32>
    %c20 = arith.constant 20 : index
    %c0_23 = arith.constant 0 : index
    %36 = vector.load %arg4[%c20, %c0_23] : memref<48x128xf32, #tpu.memory_space<vmem>>, vector<1x128xf32>
    %37 = vector.broadcast %36 : vector<1x128xf32> to vector<64x128xf32>
    %38 = arith.mulf %35, %37 : vector<64x128xf32>
    %39 = arith.addf %33, %38 : vector<64x128xf32>
    %c320 = arith.constant 320 : index
    %c0_24 = arith.constant 0 : index
    %40 = vector.load %arg3[%c320, %c0_24] : memref<576x64xbf16, #tpu.memory_space<vmem>>, vector<64x64xbf16>
    %cst_25 = arith.constant dense<0.000000e+00> : vector<64x128xf32>
    %41 = tpu.matmul %40, %10, %cst_25 {dimension_numbers = #tpu.dot_dimension_numbers<[1], [0], [0], [1], [0, 0, 1, 1], [], []>} : vector<64x64xbf16>, vector<64x128xbf16>, vector<64x128xf32> -> vector<64x128xf32>
    %c21 = arith.constant 21 : index
    %c0_26 = arith.constant 0 : index
    %42 = vector.load %arg4[%c21, %c0_26] : memref<48x128xf32, #tpu.memory_space<vmem>>, vector<1x128xf32>
    %43 = vector.broadcast %42 : vector<1x128xf32> to vector<64x128xf32>
    %44 = arith.mulf %41, %43 : vector<64x128xf32>
    %45 = arith.addf %39, %44 : vector<64x128xf32>
    %c384 = arith.constant 384 : index
    %c0_27 = arith.constant 0 : index
    %46 = vector.load %arg3[%c384, %c0_27] : memref<576x64xbf16, #tpu.memory_space<vmem>>, vector<64x64xbf16>
    %cst_28 = arith.constant dense<0.000000e+00> : vector<64x128xf32>
    %47 = tpu.matmul %46, %10, %cst_28 {dimension_numbers = #tpu.dot_dimension_numbers<[1], [0], [0], [1], [0, 0, 1, 1], [], []>} : vector<64x64xbf16>, vector<64x128xbf16>, vector<64x128xf32> -> vector<64x128xf32>
    %c22 = arith.constant 22 : index
    %c0_29 = arith.constant 0 : index
    %48 = vector.load %arg4[%c22, %c0_29] : memref<48x128xf32, #tpu.memory_space<vmem>>, vector<1x128xf32>
    %49 = vector.broadcast %48 : vector<1x128xf32> to vector<64x128xf32>
    %50 = arith.mulf %47, %49 : vector<64x128xf32>
    %51 = arith.addf %45, %50 : vector<64x128xf32>
    %c448 = arith.constant 448 : index
    %c0_30 = arith.constant 0 : index
    %52 = vector.load %arg3[%c448, %c0_30] : memref<576x64xbf16, #tpu.memory_space<vmem>>, vector<64x64xbf16>
    %cst_31 = arith.constant dense<0.000000e+00> : vector<64x128xf32>
    %53 = tpu.matmul %52, %10, %cst_31 {dimension_numbers = #tpu.dot_dimension_numbers<[1], [0], [0], [1], [0, 0, 1, 1], [], []>} : vector<64x64xbf16>, vector<64x128xbf16>, vector<64x128xf32> -> vector<64x128xf32>
    %c23 = arith.constant 23 : index
    %c0_32 = arith.constant 0 : index
    %54 = vector.load %arg4[%c23, %c0_32] : memref<48x128xf32, #tpu.memory_space<vmem>>, vector<1x128xf32>
    %55 = vector.broadcast %54 : vector<1x128xf32> to vector<64x128xf32>
    %56 = arith.mulf %53, %55 : vector<64x128xf32>
    %57 = arith.addf %51, %56 : vector<64x128xf32>
    %c512 = arith.constant 512 : index
    %c0_33 = arith.constant 0 : index
    %58 = vector.load %arg3[%c512, %c0_33] : memref<576x64xbf16, #tpu.memory_space<vmem>>, vector<64x64xbf16>
    %cst_34 = arith.constant dense<0.000000e+00> : vector<64x128xf32>
    %59 = tpu.matmul %58, %10, %cst_34 {dimension_numbers = #tpu.dot_dimension_numbers<[1], [0], [0], [1], [0, 0, 1, 1], [], []>} : vector<64x64xbf16>, vector<64x128xbf16>, vector<64x128xf32> -> vector<64x128xf32>
    %c24 = arith.constant 24 : index
    %c0_35 = arith.constant 0 : index
    %60 = vector.load %arg4[%c24, %c0_35] : memref<48x128xf32, #tpu.memory_space<vmem>>, vector<1x128xf32>
    %61 = vector.broadcast %60 : vector<1x128xf32> to vector<64x128xf32>
    %62 = arith.mulf %59, %61 : vector<64x128xf32>
    %63 = arith.addf %57, %62 : vector<64x128xf32>
    %c1 = arith.constant 1 : index
    %c0_36 = arith.constant 0 : index
    %64 = vector.load %arg4[%c1, %c0_36] : memref<48x128xf32, #tpu.memory_space<vmem>>, vector<1x128xf32>
    %65 = vector.broadcast %64 : vector<1x128xf32> to vector<64x128xf32>
    %66 = arith.addf %63, %65 : vector<64x128xf32>
    %cst_37 = arith.constant 0.000000e+00 : f32
    %67 = vector.broadcast %cst_37 : f32 to vector<64x128xf32>
    %68 = arith.maximumf %66, %67 : vector<64x128xf32>
    %c1_38 = arith.constant 1 : index
    %c0_39 = arith.constant 0 : index
    %c0_40 = arith.constant 0 : index
    %69 = vector.load %arg2[%c1_38, %c0_39, %c0_40] : memref<8x128x128xbf16, #tpu.memory_space<vmem>>, vector<1x128x128xbf16>
    %70 = vector.shape_cast %69 : vector<1x128x128xbf16> to vector<128x128xbf16>
    %c2 = arith.constant 2 : index
    %c0_41 = arith.constant 0 : index
    %71 = vector.load %arg4[%c2, %c0_41] : memref<48x128xf32, #tpu.memory_space<vmem>>, vector<1x128xf32>
    %c2_42 = arith.constant 2 : index
    %c0_43 = arith.constant 0 : index
    %c0_44 = arith.constant 0 : index
    %72 = vector.load %arg2[%c2_42, %c0_43, %c0_44] : memref<8x128x128xbf16, #tpu.memory_space<vmem>>, vector<1x128x128xbf16>
    %73 = vector.shape_cast %72 : vector<1x128x128xbf16> to vector<128x128xbf16>
    %c3 = arith.constant 3 : index
    %c0_45 = arith.constant 0 : index
    %74 = vector.load %arg4[%c3, %c0_45] : memref<48x128xf32, #tpu.memory_space<vmem>>, vector<1x128xf32>
    %cst_46 = arith.constant dense<0.000000e+00> : vector<128xf32>
    %75 = vector.multi_reduction <add>, %68, %cst_46 [0] : vector<64x128xf32> to vector<128xf32>
    %76 = vector.shape_cast %75 : vector<128xf32> to vector<1x128xf32>
    %cst_47 = arith.constant 6.400000e+01 : f32
    %77 = vector.broadcast %cst_47 : f32 to vector<1x128xf32>
    %78 = arith.divf %76, %77 : vector<1x128xf32>
    %79 = vector.shape_cast %78 : vector<1x128xf32> to vector<1x128xf32>
    %80 = vector.broadcast %79 : vector<1x128xf32> to vector<8x128xf32>
    %81 = arith.truncf %80 : vector<8x128xf32> to vector<8x128xbf16>
    %cst_48 = arith.constant dense<0.000000e+00> : vector<8x128xf32>
    %82 = tpu.matmul %81, %70, %cst_48 {dimension_numbers = #tpu.dot_dimension_numbers<[1], [0], [0], [1], [0, 0, 1, 1], [], []>} : vector<8x128xbf16>, vector<128x128xbf16>, vector<8x128xf32> -> vector<8x128xf32>
    %83 = vector.broadcast %71 : vector<1x128xf32> to vector<8x128xf32>
    %84 = arith.addf %82, %83 : vector<8x128xf32>
    %cst_49 = arith.constant 0.000000e+00 : f32
    %85 = vector.broadcast %cst_49 : f32 to vector<8x128xf32>
    %86 = arith.maximumf %84, %85 : vector<8x128xf32>
    %87 = arith.truncf %86 : vector<8x128xf32> to vector<8x128xbf16>
    %cst_50 = arith.constant dense<0.000000e+00> : vector<8x128xf32>
    %88 = tpu.matmul %87, %73, %cst_50 {dimension_numbers = #tpu.dot_dimension_numbers<[1], [0], [0], [1], [0, 0, 1, 1], [], []>} : vector<8x128xbf16>, vector<128x128xbf16>, vector<8x128xf32> -> vector<8x128xf32>
    %89 = vector.broadcast %74 : vector<1x128xf32> to vector<8x128xf32>
    %90 = arith.addf %88, %89 : vector<8x128xf32>
    %91 = vector.extract_strided_slice %90 {offsets = [0, 0], sizes = [1, 128], strides = [1, 1]} : vector<8x128xf32> to vector<1x128xf32>
    %92 = arith.negf %91 : vector<1x128xf32>
    %93 = math.exp %92 : vector<1x128xf32>
    %cst_51 = arith.constant 1.000000e+00 : f32
    %94 = vector.broadcast %cst_51 : f32 to vector<1x128xf32>
    %95 = arith.addf %94, %93 : vector<1x128xf32>
    %96 = arith.divf %94, %95 : vector<1x128xf32>
    %97 = vector.broadcast %96 : vector<1x128xf32> to vector<64x128xf32>
    %98 = arith.mulf %68, %97 : vector<64x128xf32>
    %99 = arith.truncf %98 : vector<64x128xf32> to vector<64x128xbf16>
    %c3_52 = arith.constant 3 : index
    %c0_53 = arith.constant 0 : index
    %c0_54 = arith.constant 0 : index
    %100 = vector.load %arg2[%c3_52, %c0_53, %c0_54] : memref<8x128x128xbf16, #tpu.memory_space<vmem>>, vector<1x128x128xbf16>
    %101 = vector.shape_cast %100 : vector<1x128x128xbf16> to vector<128x128xbf16>
    %cst_55 = arith.constant dense<0.000000e+00> : vector<64x128xf32>
    %102 = tpu.matmul %99, %101, %cst_55 {dimension_numbers = #tpu.dot_dimension_numbers<[1], [0], [0], [1], [0, 0, 1, 1], [], []>} : vector<64x128xbf16>, vector<128x128xbf16>, vector<64x128xf32> -> vector<64x128xf32>
    %c4 = arith.constant 4 : index
    %c0_56 = arith.constant 0 : index
    %103 = vector.load %arg4[%c4, %c0_56] : memref<48x128xf32, #tpu.memory_space<vmem>>, vector<1x128xf32>
    %104 = vector.broadcast %103 : vector<1x128xf32> to vector<64x128xf32>
    %105 = arith.addf %102, %104 : vector<64x128xf32>
    %106 = arith.truncf %105 : vector<64x128xf32> to vector<64x128xbf16>
    %c4_57 = arith.constant 4 : index
    %c0_58 = arith.constant 0 : index
    %c0_59 = arith.constant 0 : index
    %107 = vector.load %arg2[%c4_57, %c0_58, %c0_59] : memref<8x128x128xbf16, #tpu.memory_space<vmem>>, vector<1x128x128xbf16>
    %108 = vector.shape_cast %107 : vector<1x128x128xbf16> to vector<128x128xbf16>
    %cst_60 = arith.constant dense<0.000000e+00> : vector<64x128xf32>
    %109 = tpu.matmul %106, %108, %cst_60 {dimension_numbers = #tpu.dot_dimension_numbers<[1], [0], [0], [1], [0, 0, 1, 1], [], []>} : vector<64x128xbf16>, vector<128x128xbf16>, vector<64x128xf32> -> vector<64x128xf32>
    %c5 = arith.constant 5 : index
    %c0_61 = arith.constant 0 : index
    %110 = vector.load %arg4[%c5, %c0_61] : memref<48x128xf32, #tpu.memory_space<vmem>>, vector<1x128xf32>
    %111 = vector.broadcast %110 : vector<1x128xf32> to vector<64x128xf32>
    %112 = arith.addf %109, %111 : vector<64x128xf32>
    %cst_62 = arith.constant 0.000000e+00 : f32
    %113 = vector.broadcast %cst_62 : f32 to vector<64x128xf32>
    %114 = arith.maximumf %112, %113 : vector<64x128xf32>
    %115 = arith.truncf %114 : vector<64x128xf32> to vector<64x128xbf16>
    %c0_63 = arith.constant 0 : index
    %c0_64 = arith.constant 0 : index
    %116 = vector.load %arg3[%c0_63, %c0_64] : memref<576x64xbf16, #tpu.memory_space<vmem>>, vector<64x64xbf16>
    %cst_65 = arith.constant dense<0.000000e+00> : vector<64x128xf32>
    %117 = tpu.matmul %116, %115, %cst_65 {dimension_numbers = #tpu.dot_dimension_numbers<[1], [0], [0], [1], [0, 0, 1, 1], [], []>} : vector<64x64xbf16>, vector<64x128xbf16>, vector<64x128xf32> -> vector<64x128xf32>
    %c32 = arith.constant 32 : index
    %c0_66 = arith.constant 0 : index
    %118 = vector.load %arg4[%c32, %c0_66] : memref<48x128xf32, #tpu.memory_space<vmem>>, vector<1x128xf32>
    %119 = vector.broadcast %118 : vector<1x128xf32> to vector<64x128xf32>
    %120 = arith.mulf %117, %119 : vector<64x128xf32>
    %c64_67 = arith.constant 64 : index
    %c0_68 = arith.constant 0 : index
    %121 = vector.load %arg3[%c64_67, %c0_68] : memref<576x64xbf16, #tpu.memory_space<vmem>>, vector<64x64xbf16>
    %cst_69 = arith.constant dense<0.000000e+00> : vector<64x128xf32>
    %122 = tpu.matmul %121, %115, %cst_69 {dimension_numbers = #tpu.dot_dimension_numbers<[1], [0], [0], [1], [0, 0, 1, 1], [], []>} : vector<64x64xbf16>, vector<64x128xbf16>, vector<64x128xf32> -> vector<64x128xf32>
    %c33 = arith.constant 33 : index
    %c0_70 = arith.constant 0 : index
    %123 = vector.load %arg4[%c33, %c0_70] : memref<48x128xf32, #tpu.memory_space<vmem>>, vector<1x128xf32>
    %124 = vector.broadcast %123 : vector<1x128xf32> to vector<64x128xf32>
    %125 = arith.mulf %122, %124 : vector<64x128xf32>
    %126 = arith.addf %120, %125 : vector<64x128xf32>
    %c128_71 = arith.constant 128 : index
    %c0_72 = arith.constant 0 : index
    %127 = vector.load %arg3[%c128_71, %c0_72] : memref<576x64xbf16, #tpu.memory_space<vmem>>, vector<64x64xbf16>
    %cst_73 = arith.constant dense<0.000000e+00> : vector<64x128xf32>
    %128 = tpu.matmul %127, %115, %cst_73 {dimension_numbers = #tpu.dot_dimension_numbers<[1], [0], [0], [1], [0, 0, 1, 1], [], []>} : vector<64x64xbf16>, vector<64x128xbf16>, vector<64x128xf32> -> vector<64x128xf32>
    %c34 = arith.constant 34 : index
    %c0_74 = arith.constant 0 : index
    %129 = vector.load %arg4[%c34, %c0_74] : memref<48x128xf32, #tpu.memory_space<vmem>>, vector<1x128xf32>
    %130 = vector.broadcast %129 : vector<1x128xf32> to vector<64x128xf32>
    %131 = arith.mulf %128, %130 : vector<64x128xf32>
    %132 = arith.addf %126, %131 : vector<64x128xf32>
    %c192_75 = arith.constant 192 : index
    %c0_76 = arith.constant 0 : index
    %133 = vector.load %arg3[%c192_75, %c0_76] : memref<576x64xbf16, #tpu.memory_space<vmem>>, vector<64x64xbf16>
    %cst_77 = arith.constant dense<0.000000e+00> : vector<64x128xf32>
    %134 = tpu.matmul %133, %115, %cst_77 {dimension_numbers = #tpu.dot_dimension_numbers<[1], [0], [0], [1], [0, 0, 1, 1], [], []>} : vector<64x64xbf16>, vector<64x128xbf16>, vector<64x128xf32> -> vector<64x128xf32>
    %c35 = arith.constant 35 : index
    %c0_78 = arith.constant 0 : index
    %135 = vector.load %arg4[%c35, %c0_78] : memref<48x128xf32, #tpu.memory_space<vmem>>, vector<1x128xf32>
    %136 = vector.broadcast %135 : vector<1x128xf32> to vector<64x128xf32>
    %137 = arith.mulf %134, %136 : vector<64x128xf32>
    %138 = arith.addf %132, %137 : vector<64x128xf32>
    %c256_79 = arith.constant 256 : index
    %c0_80 = arith.constant 0 : index
    %139 = vector.load %arg3[%c256_79, %c0_80] : memref<576x64xbf16, #tpu.memory_space<vmem>>, vector<64x64xbf16>
    %cst_81 = arith.constant dense<0.000000e+00> : vector<64x128xf32>
    %140 = tpu.matmul %139, %115, %cst_81 {dimension_numbers = #tpu.dot_dimension_numbers<[1], [0], [0], [1], [0, 0, 1, 1], [], []>} : vector<64x64xbf16>, vector<64x128xbf16>, vector<64x128xf32> -> vector<64x128xf32>
    %c36 = arith.constant 36 : index
    %c0_82 = arith.constant 0 : index
    %141 = vector.load %arg4[%c36, %c0_82] : memref<48x128xf32, #tpu.memory_space<vmem>>, vector<1x128xf32>
    %142 = vector.broadcast %141 : vector<1x128xf32> to vector<64x128xf32>
    %143 = arith.mulf %140, %142 : vector<64x128xf32>
    %144 = arith.addf %138, %143 : vector<64x128xf32>
    %c320_83 = arith.constant 320 : index
    %c0_84 = arith.constant 0 : index
    %145 = vector.load %arg3[%c320_83, %c0_84] : memref<576x64xbf16, #tpu.memory_space<vmem>>, vector<64x64xbf16>
    %cst_85 = arith.constant dense<0.000000e+00> : vector<64x128xf32>
    %146 = tpu.matmul %145, %115, %cst_85 {dimension_numbers = #tpu.dot_dimension_numbers<[1], [0], [0], [1], [0, 0, 1, 1], [], []>} : vector<64x64xbf16>, vector<64x128xbf16>, vector<64x128xf32> -> vector<64x128xf32>
    %c37 = arith.constant 37 : index
    %c0_86 = arith.constant 0 : index
    %147 = vector.load %arg4[%c37, %c0_86] : memref<48x128xf32, #tpu.memory_space<vmem>>, vector<1x128xf32>
    %148 = vector.broadcast %147 : vector<1x128xf32> to vector<64x128xf32>
    %149 = arith.mulf %146, %148 : vector<64x128xf32>
    %150 = arith.addf %144, %149 : vector<64x128xf32>
    %c384_87 = arith.constant 384 : index
    %c0_88 = arith.constant 0 : index
    %151 = vector.load %arg3[%c384_87, %c0_88] : memref<576x64xbf16, #tpu.memory_space<vmem>>, vector<64x64xbf16>
    %cst_89 = arith.constant dense<0.000000e+00> : vector<64x128xf32>
    %152 = tpu.matmul %151, %115, %cst_89 {dimension_numbers = #tpu.dot_dimension_numbers<[1], [0], [0], [1], [0, 0, 1, 1], [], []>} : vector<64x64xbf16>, vector<64x128xbf16>, vector<64x128xf32> -> vector<64x128xf32>
    %c38 = arith.constant 38 : index
    %c0_90 = arith.constant 0 : index
    %153 = vector.load %arg4[%c38, %c0_90] : memref<48x128xf32, #tpu.memory_space<vmem>>, vector<1x128xf32>
    %154 = vector.broadcast %153 : vector<1x128xf32> to vector<64x128xf32>
    %155 = arith.mulf %152, %154 : vector<64x128xf32>
    %156 = arith.addf %150, %155 : vector<64x128xf32>
    %c448_91 = arith.constant 448 : index
    %c0_92 = arith.constant 0 : index
    %157 = vector.load %arg3[%c448_91, %c0_92] : memref<576x64xbf16, #tpu.memory_space<vmem>>, vector<64x64xbf16>
    %cst_93 = arith.constant dense<0.000000e+00> : vector<64x128xf32>
    %158 = tpu.matmul %157, %115, %cst_93 {dimension_numbers = #tpu.dot_dimension_numbers<[1], [0], [0], [1], [0, 0, 1, 1], [], []>} : vector<64x64xbf16>, vector<64x128xbf16>, vector<64x128xf32> -> vector<64x128xf32>
    %c39 = arith.constant 39 : index
    %c0_94 = arith.constant 0 : index
    %159 = vector.load %arg4[%c39, %c0_94] : memref<48x128xf32, #tpu.memory_space<vmem>>, vector<1x128xf32>
    %160 = vector.broadcast %159 : vector<1x128xf32> to vector<64x128xf32>
    %161 = arith.mulf %158, %160 : vector<64x128xf32>
    %162 = arith.addf %156, %161 : vector<64x128xf32>
    %c512_95 = arith.constant 512 : index
    %c0_96 = arith.constant 0 : index
    %163 = vector.load %arg3[%c512_95, %c0_96] : memref<576x64xbf16, #tpu.memory_space<vmem>>, vector<64x64xbf16>
    %cst_97 = arith.constant dense<0.000000e+00> : vector<64x128xf32>
    %164 = tpu.matmul %163, %115, %cst_97 {dimension_numbers = #tpu.dot_dimension_numbers<[1], [0], [0], [1], [0, 0, 1, 1], [], []>} : vector<64x64xbf16>, vector<64x128xbf16>, vector<64x128xf32> -> vector<64x128xf32>
    %c40 = arith.constant 40 : index
    %c0_98 = arith.constant 0 : index
    %165 = vector.load %arg4[%c40, %c0_98] : memref<48x128xf32, #tpu.memory_space<vmem>>, vector<1x128xf32>
    %166 = vector.broadcast %165 : vector<1x128xf32> to vector<64x128xf32>
    %167 = arith.mulf %164, %166 : vector<64x128xf32>
    %168 = arith.addf %162, %167 : vector<64x128xf32>
    %c6 = arith.constant 6 : index
    %c0_99 = arith.constant 0 : index
    %169 = vector.load %arg4[%c6, %c0_99] : memref<48x128xf32, #tpu.memory_space<vmem>>, vector<1x128xf32>
    %170 = vector.broadcast %169 : vector<1x128xf32> to vector<64x128xf32>
    %171 = arith.addf %168, %170 : vector<64x128xf32>
    %cst_100 = arith.constant 0.000000e+00 : f32
    %172 = vector.broadcast %cst_100 : f32 to vector<64x128xf32>
    %173 = arith.maximumf %171, %172 : vector<64x128xf32>
    %c5_101 = arith.constant 5 : index
    %c0_102 = arith.constant 0 : index
    %c0_103 = arith.constant 0 : index
    %174 = vector.load %arg2[%c5_101, %c0_102, %c0_103] : memref<8x128x128xbf16, #tpu.memory_space<vmem>>, vector<1x128x128xbf16>
    %175 = vector.shape_cast %174 : vector<1x128x128xbf16> to vector<128x128xbf16>
    %c7 = arith.constant 7 : index
    %c0_104 = arith.constant 0 : index
    %176 = vector.load %arg4[%c7, %c0_104] : memref<48x128xf32, #tpu.memory_space<vmem>>, vector<1x128xf32>
    %c6_105 = arith.constant 6 : index
    %c0_106 = arith.constant 0 : index
    %c0_107 = arith.constant 0 : index
    %177 = vector.load %arg2[%c6_105, %c0_106, %c0_107] : memref<8x128x128xbf16, #tpu.memory_space<vmem>>, vector<1x128x128xbf16>
    %178 = vector.shape_cast %177 : vector<1x128x128xbf16> to vector<128x128xbf16>
    %c8 = arith.constant 8 : index
    %c0_108 = arith.constant 0 : index
    %179 = vector.load %arg4[%c8, %c0_108] : memref<48x128xf32, #tpu.memory_space<vmem>>, vector<1x128xf32>
    %cst_109 = arith.constant dense<0.000000e+00> : vector<128xf32>
    %180 = vector.multi_reduction <add>, %173, %cst_109 [0] : vector<64x128xf32> to vector<128xf32>
    %181 = vector.shape_cast %180 : vector<128xf32> to vector<1x128xf32>
    %cst_110 = arith.constant 6.400000e+01 : f32
    %182 = vector.broadcast %cst_110 : f32 to vector<1x128xf32>
    %183 = arith.divf %181, %182 : vector<1x128xf32>
    %184 = vector.shape_cast %183 : vector<1x128xf32> to vector<1x128xf32>
    %185 = vector.broadcast %184 : vector<1x128xf32> to vector<8x128xf32>
    %186 = arith.truncf %185 : vector<8x128xf32> to vector<8x128xbf16>
    %cst_111 = arith.constant dense<0.000000e+00> : vector<8x128xf32>
    %187 = tpu.matmul %186, %175, %cst_111 {dimension_numbers = #tpu.dot_dimension_numbers<[1], [0], [0], [1], [0, 0, 1, 1], [], []>} : vector<8x128xbf16>, vector<128x128xbf16>, vector<8x128xf32> -> vector<8x128xf32>
    %188 = vector.broadcast %176 : vector<1x128xf32> to vector<8x128xf32>
    %189 = arith.addf %187, %188 : vector<8x128xf32>
    %cst_112 = arith.constant 0.000000e+00 : f32
    %190 = vector.broadcast %cst_112 : f32 to vector<8x128xf32>
    %191 = arith.maximumf %189, %190 : vector<8x128xf32>
    %192 = arith.truncf %191 : vector<8x128xf32> to vector<8x128xbf16>
    %cst_113 = arith.constant dense<0.000000e+00> : vector<8x128xf32>
    %193 = tpu.matmul %192, %178, %cst_113 {dimension_numbers = #tpu.dot_dimension_numbers<[1], [0], [0], [1], [0, 0, 1, 1], [], []>} : vector<8x128xbf16>, vector<128x128xbf16>, vector<8x128xf32> -> vector<8x128xf32>
    %194 = vector.broadcast %179 : vector<1x128xf32> to vector<8x128xf32>
    %195 = arith.addf %193, %194 : vector<8x128xf32>
    %196 = vector.extract_strided_slice %195 {offsets = [0, 0], sizes = [1, 128], strides = [1, 1]} : vector<8x128xf32> to vector<1x128xf32>
    %197 = arith.negf %196 : vector<1x128xf32>
    %198 = math.exp %197 : vector<1x128xf32>
    %cst_114 = arith.constant 1.000000e+00 : f32
    %199 = vector.broadcast %cst_114 : f32 to vector<1x128xf32>
    %200 = arith.addf %199, %198 : vector<1x128xf32>
    %201 = arith.divf %199, %200 : vector<1x128xf32>
    %202 = vector.broadcast %201 : vector<1x128xf32> to vector<64x128xf32>
    %203 = arith.mulf %173, %202 : vector<64x128xf32>
    %204 = arith.truncf %203 : vector<64x128xf32> to vector<64x128xbf16>
    %c7_115 = arith.constant 7 : index
    %c0_116 = arith.constant 0 : index
    %c0_117 = arith.constant 0 : index
    %205 = vector.load %arg2[%c7_115, %c0_116, %c0_117] : memref<8x128x128xbf16, #tpu.memory_space<vmem>>, vector<1x128x128xbf16>
    %206 = vector.shape_cast %205 : vector<1x128x128xbf16> to vector<128x128xbf16>
    %cst_118 = arith.constant dense<0.000000e+00> : vector<64x128xf32>
    %207 = tpu.matmul %204, %206, %cst_118 {dimension_numbers = #tpu.dot_dimension_numbers<[1], [0], [0], [1], [0, 0, 1, 1], [], []>} : vector<64x128xbf16>, vector<128x128xbf16>, vector<64x128xf32> -> vector<64x128xf32>
    %c9 = arith.constant 9 : index
    %c0_119 = arith.constant 0 : index
    %208 = vector.load %arg4[%c9, %c0_119] : memref<48x128xf32, #tpu.memory_space<vmem>>, vector<1x128xf32>
    %209 = vector.broadcast %208 : vector<1x128xf32> to vector<64x128xf32>
    %210 = arith.addf %207, %209 : vector<64x128xf32>
    %211 = arith.addf %210, %105 : vector<64x128xf32>
    %212 = arith.truncf %211 : vector<64x128xf32> to vector<64x128xbf16>
    %c0_120 = arith.constant 0 : index
    %c0_121 = arith.constant 0 : index
    %213 = vector.load %arg5[%c0_120, %c0_121] : memref<128x1280xbf16, #tpu.memory_space<vmem>>, vector<128x256xbf16>
    %cst_122 = arith.constant dense<0.000000e+00> : vector<64x256xf32>
    %214 = tpu.matmul %212, %213, %cst_122 {dimension_numbers = #tpu.dot_dimension_numbers<[1], [0], [0], [1], [0, 0, 1, 1], [], []>} : vector<64x128xbf16>, vector<128x256xbf16>, vector<64x256xf32> -> vector<64x256xf32>
    %c0_123 = arith.constant 0 : index
    %c0_124 = arith.constant 0 : index
    %215 = vector.load %arg6[%c0_123, %c0_124] : memref<1x1280xf32, #tpu.memory_space<vmem>>, vector<1x256xf32>
    %216 = vector.broadcast %215 : vector<1x256xf32> to vector<64x256xf32>
    %217 = arith.addf %214, %216 : vector<64x256xf32>
    %cst_125 = arith.constant 0.000000e+00 : f32
    %218 = vector.broadcast %cst_125 : f32 to vector<64x256xf32>
    %219 = arith.maximumf %217, %218 : vector<64x256xf32>
    %220 = arith.truncf %219 : vector<64x256xf32> to vector<64x256xbf16>
    %c0_126 = arith.constant 0 : index
    %c0_127 = arith.constant 0 : index
    %221 = vector.load %arg7[%c0_126, %c0_127] : memref<1280x128xbf16, #tpu.memory_space<vmem>>, vector<256x128xbf16>
    %cst_128 = arith.constant dense<0.000000e+00> : vector<64x128xf32>
    %222 = tpu.matmul %220, %221, %cst_128 {dimension_numbers = #tpu.dot_dimension_numbers<[1], [0], [0], [1], [0, 0, 1, 1], [], []>} : vector<64x256xbf16>, vector<256x128xbf16>, vector<64x128xf32> -> vector<64x128xf32>
    %c0_129 = arith.constant 0 : index
    %c256_130 = arith.constant 256 : index
    %223 = vector.load %arg5[%c0_129, %c256_130] : memref<128x1280xbf16, #tpu.memory_space<vmem>>, vector<128x256xbf16>
    %cst_131 = arith.constant dense<0.000000e+00> : vector<64x256xf32>
    %224 = tpu.matmul %212, %223, %cst_131 {dimension_numbers = #tpu.dot_dimension_numbers<[1], [0], [0], [1], [0, 0, 1, 1], [], []>} : vector<64x128xbf16>, vector<128x256xbf16>, vector<64x256xf32> -> vector<64x256xf32>
    %c0_132 = arith.constant 0 : index
    %c256_133 = arith.constant 256 : index
    %225 = vector.load %arg6[%c0_132, %c256_133] : memref<1x1280xf32, #tpu.memory_space<vmem>>, vector<1x256xf32>
    %226 = vector.broadcast %225 : vector<1x256xf32> to vector<64x256xf32>
    %227 = arith.addf %224, %226 : vector<64x256xf32>
    %cst_134 = arith.constant 0.000000e+00 : f32
    %228 = vector.broadcast %cst_134 : f32 to vector<64x256xf32>
    %229 = arith.maximumf %227, %228 : vector<64x256xf32>
    %230 = arith.truncf %229 : vector<64x256xf32> to vector<64x256xbf16>
    %c256_135 = arith.constant 256 : index
    %c0_136 = arith.constant 0 : index
    %231 = vector.load %arg7[%c256_135, %c0_136] : memref<1280x128xbf16, #tpu.memory_space<vmem>>, vector<256x128xbf16>
    %cst_137 = arith.constant dense<0.000000e+00> : vector<64x128xf32>
    %232 = tpu.matmul %230, %231, %cst_137 {dimension_numbers = #tpu.dot_dimension_numbers<[1], [0], [0], [1], [0, 0, 1, 1], [], []>} : vector<64x256xbf16>, vector<256x128xbf16>, vector<64x128xf32> -> vector<64x128xf32>
    %233 = arith.addf %222, %232 : vector<64x128xf32>
    %c0_138 = arith.constant 0 : index
    %c512_139 = arith.constant 512 : index
    %234 = vector.load %arg5[%c0_138, %c512_139] : memref<128x1280xbf16, #tpu.memory_space<vmem>>, vector<128x256xbf16>
    %cst_140 = arith.constant dense<0.000000e+00> : vector<64x256xf32>
    %235 = tpu.matmul %212, %234, %cst_140 {dimension_numbers = #tpu.dot_dimension_numbers<[1], [0], [0], [1], [0, 0, 1, 1], [], []>} : vector<64x128xbf16>, vector<128x256xbf16>, vector<64x256xf32> -> vector<64x256xf32>
    %c0_141 = arith.constant 0 : index
    %c512_142 = arith.constant 512 : index
    %236 = vector.load %arg6[%c0_141, %c512_142] : memref<1x1280xf32, #tpu.memory_space<vmem>>, vector<1x256xf32>
    %237 = vector.broadcast %236 : vector<1x256xf32> to vector<64x256xf32>
    %238 = arith.addf %235, %237 : vector<64x256xf32>
    %cst_143 = arith.constant 0.000000e+00 : f32
    %239 = vector.broadcast %cst_143 : f32 to vector<64x256xf32>
    %240 = arith.maximumf %238, %239 : vector<64x256xf32>
    %241 = arith.truncf %240 : vector<64x256xf32> to vector<64x256xbf16>
    %c512_144 = arith.constant 512 : index
    %c0_145 = arith.constant 0 : index
    %242 = vector.load %arg7[%c512_144, %c0_145] : memref<1280x128xbf16, #tpu.memory_space<vmem>>, vector<256x128xbf16>
    %cst_146 = arith.constant dense<0.000000e+00> : vector<64x128xf32>
    %243 = tpu.matmul %241, %242, %cst_146 {dimension_numbers = #tpu.dot_dimension_numbers<[1], [0], [0], [1], [0, 0, 1, 1], [], []>} : vector<64x256xbf16>, vector<256x128xbf16>, vector<64x128xf32> -> vector<64x128xf32>
    %244 = arith.addf %233, %243 : vector<64x128xf32>
    %c0_147 = arith.constant 0 : index
    %c768 = arith.constant 768 : index
    %245 = vector.load %arg5[%c0_147, %c768] : memref<128x1280xbf16, #tpu.memory_space<vmem>>, vector<128x256xbf16>
    %cst_148 = arith.constant dense<0.000000e+00> : vector<64x256xf32>
    %246 = tpu.matmul %212, %245, %cst_148 {dimension_numbers = #tpu.dot_dimension_numbers<[1], [0], [0], [1], [0, 0, 1, 1], [], []>} : vector<64x128xbf16>, vector<128x256xbf16>, vector<64x256xf32> -> vector<64x256xf32>
    %c0_149 = arith.constant 0 : index
    %c768_150 = arith.constant 768 : index
    %247 = vector.load %arg6[%c0_149, %c768_150] : memref<1x1280xf32, #tpu.memory_space<vmem>>, vector<1x256xf32>
    %248 = vector.broadcast %247 : vector<1x256xf32> to vector<64x256xf32>
    %249 = arith.addf %246, %248 : vector<64x256xf32>
    %cst_151 = arith.constant 0.000000e+00 : f32
    %250 = vector.broadcast %cst_151 : f32 to vector<64x256xf32>
    %251 = arith.maximumf %249, %250 : vector<64x256xf32>
    %252 = arith.truncf %251 : vector<64x256xf32> to vector<64x256xbf16>
    %c768_152 = arith.constant 768 : index
    %c0_153 = arith.constant 0 : index
    %253 = vector.load %arg7[%c768_152, %c0_153] : memref<1280x128xbf16, #tpu.memory_space<vmem>>, vector<256x128xbf16>
    %cst_154 = arith.constant dense<0.000000e+00> : vector<64x128xf32>
    %254 = tpu.matmul %252, %253, %cst_154 {dimension_numbers = #tpu.dot_dimension_numbers<[1], [0], [0], [1], [0, 0, 1, 1], [], []>} : vector<64x256xbf16>, vector<256x128xbf16>, vector<64x128xf32> -> vector<64x128xf32>
    %255 = arith.addf %244, %254 : vector<64x128xf32>
    %c0_155 = arith.constant 0 : index
    %c1024 = arith.constant 1024 : index
    %256 = vector.load %arg5[%c0_155, %c1024] : memref<128x1280xbf16, #tpu.memory_space<vmem>>, vector<128x256xbf16>
    %cst_156 = arith.constant dense<0.000000e+00> : vector<64x256xf32>
    %257 = tpu.matmul %212, %256, %cst_156 {dimension_numbers = #tpu.dot_dimension_numbers<[1], [0], [0], [1], [0, 0, 1, 1], [], []>} : vector<64x128xbf16>, vector<128x256xbf16>, vector<64x256xf32> -> vector<64x256xf32>
    %c0_157 = arith.constant 0 : index
    %c1024_158 = arith.constant 1024 : index
    %258 = vector.load %arg6[%c0_157, %c1024_158] : memref<1x1280xf32, #tpu.memory_space<vmem>>, vector<1x256xf32>
    %259 = vector.broadcast %258 : vector<1x256xf32> to vector<64x256xf32>
    %260 = arith.addf %257, %259 : vector<64x256xf32>
    %cst_159 = arith.constant 0.000000e+00 : f32
    %261 = vector.broadcast %cst_159 : f32 to vector<64x256xf32>
    %262 = arith.maximumf %260, %261 : vector<64x256xf32>
    %263 = arith.truncf %262 : vector<64x256xf32> to vector<64x256xbf16>
    %c1024_160 = arith.constant 1024 : index
    %c0_161 = arith.constant 0 : index
    %264 = vector.load %arg7[%c1024_160, %c0_161] : memref<1280x128xbf16, #tpu.memory_space<vmem>>, vector<256x128xbf16>
    %cst_162 = arith.constant dense<0.000000e+00> : vector<64x128xf32>
    %265 = tpu.matmul %263, %264, %cst_162 {dimension_numbers = #tpu.dot_dimension_numbers<[1], [0], [0], [1], [0, 0, 1, 1], [], []>} : vector<64x256xbf16>, vector<256x128xbf16>, vector<64x128xf32> -> vector<64x128xf32>
    %266 = arith.addf %255, %265 : vector<64x128xf32>
    %cst_163 = arith.constant dense<0.000000e+00> : vector<128xf32>
    %267 = vector.multi_reduction <add>, %266, %cst_163 [0] : vector<64x128xf32> to vector<128xf32>
    %268 = vector.shape_cast %267 : vector<128xf32> to vector<1x128xf32>
    %cst_164 = arith.constant 6.400000e+01 : f32
    %269 = vector.broadcast %cst_164 : f32 to vector<1x128xf32>
    %270 = arith.divf %268, %269 : vector<1x128xf32>
    %c10 = arith.constant 10 : index
    %c0_165 = arith.constant 0 : index
    %271 = vector.load %arg4[%c10, %c0_165] : memref<48x128xf32, #tpu.memory_space<vmem>>, vector<1x128xf32>
    %272 = arith.addf %270, %271 : vector<1x128xf32>
    %c0_166 = arith.constant 0 : index
    %c0_167 = arith.constant 0 : index
    %c0_168 = arith.constant 0 : index
    %273 = vector.load %arg8[%c0_166, %c0_167, %c0_168] : memref<1x1x128xf32, #tpu.memory_space<vmem>>, vector<1x1x128xf32>
    %274 = vector.shape_cast %273 : vector<1x1x128xf32> to vector<1x128xf32>
    %275 = vector.shape_cast %272 : vector<1x128xf32> to vector<1x1x128xf32>
    tpu.vector_store %arg8[%c0_166, %c0_167, %c0_168], %275 {strides = array<i32>} : memref<1x1x128xf32, #tpu.memory_space<vmem>>, vector<1x1x128xf32>,
    return
  }
  func.func @transform_0(%arg0: i32) -> (i32, i32, i32) {
    %c0_i32 = arith.constant 0 : i32
    %c0_i32_0 = arith.constant 0 : i32
    %c0_i32_1 = arith.constant 0 : i32
    return %arg0, %c0_i32, %c0_i32_0 : i32, i32, i32
  }
  func.func @transform_1(%arg0: i32) -> (i32, i32, i32) {
    %c0_i32 = arith.constant 0 : i32
    %c0_i32_0 = arith.constant 0 : i32
    %c0_i32_1 = arith.constant 0 : i32
    %c0_i32_2 = arith.constant 0 : i32
    return %c0_i32, %c0_i32_0, %c0_i32_1 : i32, i32, i32
  }
  func.func @transform_2(%arg0: i32) -> (i32, i32) {
    %c0_i32 = arith.constant 0 : i32
    %c0_i32_0 = arith.constant 0 : i32
    %c0_i32_1 = arith.constant 0 : i32
    return %c0_i32, %c0_i32_0 : i32, i32
  }
  func.func @transform_3(%arg0: i32) -> (i32, i32) {
    %c0_i32 = arith.constant 0 : i32
    %c0_i32_0 = arith.constant 0 : i32
    %c0_i32_1 = arith.constant 0 : i32
    return %c0_i32, %c0_i32_0 : i32, i32
  }
  func.func @transform_4(%arg0: i32) -> (i32, i32) {
    %c0_i32 = arith.constant 0 : i32
    %c0_i32_0 = arith.constant 0 : i32
    %c0_i32_1 = arith.constant 0 : i32
    return %c0_i32, %c0_i32_0 : i32, i32
  }
  func.func @transform_5(%arg0: i32) -> (i32, i32) {
    %c0_i32 = arith.constant 0 : i32
    %c0_i32_0 = arith.constant 0 : i32
    %c0_i32_1 = arith.constant 0 : i32
    return %c0_i32, %c0_i32_0 : i32, i32
  }
  func.func @transform_6(%arg0: i32) -> (i32, i32) {
    %c0_i32 = arith.constant 0 : i32
    %c0_i32_0 = arith.constant 0 : i32
    %c0_i32_1 = arith.constant 0 : i32
    return %c0_i32, %c0_i32_0 : i32, i32
  }
  func.func @transform_7(%arg0: i32) -> (i32, i32, i32) {
    %c0_i32 = arith.constant 0 : i32
    %c0_i32_0 = arith.constant 0 : i32
    %c0_i32_1 = arith.constant 0 : i32
    return %arg0, %c0_i32, %c0_i32_0 : i32, i32, i32
  }
}

</mosaic_0001>

<bundles_post_ra>
// kernel: efficientnet_forward.1
= control target key start
LH: loop header
LB: loop body
LE: loop exit
PB: predicated region body
PF: predicated region fallthrough
CT: control target
= control target key end

     0   :  { %s8713_s0 = inlined_call_operand.vmem [shape: bf16[2,64,128], index: 0, kind: input, shape index: {}]   ;;  %s8714_s1 = inlined_call_operand.vmem [shape: bf16[8,128,128], index: 1, kind: input, shape index: {}]   ;;  %s8715_s2 = inlined_call_operand.hbm [shape: bf16[576,64], index: 2, kind: input, shape index: {}]   ;;  %s8716_s3 = inlined_call_operand.hbm [shape: f32[48,128], index: 3, kind: input, shape index: {}]   ;;  %s8717_s4 = inlined_call_operand.hbm [shape: bf16[128,1280], index: 4, kind: input, shape index: {}]   ;;  %s8718_s5 = inlined_call_operand.vmem [shape: f32[1,1280], index: 5, kind: input, shape index: {}]   ;;  %s8719_s6 = inlined_call_operand.hbm [shape: bf16[1280,128], index: 6, kind: input, shape index: {}]   ;;  %s8720_s7 = inlined_call_operand.hbm [shape: f32[2,1,128], index: 7, kind: output, shape index: {}]  }
   0x1   :  { %8727 = sst [smem:[#allocation17_spill]] %s8716_s3 }
   0x2   :  { %12 = vsyncpa [#allocation3], 0 }
   0x3   :  { %13 = vsyncpa [#allocation6], 0 }
   0x4   :  { %14 = vsyncpa [#allocation9], 0 }
   0x5   :  { %15 = vsyncpa [#allocation4], 0 }
   0x6   :  { %17 = vsyncpa [#allocation4 + $0x1], 0  ;;  %s7608_s24 = smov 0   ;;  %s7610_s25 = smov 0  }
   0x7   :  { %s7612_s26 = smov 0   ;;  %s7614_s27 = smov 0  }
   0x8 LB: > { %8728 = sst [smem:[#allocation15_spill]] %s7548_s26  ;;  %s7629_s28 = sadd.s32 4294967295, %s7552_s27   ;;  %s7552_s27 = sphi %s7614_s27, %s8751_s27   ;;  %s7548_s26 = sphi %s7612_s26, %s8748_s26   ;;  %s7544_s25 = sphi %s7610_s25, %s8750_s25   ;;  %s7540_s24 = sphi %s7608_s24, %s8749_s24  }
   0x9   : > { %s5541_s29 = sadd.s32 4294967294, %s7552_s27   ;;  %s7633_s30 = sadd.s32 1, %s7552_s27  }
   0xa   : > { %s182_s8 = sadd.s32 1, %s7548_s26  ;;  %s179_s9 = ssub.s32 %s7552_s27, %s7633_s30 }
   0xb   : > { %p192_p0 = scmp.ne.s32.totalorder %s7548_s26, %s7544_s25  ;;  %p180_p1 = scmp.eq.s32.totalorder %s179_s9, 0 }
   0xc   : > { %p193_p2 = scmp.eq.s32.totalorder %s7629_s28, 1  ;;  %p198_p3 = scmp.ne.s32.totalorder %s7544_s25, %s7540_s24 }
   0xd   : > { %p199_p4 = scmp.eq.s32.totalorder %s5541_s29, 1  ;;  %p5542_p7 = scmp.ge.s32.totalorder %s7552_s27, 1 }
   0xe   : > { %s7644_s10 = scalar_select %p180_p1, %s7548_s26, %s182_s8  }
   0xf   : > { %p7646_p5 = por %p193_p2, %p192_p0  ;;  %p7650_p6 = por %p199_p4, %p198_p3 }
  0x10   : > { %8729 = sst [smem:[#allocation16_spill]] %s7644_s10  ;;  %p206_p8 = scmp.lt.s32.totalorder %s7552_s27, 3 }
  0x11   : > { %s8730_s11 = scalar_select %p7646_p5, 1, 0 }
  0x12   : > { %s8731_s12 = scalar_select %p7650_p6, 1, 0 }
  0x13   : > { %p8721_p9 = scmp.eq.s32.totalorder %s7629_s28, 0  ;;  %p7657_p10 = pnand %p5542_p7, %p206_p8 }
  0x14   : > { %s7554_s14 = smov [#allocation5]   ;;  %s7555_s17 = smov [#allocation2]  }
  0x15   : > { %s8732_s13 = scalar_select %p7657_p10, 1, 0 }
  0x16   : > { %s234_s15 = sshll.u32 %s7554_s14, 4  ;;  %p6947_p11 = pneg %p7657_p10  ;;  %s235_s15 = int_to_ptr.vmem [resolvable:$true] %s234_s15 }
  0x17   : > { %s221_s18 = sshll.u32 %s7555_s17, 4  ;;  %s8734_s3 = sld [smem:[#allocation17_spill]]  ;;  %s7669_s18 = int_to_ptr.vmem [resolvable:$true] %s221_s18 }
  0x18   : > { %p7665_p12 = pnand %p8721_p9, %p6947_p11 }
  0x1a   : > { %p7679_p0 = pneg %p7665_p12 }
  0x1d   : > { %s7366_s21 = scalar_lea.hbm %s8734_s3, 768 }
  0x1e   : > { %p7367_p13 = scmp.ne.s32.totalorder %s8734_s3, %s7366_s21  ;;  %p7373_p3 = scmp.lt.u32.totalorder %s7366_s21, %s8734_s3 }
  0x20   : > { %p7369_p1 = pnand %p7679_p0, %p7367_p13 }
  0x22   : > { %p7370_p2 = pneg %p7369_p1 }
  0x24   : > { %p7375_p4 = pnand %p7373_p3, %p7370_p2 }
  0x26   : > { %7378 = shalt.err (!%p7375_p4)
}
  0x27   : > { %s7379_s14 = scalar_lea.vmem %s235_s15, 768  ;;  %p7387_p9 = scmp.lt.s32.totalorder %s235_s15, %s235_s15 }
  0x28   : > { %p7380_p7 = scmp.ne.s32.totalorder %s235_s15, %s7379_s14  ;;  %p7388_p6 = scmp.lt.s32.totalorder %s7379_s14, %s7379_s14 }
  0x2a   : > { %p7382_p8 = pnand %p7380_p7, %p7679_p0  ;;  %p7389_p5 = por %p7388_p6, %p7387_p9 }
  0x2c   : > { %p7383_p11 = pneg %p7382_p8 }
  0x2e   : > { %p7390_p10 = pnand %p7389_p5, %p7383_p11 }
  0x30   : > { %7393 = shalt.err (!%p7390_p10)
}
  0x31   : > { %s7556_s17 = smov 128   ;;  %s7557_s19 = smov 8  }
  0x32   : > { %6953 = dma.hbm_to_vmem [thread:$0]  (!%p7665_p12), %s8734_s3, 768, %s235_s15, [#allocation6], %s7556_s17, %s7556_s17, %s7557_s19  }
  0x33   : > { %s7394_s8 = scalar_lea.hbm %s8715_s2, 4608 }
  0x34   : > { %p7395_p13 = scmp.ne.s32.totalorder %s8715_s2, %s7394_s8  ;;  %p7401_p9 = scmp.lt.u32.totalorder %s7394_s8, %s8715_s2 }
  0x36   : > { %p7397_p5 = pnand %p7395_p13, %p7679_p0 }
  0x38   : > { %p7398_p6 = pneg %p7397_p5 }
  0x3a   : > { %p7403_p10 = pnand %p7401_p9, %p7398_p6 }
  0x3c   : > { %7406 = shalt.err (!%p7403_p10)
}
  0x3d   : > { %s7407_s15 = scalar_lea.vmem %s7669_s18, 4608  ;;  %p7415_p4 = scmp.lt.s32.totalorder %s7669_s18, %s7669_s18 }
  0x3e   : > { %p7408_p1 = scmp.ne.s32.totalorder %s7669_s18, %s7407_s15  ;;  %p7416_p7 = scmp.lt.s32.totalorder %s7407_s15, %s7407_s15 }
  0x40   : > { %p7410_p2 = pnand %p7408_p1, %p7679_p0  ;;  %p7417_p8 = por %p7416_p7, %p7415_p4 }
  0x42   : > { %p7411_p3 = pneg %p7410_p2 }
  0x44   : > { %p7418_p11 = pnand %p7417_p8, %p7411_p3 }
  0x46   : > { %7421 = shalt.err (!%p7418_p11)
}
  0x47   : > { %s8725_s10 = smov 64   ;;  %s8726_s26 = smov 4  }
  0x48   : > { %6950 = dma.hbm_to_vmem [thread:$0]  (!%p7665_p12), %s8715_s2, 4608, %s7669_s18, [#allocation3], %s8725_s10, %s8725_s10, %s8726_s26  }
  0x49   : > { %s7560_s20 = smov [#allocation7]   ;;  %s7422_s8 = scalar_lea.hbm %s8717_s4, 10240 }
  0x4a   : > { %s247_s21 = sshll.u32 %s7560_s20, 4  ;;  %p7423_p13 = scmp.ne.s32.totalorder %s8717_s4, %s7422_s8  ;;  %s248_s21 = int_to_ptr.vmem [resolvable:$true] %s247_s21 }
  0x4b   : > { %p7429_p9 = scmp.lt.u32.totalorder %s7422_s8, %s8717_s4 }
  0x4c   : > { %p7425_p5 = pnand %p7423_p13, %p7679_p0 }
  0x4e   : > { %p7426_p6 = pneg %p7425_p5 }
  0x50   : > { %p7431_p10 = pnand %p7429_p9, %p7426_p6 }
  0x52   : > { %7434 = shalt.err (!%p7431_p10)
}
  0x53   : > { %s7435_s18 = scalar_lea.vmem %s248_s21, 10240  ;;  %p7443_p4 = scmp.lt.s32.totalorder %s248_s21, %s248_s21 }
  0x54   : > { %p7436_p1 = scmp.ne.s32.totalorder %s248_s21, %s7435_s18  ;;  %p7444_p7 = scmp.lt.s32.totalorder %s7435_s18, %s7435_s18 }
  0x56   : > { %p7438_p2 = pnand %p7436_p1, %p7679_p0  ;;  %p7445_p8 = por %p7444_p7, %p7443_p4 }
  0x58   : > { %p7439_p3 = pneg %p7438_p2 }
  0x5a   : > { %p7446_p11 = pnand %p7445_p8, %p7439_p3 }
  0x5c   : > { %7449 = shalt.err (!%p7446_p11)
}
  0x5d   : > { %s7561_s17 = smov 640   ;;  %s7562_s19 = smov 40  }
  0x5e   : > { %6956 = dma.hbm_to_vmem [thread:$0]  (!%p7665_p12), %s8717_s4, 10240, %s248_s21, [#allocation6], %s7561_s17, %s7561_s17, %s7562_s19  }
  0x5f   : > { %s7563_s22 = smov [#allocation8]   ;;  %s7450_s14 = scalar_lea.hbm %s8719_s6, 10240 }
  0x60   : > { %s263_s23 = sshll.u32 %s7563_s22, 4  ;;  %p7451_p13 = scmp.ne.s32.totalorder %s8719_s6, %s7450_s14  ;;  %s264_s23 = int_to_ptr.vmem [resolvable:$true] %s263_s23 }
  0x61   : > { %p7457_p9 = scmp.lt.u32.totalorder %s7450_s14, %s8719_s6 }
  0x62   : > { %p7453_p5 = pnand %p7451_p13, %p7679_p0 }
  0x64   : > { %p7454_p6 = pneg %p7453_p5 }
  0x66   : > { %p7459_p10 = pnand %p7457_p9, %p7454_p6 }
  0x68   : > { %7462 = shalt.err (!%p7459_p10)
}
  0x69   : > { %s7463_s21 = scalar_lea.vmem %s264_s23, 10240  ;;  %p7471_p4 = scmp.lt.s32.totalorder %s264_s23, %s264_s23 }
  0x6a   : > { %p7464_p1 = scmp.ne.s32.totalorder %s264_s23, %s7463_s21  ;;  %p7472_p7 = scmp.lt.s32.totalorder %s7463_s21, %s7463_s21 }
  0x6c   : > { %p7466_p2 = pnand %p7464_p1, %p7679_p0  ;;  %p7473_p8 = por %p7472_p7, %p7471_p4 }
  0x6e   : > { %p7467_p3 = pneg %p7466_p2 }
  0x70   : > { %p7474_p11 = pnand %p7473_p8, %p7467_p3 }
  0x72   : > { %7477 = shalt.err (!%p7474_p11)
}
  0x73   : > { %s8736_s17 = smov 4   ;;  %s8737_s19 = smov 64  }
  0x74   : > { %6959 = dma.hbm_to_vmem [thread:$0]  (!%p7665_p12), %s8719_s6, 10240, %s264_s23, [#allocation9], %s8737_s19, %s8737_s19, %s8736_s17  }
  0x75   : > { %p8738_p13 = scmp.ne.s32.totalorder %s8732_s13, 0 }
  0x76   : > { %p8739_p0 = scmp.eq.s32.totalorder (!%p8738_p13), %s7629_s28, 0 }
  0x77   : > { %287 = sbr.rel (%p8738_p13) target bundleno = 3478 (0xd96), region = 48 }
  0x7e   : > { %7523 = dma.done.wait (%p8739_p0), [#allocation3], 4608   ;;  %p8740_p5 = pmov %p8739_p0 }
  0x7f   : > { %p8741_p6 = pmov %p8739_p0 }
  0x80   : > { %7525 = vsyncadd (%p8740_p5), [#allocation3], 4294962688 }
  0x81   : > { %7527 = dma.done.wait (%p8741_p6), [#allocation6], 11008   ;;  %p8742_p9 = pmov %p8739_p0 }
  0x82   : > { %p8743_p10 = pmov %p8739_p0 }
  0x83   : > { %7529 = vsyncadd (%p8742_p9), [#allocation6], 4294956288 }
  0x84   : > { %7531 = dma.done.wait (%p8743_p10), [#allocation9], 10240   ;;  %p8744_p12 = pmov %p8739_p0 }
  0x85   : > { %p330_p1 = scmp.lt.s32.totalorder %s7629_s28, 1  ;;  %v7018_v0 = vld [vmem:[%s8714_s1] sm:$0xff]   ;;  %v7019_v1 = vld [vmem:[%s8714_s1 + $0x8] sm:$0xff]   ;;  %v7020_v2 = vld [vmem:[%s8714_s1 + $0x10] sm:$0xff]   ;;  %vm542_vm0 = vcmask 523264   ;;  %vm7565_vm1 = vmmov 0  }
  0x86   : > { %7533 = vsyncadd (%p8744_p12), [#allocation9], 4294957056  ;;  %6465 = vmatprep.subr.bf16.mxu0 %v7018_v0  ;;  %v7021_v3 = vld [vmem:[%s8714_s1 + $0x18] sm:$0xff]   ;;  %v7022_v5 = vld [vmem:[%s8714_s1 + $0x20] sm:$0xff]   ;;  %s328_s8 = sand.u32 1, %s7544_s25   ;;  %s6033_s9 = sshll.u32 %s7629_s28, 4 }
  0x87   : > { %s331_s13 = scalar_select %p330_p1, %s7629_s28, 1  ;;  %6466 = vmatpush3.bf16.msra.mxu0 %v7018_v0  ;;  %v7023_v6 = vld [vmem:[%s8714_s1 + $0x28] sm:$0xff]   ;;  %v7024_v7 = vld [vmem:[%s8714_s1 + $0x30] sm:$0xff]   ;;  %v7025_v8 = vld [vmem:[%s8714_s1 + $0x38] sm:$0xff]  }
  0x88   : > { %6467 = vmatprep.subr.bf16.mxu0 %v7019_v1  ;;  %v7030_v12 = vld [vmem:[#allocation2] sm:$0xff]   ;;  %v7031_v43 = vld [vmem:[#allocation2 + $0x8] sm:$0xff]   ;;  %v7034_v45 = vld [vmem:[#allocation2 + $0x10] sm:$0xff]   ;;  %s329_s14 = scalar_lea.vmem [#allocation10], %s328_s8  ;;  %s8671_s17 = scalar_lea.hbm %s8720_s7, %s6033_s9 }
  0x89   : > { %s6036_s22 = sshll.u32 %s331_s13, 5  ;;  %v7032_v13 = vld [vmem:[#allocation2 + $0x80] sm:$0xff]   ;;  %6497 = vmatprep.mubr.msk.bf16.mxu1 %vm542_vm0, %v7030_v12  ;;  %v7033_v44 = vld [vmem:[#allocation2 + $0x88] sm:$0xff]   ;;  %v7036_v46 = vld [vmem:[#allocation2 + $0x90] sm:$0xff]   ;;  %s5433_s19 = scalar_lea.sflag [#allocation4], %s328_s8 }
  0x8a   : > { %s334_s15 = scalar_lea.vmem %s8713_s0, %s6036_s22  ;;  %v5555_v14 = vld [vmem:[#allocation5] ss:$0 sm:$0xff]  ;;  %v7035_v47 = vld [vmem:[#allocation2 + $0x18] sm:$0xff]   ;;  %v7039_v51 = vld [vmem:[#allocation2 + $0x28] sm:$0xff]   ;;  %p8745_p3 = scmp.ne.s32.totalorder %s8730_s11, 0 }
  0x8b   : > { %6468 = vmatpush3.bf16.msra.mxu0 %v7019_v1  ;;  %v7026_v4 = vld [vmem:[%s334_s15] sm:$0xff]   ;;  %v7027_v9 = vld [vmem:[%s334_s15 + $0x8] sm:$0xff]   ;;  %v7028_v10 = vld [vmem:[%s334_s15 + $0x10] sm:$0xff]   ;;  %s7567_s28 = smov [#allocation10]  }
  0x8c   : > { %6469 = vmatprep.subr.bf16.mxu0 %v7020_v2  ;;  %6481 = vmatprep.mubr.bf16.mxu0 %v7026_v4  ;;  %v7029_v11 = vld [vmem:[%s334_s15 + $0x18] sm:$0xff]   ;;  %v7038_v49 = vld [vmem:[#allocation2 + $0x20] sm:$0xff]   ;;  %v7041_v52 = vld [vmem:[#allocation2 + $0xc8] sm:$0xff]   ;;  %s5445_s15 = sshll.u32 %s329_s14, 4  ;;  %s7482_s26 = sshll.u32 %s7567_s28, 4  ;;  %s8673_s15 = int_to_ptr.vmem [resolvable:$true] %s5445_s15  ;;  %s7483_s26 = int_to_ptr.vmem [resolvable:$false] %s7482_s26 }
  0x8d   : > { %v7037_v48 = vld [vmem:[#allocation2 + $0x98] sm:$0xff]   ;;  %v7040_v50 = vld [vmem:[#allocation2 + $0xc0] sm:$0xff]   ;;  %v7042_v53 = vld [vmem:[#allocation2 + $0x30] sm:$0xff]   ;;  %s7478_s10 = scalar_lea.vmem %s8673_s15, 16  ;;  %s7484_s13 = scalar_lea.vmem %s7483_s26, 32 }
  0x8e   : > { %v7054_v54 = vld [vmem:[#allocation2 + $0xd0] sm:$0xff]   ;;  %v7043_v55 = vld [vmem:[#allocation2 + $0x38] sm:$0xff]   ;;  %v7044_v57 = vld [vmem:[#allocation2 + $0x40] sm:$0xff]   ;;  %p7479_p2 = scmp.ne.s32.totalorder %s8673_s15, %s7478_s10  ;;  %p7485_p8 = scmp.lt.s32.totalorder %s8673_s15, %s7483_s26 }
  0x8f   : > { %6470 = vmatpush3.bf16.msra.mxu0 %v7020_v2  ;;  %v7056_v56 = vld [vmem:[#allocation2 + $0xd8] sm:$0xff]   ;;  %v7058_v58 = vld [vmem:[#allocation2 + $0x100] sm:$0xff]   ;;  %v7045_v59 = vld [vmem:[#allocation2 + $0x48] sm:$0xff]   ;;  %p7486_p11 = scmp.lt.s32.totalorder %s7484_s13, %s7478_s10 }
  0x90   : > { %6471 = vmatprep.subr.bf16.mxu0 %v7021_v3  ;;  %v7060_v60 = vld [vmem:[#allocation2 + $0x108] sm:$0xff]   ;;  %v7046_v61 = vld [vmem:[#allocation2 + $0x50] sm:$0xff]   ;;  %v7047_v63 = vld [vmem:[#allocation2 + $0x58] sm:$0xff]   ;;  %p7480_p4 = pnand %p7479_p2, %p8745_p3 }
  0x91   : > { %v7062_v62 = vld [vmem:[#allocation2 + $0x110] sm:$0xff]   ;;  %v7064_v0 = vld [vmem:[#allocation2 + $0x118] sm:$0xff]   ;;  %v7048_v1 = vld [vmem:[#allocation2 + $0x60] sm:$0xff]   ;;  %p7487_p13 = por %p7486_p11, %p7485_p8 }
  0x92   : > { %v7049_v2 = vld [vmem:[#allocation2 + $0x68] sm:$0xff]   ;;  %v7051_v4 = vld [vmem:[#allocation2 + $0x78] sm:$0xff]   ;;  %p7481_p7 = pneg %p7480_p4 }
  0x93   : > { %6472 = vmatpush3.bf16.msra.mxu0 %v7021_v3  ;;  %v7050_v3 = vld [vmem:[#allocation2 + $0x70] sm:$0xff]   ;;  %v7065_v12 = vld [vmem:[#allocation2 + $0xf8] sm:$0xff]  }
  0x94   : > { %6473 = vmatprep.subr.bf16.mxu0 %v7022_v5  ;;  %p7488_p0 = pnand %p7487_p13, %p7481_p7 }
  0x97   : > { %6474 = vmatpush3.bf16.msra.mxu0 %v7022_v5  ;;  %v7052_v5 = vld [vmem:[#allocation2 + $0xa0] sm:$0xff]  }
  0x98   : > { %6475 = vmatprep.subr.bf16.mxu0 %v7023_v6 }
  0x9b   : > { %6476 = vmatpush3.bf16.msra.mxu0 %v7023_v6  ;;  %v7053_v6 = vld [vmem:[#allocation2 + $0xa8] sm:$0xff]  }
  0x9c   : > { %6477 = vmatprep.subr.bf16.mxu0 %v7024_v7 }
  0x9f   : > { %6478 = vmatpush3.bf16.msra.mxu0 %v7024_v7  ;;  %v7055_v7 = vld [vmem:[#allocation2 + $0xb0] sm:$0xff]  }
  0xa0   : > { %6479 = vmatprep.subr.bf16.mxu0 %v7025_v8 }
  0xa3   : > { %6480 = vmatpush3.bf16.msra.mxu0 %v7025_v8  ;;  %v7057_v8 = vld [vmem:[#allocation2 + $0xb8] sm:$0xff]  }
  0xa6   : > { %6482 = vmatmul.mubr.bf16.vlgmr.msra.gmra.mrb[0].mxu0 %v7027_v9  ;;  %v7059_v9 = vld [vmem:[#allocation2 + $0xe0] sm:$0xff]  }
  0xa7   : > { %6485 = vmatprep.mubr.bf16.mxu0 %v7028_v10  ;;  %v7061_v10 = vld [vmem:[#allocation2 + $0xe8] sm:$0xff]  }
  0xae   : > { %6486 = vmatmul.mubr.bf16.gmra.mrb[4].mxu0 %v7029_v11  ;;  %v7063_v11 = vld [vmem:[#allocation2 + $0xf0] sm:$0xff]  }
  0xaf   : > { %6561 = vmatprep.mubr.msk.bf16.mxu0 %vm542_vm0, %v7032_v13  ;;  %v7066_v13 = vld [vmem:[%s8714_s1 + $0x40] sm:$0xff]  }
 0x179   : > { %v6483_v15 = vpop.f32.mrb[0].mxu0 }
 0x17a   : > { %v480_v16 = vadd.f32 %v6483_v15, %v5555_v14  ;;  %v471_v17 = vpop.f32.mrb[1].mxu0  ;;  %v7067_v15 = vld [vmem:[%s8714_s1 + $0x48] sm:$0xff]  }
 0x17b   : > { %v472_v18 = vadd.f32 %v5555_v14, %v471_v17  ;;  %v6484_v19 = vpop.f32.mrb[2].mxu0  ;;  %v7069_v17 = vld [vmem:[%s8714_s1 + $0x58] sm:$0xff]  }
 0x17c   : > { %v483_v20 = vadd.f32 %v6484_v19, %v5555_v14  ;;  %v474_v21 = vpop.f32.mrb[3].mxu0  ;;  %v504_v23 = vmax.f32 %v480_v16, 0.0  ;;  %v7068_v16 = vld [vmem:[%s8714_s1 + $0x50] sm:$0xff]   ;;  %v7071_v19 = vld [vmem:[%s8714_s1 + $0x68] sm:$0xff]  }
 0x17d   : > { %v475_v22 = vadd.f32 %v5555_v14, %v474_v21  ;;  %v502_v25 = vmax.f32 %v472_v18, 0.0  ;;  %v7070_v18 = vld [vmem:[%s8714_s1 + $0x60] sm:$0xff]   ;;  %v7073_v21 = vld [vmem:[%s8714_s1 + $0x78] sm:$0xff]  }
 0x17e   : > { %v505_v24 = vmax.f32 %v483_v20, 0.0  ;;  %v7072_v20 = vld [vmem:[%s8714_s1 + $0x70] sm:$0xff]  }
 0x17f   : > { %v503_v26 = vmax.f32 %v475_v22, 0.0  ;;  %v7074_v22 = vld [vmem:[%s8714_s1 + $0x80] sm:$0xff]  }
 0x180   : > { %v7805_v27 = vpack.c.bf16 %v505_v24, %v504_v23  ;;  %v7075_v23 = vld [vmem:[%s8714_s1 + $0x88] sm:$0xff]  }
 0x181   : > { %v7807_v28 = vpack.c.bf16 %v503_v26, %v502_v25  ;;  %v6487_v29 = vpop.f32.mrb[4].mxu0 }
 0x182   : > { %v496_v30 = vadd.f32 %v6487_v29, %v5555_v14  ;;  %v487_v31 = vpop.f32.mrb[5].mxu0 }
 0x183   : > { %v488_v32 = vadd.f32 %v5555_v14, %v487_v31  ;;  %v6488_v33 = vpop.f32.mrb[6].mxu0  ;;  %6489 = vmatprep.subr.bf16.mxu1 %v7807_v28  ;;  %6553 = vmatprep.subr.bf16.mxu0 %v7807_v28 }
 0x184   : > { %v499_v34 = vadd.f32 %v6488_v33, %v5555_v14  ;;  %v490_v35 = vpop.f32.mrb[7].mxu0  ;;  %6490 = vmatpush3.bf16.msra.mxu1 %v7807_v28  ;;  %6554 = vmatpush3.bf16.msra.mxu0 %v7807_v28  ;;  %v508_v37 = vmax.f32 %v496_v30, 0.0  ;;  %v7076_v30 = vld [vmem:[%s8714_s1 + $0x90] sm:$0xff]   ;;  %v7077_v33 = vld [vmem:[%s8714_s1 + $0x98] sm:$0xff]  }
 0x185   : > { %v491_v36 = vadd.f32 %v5555_v14, %v490_v35  ;;  %6491 = vmatprep.subr.bf16.mxu1 %v7805_v27  ;;  %6555 = vmatprep.subr.bf16.mxu0 %v7805_v27  ;;  %v506_v39 = vmax.f32 %v488_v32, 0.0  ;;  %v7564_v14 = vmov 0.0  }
 0x186   : > { %v509_v38 = vmax.f32 %v499_v34, 0.0 }
 0x187   : > { %v507_v40 = vmax.f32 %v491_v36, 0.0 }
 0x188   : > { %v7815_v41 = vpack.c.bf16 %v509_v38, %v508_v37  ;;  %6492 = vmatpush3.bf16.msra.mxu1 %v7805_v27  ;;  %6556 = vmatpush3.bf16.msra.mxu0 %v7805_v27 }
 0x189   : > { %v7819_v42 = vpack.c.bf16 %v507_v40, %v506_v39  ;;  %v7078_v40 = vld [vmem:[%s8714_s1 + $0xa0] sm:$0xff]  }
 0x18b   : > { %6493 = vmatprep.subr.bf16.mxu1 %v7819_v42  ;;  %6557 = vmatprep.subr.bf16.mxu0 %v7819_v42 }
 0x18c   : > { %6494 = vmatpush3.bf16.msra.mxu1 %v7819_v42  ;;  %6558 = vmatpush3.bf16.msra.mxu0 %v7819_v42 }
 0x18d   : > { %6495 = vmatprep.subr.bf16.mxu1 %v7815_v41  ;;  %6559 = vmatprep.subr.bf16.mxu0 %v7815_v41 }
 0x190   : > { %6496 = vmatpush3.bf16.msra.mxu1 %v7815_v41  ;;  %6560 = vmatpush3.bf16.msra.mxu0 %v7815_v41 }
 0x191   : > { %6505 = vmatprep.subr.bf16.mxu1 %v7807_v28  ;;  %6585 = vmatprep.subr.bf16.mxu0 %v7807_v28 }
 0x193   : > { %6498 = vmatmul.mubr.msk.bf16.vlgmr.msra.gmra.mrb[0].mxu1 %vm542_vm0, %v7031_v43  ;;  %6562 = vmatmul.mubr.msk.bf16.vlgmr.msra.gmra.mrb[8].mxu0 %vm542_vm0, %v7033_v44  ;;  %v5576_v43 = vld [vmem:[#allocation5 + $0x10] ss:$0 sm:$0xff]  ;;  %v5585_v44 = vld [vmem:[#allocation5 + $0x11] ss:$0 sm:$0xff] }
 0x194   : > { %6506 = vmatpush3.bf16.msra.mxu1 %v7807_v28  ;;  %6586 = vmatpush3.bf16.msra.mxu0 %v7807_v28 }
 0x195   : > { %6507 = vmatprep.subr.bf16.mxu1 %v7805_v27  ;;  %6587 = vmatprep.subr.bf16.mxu0 %v7805_v27 }
 0x196   : > { %6501 = vmatprep.mubr.msk.bf16.mxu1 %vm542_vm0, %v7034_v45  ;;  %6565 = vmatprep.mubr.msk.bf16.mxu0 %vm542_vm0, %v7036_v46  ;;  %v7079_v45 = vld [vmem:[%s8714_s1 + $0xa8] sm:$0xff]  }
 0x198   : > { %6508 = vmatpush3.bf16.msra.mxu1 %v7805_v27  ;;  %6588 = vmatpush3.bf16.msra.mxu0 %v7805_v27 }
 0x199   : > { %6509 = vmatprep.subr.bf16.mxu1 %v7819_v42  ;;  %6589 = vmatprep.subr.bf16.mxu0 %v7819_v42 }
 0x19b   : > { %6502 = vmatmul.mubr.msk.bf16.gmra.mrb[4].mxu1 %vm542_vm0, %v7035_v47  ;;  %6566 = vmatmul.mubr.msk.bf16.gmra.mrb[12].mxu0 %vm542_vm0, %v7037_v48 }
 0x19c   : > { %6510 = vmatpush3.bf16.msra.mxu1 %v7819_v42  ;;  %6590 = vmatpush3.bf16.msra.mxu0 %v7819_v42 }
 0x19d   : > { %6511 = vmatprep.subr.bf16.mxu1 %v7815_v41  ;;  %6591 = vmatprep.subr.bf16.mxu0 %v7815_v41 }
 0x19e   : > { %6513 = vmatprep.mubr.msk.bf16.mxu1 %vm542_vm0, %v7038_v49  ;;  %6593 = vmatprep.mubr.msk.bf16.mxu0 %vm542_vm0, %v7040_v50 }
 0x1a0   : > { %6512 = vmatpush3.bf16.msra.mxu1 %v7815_v41  ;;  %6592 = vmatpush3.bf16.msra.mxu0 %v7815_v41 }
 0x1a1   : > { %6521 = vmatprep.subr.bf16.mxu1 %v7807_v28  ;;  %6617 = vmatprep.subr.bf16.mxu0 %v7807_v28 }
 0x1a3   : > { %6514 = vmatmul.mubr.msk.bf16.vlgmr.msra.gmra.mrb[8].mxu1 %vm542_vm0, %v7039_v51  ;;  %6594 = vmatmul.mubr.msk.bf16.vlgmr.msra.gmra.mrb[16].mxu0 %vm542_vm0, %v7041_v52 }
 0x1a4   : > { %6522 = vmatpush3.bf16.msra.mxu1 %v7807_v28  ;;  %6618 = vmatpush3.bf16.msra.mxu0 %v7807_v28 }
 0x1a5   : > { %6523 = vmatprep.subr.bf16.mxu1 %v7805_v27  ;;  %6619 = vmatprep.subr.bf16.mxu0 %v7805_v27 }
 0x1a6   : > { %6517 = vmatprep.mubr.msk.bf16.mxu1 %vm542_vm0, %v7042_v53  ;;  %6597 = vmatprep.mubr.msk.bf16.mxu0 %vm542_vm0, %v7054_v54 }
 0x1a8   : > { %6524 = vmatpush3.bf16.msra.mxu1 %v7805_v27  ;;  %6620 = vmatpush3.bf16.msra.mxu0 %v7805_v27 }
 0x1a9   : > { %6525 = vmatprep.subr.bf16.mxu1 %v7819_v42  ;;  %6621 = vmatprep.subr.bf16.mxu0 %v7819_v42 }
 0x1ab   : > { %6518 = vmatmul.mubr.msk.bf16.gmra.mrb[12].mxu1 %vm542_vm0, %v7043_v55  ;;  %6598 = vmatmul.mubr.msk.bf16.gmra.mrb[20].mxu0 %vm542_vm0, %v7056_v56 }
 0x1ac   : > { %6526 = vmatpush3.bf16.msra.mxu1 %v7819_v42  ;;  %6622 = vmatpush3.bf16.msra.mxu0 %v7819_v42 }
 0x1ad   : > { %6527 = vmatprep.subr.bf16.mxu1 %v7815_v41  ;;  %6623 = vmatprep.subr.bf16.mxu0 %v7815_v41 }
 0x1ae   : > { %6529 = vmatprep.mubr.msk.bf16.mxu1 %vm542_vm0, %v7044_v57  ;;  %6625 = vmatprep.mubr.msk.bf16.mxu0 %vm542_vm0, %v7058_v58 }
 0x1b0   : > { %6528 = vmatpush3.bf16.msra.mxu1 %v7815_v41  ;;  %6624 = vmatpush3.bf16.msra.mxu0 %v7815_v41 }
 0x1b1   : > { %6537 = vmatprep.subr.bf16.mxu1 %v7807_v28  ;;  %6653 = vmatprep.subr.bf16.mxu0 %v7564_v14 }
 0x1b3   : > { %6530 = vmatmul.mubr.msk.bf16.vlgmr.msra.gmra.mrb[16].mxu1 %vm542_vm0, %v7045_v59  ;;  %6626 = vmatmul.mubr.msk.bf16.vlgmr.msra.gmra.mrb[24].mxu0 %vm542_vm0, %v7060_v60 }
 0x1b4   : > { %6538 = vmatpush3.bf16.msra.mxu1 %v7807_v28  ;;  %6533 = vmatprep.mubr.msk.bf16.mxu1 %vm542_vm0, %v7046_v61 }
 0x1b5   : > { %6539 = vmatprep.subr.bf16.mxu1 %v7805_v27  ;;  %6629 = vmatprep.mubr.msk.bf16.mxu0 %vm542_vm0, %v7062_v62 }
 0x1b6   : > { %6654 = vmatpush3.bf16.msra.mxu0 %v7074_v22 }
 0x1b7   : > { %6655 = vmatprep.subr.bf16.mxu0 %v7564_v14 }
 0x1b8   : > { %6540 = vmatpush3.bf16.msra.mxu1 %v7805_v27 }
 0x1b9   : > { %6541 = vmatprep.subr.bf16.mxu1 %v7819_v42 }
 0x1ba   : > { %6656 = vmatpush3.bf16.msra.mxu0 %v7075_v23  ;;  %v5594_v23 = vld [vmem:[#allocation5 + $0x12] ss:$0 sm:$0xff] }
 0x1bb   : > { %6534 = vmatmul.mubr.msk.bf16.gmra.mrb[20].mxu1 %vm542_vm0, %v7047_v63  ;;  %6630 = vmatmul.mubr.msk.bf16.gmra.mrb[28].mxu0 %vm542_vm0, %v7064_v0 }
 0x1bc   : > { %6542 = vmatpush3.bf16.msra.mxu1 %v7819_v42  ;;  %6545 = vmatprep.mubr.msk.bf16.mxu1 %vm542_vm0, %v7048_v1 }
 0x1bd   : > { %6543 = vmatprep.subr.bf16.mxu1 %v7815_v41  ;;  %6669 = vmatprep.mubr.msk.bf16.mxu0 %vm7565_vm1, %v7564_v14 }
 0x1be   : > { %6657 = vmatprep.subr.bf16.mxu0 %v7564_v14 }
 0x1bf   : > { %6658 = vmatpush3.bf16.msra.mxu0 %v7076_v30 }
 0x1c0   : > { %6544 = vmatpush3.bf16.msra.mxu1 %v7815_v41  ;;  %6659 = vmatprep.subr.bf16.mxu0 %v7564_v14 }
 0x1c1   : > { %6569 = vmatprep.subr.bf16.mxu1 %v7807_v28 }
 0x1c3   : > { %6546 = vmatmul.mubr.msk.bf16.vlgmr.msra.gmra.mrb[24].mxu1 %vm542_vm0, %v7049_v2  ;;  %6660 = vmatpush3.bf16.msra.mxu0 %v7077_v33 }
 0x1c4   : > { %6570 = vmatpush3.bf16.msra.mxu1 %v7807_v28  ;;  %6549 = vmatprep.mubr.msk.bf16.mxu1 %vm542_vm0, %v7050_v3 }
 0x1c5   : > { %6571 = vmatprep.subr.bf16.mxu1 %v7805_v27  ;;  %6661 = vmatprep.subr.bf16.mxu0 %v7564_v14 }
 0x1c7   : > { %6662 = vmatpush3.bf16.msra.mxu0 %v7078_v40 }
 0x1c8   : > { %6572 = vmatpush3.bf16.msra.mxu1 %v7805_v27  ;;  %6663 = vmatprep.subr.bf16.mxu0 %v7564_v14 }
 0x1c9   : > { %6573 = vmatprep.subr.bf16.mxu1 %v7819_v42 }
 0x1cb   : > { %6550 = vmatmul.mubr.msk.bf16.gmra.mrb[28].mxu1 %vm542_vm0, %v7051_v4  ;;  %6664 = vmatpush3.bf16.msra.mxu0 %v7079_v45 }
 0x1cc   : > { %6574 = vmatpush3.bf16.msra.mxu1 %v7819_v42  ;;  %6577 = vmatprep.mubr.msk.bf16.mxu1 %vm542_vm0, %v7052_v5 }
 0x1cd   : > { %6575 = vmatprep.subr.bf16.mxu1 %v7815_v41  ;;  %6665 = vmatprep.subr.bf16.mxu0 %v7564_v14 }
 0x1d0   : > { %6576 = vmatpush3.bf16.msra.mxu1 %v7815_v41 }
 0x1d1   : > { %6601 = vmatprep.subr.bf16.mxu1 %v7807_v28 }
 0x1d3   : > { %6578 = vmatmul.mubr.msk.bf16.vlgmr.msra.gmra.mrb[32].mxu1 %vm542_vm0, %v7053_v6 }
 0x1d4   : > { %6602 = vmatpush3.bf16.msra.mxu1 %v7807_v28  ;;  %6581 = vmatprep.mubr.msk.bf16.mxu1 %vm542_vm0, %v7055_v7 }
 0x1d5   : > { %6603 = vmatprep.subr.bf16.mxu1 %v7805_v27 }
 0x1d8   : > { %6604 = vmatpush3.bf16.msra.mxu1 %v7805_v27 }
 0x1d9   : > { %6605 = vmatprep.subr.bf16.mxu1 %v7819_v42 }
 0x1db   : > { %6582 = vmatmul.mubr.msk.bf16.gmra.mrb[36].mxu1 %vm542_vm0, %v7057_v8 }
 0x1dc   : > { %6606 = vmatpush3.bf16.msra.mxu1 %v7819_v42  ;;  %6609 = vmatprep.mubr.msk.bf16.mxu1 %vm542_vm0, %v7059_v9 }
 0x1dd   : > { %6607 = vmatprep.subr.bf16.mxu1 %v7815_v41 }
 0x1e0   : > { %6608 = vmatpush3.bf16.msra.mxu1 %v7815_v41 }
 0x1e1   : > { %6633 = vmatprep.subr.bf16.mxu1 %v7564_v14 }
 0x1e3   : > { %6610 = vmatmul.mubr.msk.bf16.vlgmr.msra.gmra.mrb[40].mxu1 %vm542_vm0, %v7061_v10 }
 0x1e4   : > { %6613 = vmatprep.mubr.msk.bf16.mxu1 %vm542_vm0, %v7063_v11  ;;  %6634 = vmatpush3.bf16.msra.mxu1 %v7066_v13 }
 0x1e5   : > { %6635 = vmatprep.subr.bf16.mxu1 %v7564_v14 }
 0x1e8   : > { %6636 = vmatpush3.bf16.msra.mxu1 %v7067_v15 }
 0x1e9   : > { %6637 = vmatprep.subr.bf16.mxu1 %v7564_v14 }
 0x1eb   : > { %6614 = vmatmul.mubr.msk.bf16.gmra.mrb[44].mxu1 %vm542_vm0, %v7065_v12 }
 0x1ec   : > { %6638 = vmatpush3.bf16.msra.mxu1 %v7068_v16  ;;  %6649 = vmatprep.mubr.msk.bf16.mxu1 %vm7565_vm1, %v7564_v14 }
 0x1ed   : > { %6639 = vmatprep.subr.bf16.mxu1 %v7564_v14 }
 0x1f0   : > { %6640 = vmatpush3.bf16.msra.mxu1 %v7069_v17 }
 0x1f1   : > { %6641 = vmatprep.subr.bf16.mxu1 %v7564_v14 }
 0x1f4   : > { %6642 = vmatpush3.bf16.msra.mxu1 %v7070_v18 }
 0x1f5   : > { %6643 = vmatprep.subr.bf16.mxu1 %v7564_v14 }
 0x1f8   : > { %6644 = vmatpush3.bf16.msra.mxu1 %v7071_v19 }
 0x1f9   : > { %6645 = vmatprep.subr.bf16.mxu1 %v7564_v14 }
 0x1fc   : > { %6646 = vmatpush3.bf16.msra.mxu1 %v7072_v20 }
 0x1fd   : > { %6647 = vmatprep.subr.bf16.mxu1 %v7564_v14 }
 0x200   : > { %6648 = vmatpush3.bf16.msra.mxu1 %v7073_v21 }
 0x266   : > { %v6499_v24 = vpop.f32.mrb[0].mxu1  ;;  %v7963_v25 = vpop.f32.mrb[8].mxu0 }
 0x267   : > { %v589_v26 = vpop.f32.mrb[1].mxu1  ;;  %v7965_v27 = vpop.f32.mrb[9].mxu0  ;;  %v627_v48 = vmul.f32 %v6499_v24, %v5576_v43 }
 0x268   : > { %v6500_v28 = vpop.f32.mrb[2].mxu1  ;;  %v7967_v29 = vpop.f32.mrb[10].mxu0  ;;  %v625_v52 = vmul.f32 %v5576_v43, %v589_v26 }
 0x269   : > { %v592_v31 = vpop.f32.mrb[3].mxu1  ;;  %v7972_v32 = vpop.f32.mrb[11].mxu0  ;;  %v628_v56 = vmul.f32 %v6500_v28, %v5576_v43 }
 0x26a   : > { %v626_v61 = vmul.f32 %v5576_v43, %v592_v31 }
 0x26e   : > { %v6503_v34 = vpop.f32.mrb[4].mxu1  ;;  %v7979_v35 = vpop.f32.mrb[12].mxu0 }
 0x26f   : > { %v605_v36 = vpop.f32.mrb[5].mxu1  ;;  %v7981_v37 = vpop.f32.mrb[13].mxu0  ;;  %v631_v4 = vmul.f32 %v6503_v34, %v5576_v43 }
 0x270   : > { %v6504_v38 = vpop.f32.mrb[6].mxu1  ;;  %v7983_v39 = vpop.f32.mrb[14].mxu0  ;;  %v629_v8 = vmul.f32 %v5576_v43, %v605_v36 }
 0x271   : > { %v608_v41 = vpop.f32.mrb[7].mxu1  ;;  %v7988_v42 = vpop.f32.mrb[15].mxu0  ;;  %v632_v12 = vmul.f32 %v6504_v38, %v5576_v43 }
 0x272   : > { %v630_v18 = vmul.f32 %v5576_v43, %v608_v41 }
 0x276   : > { %v6515_v46 = vpop.f32.mrb[8].mxu1  ;;  %v7995_v47 = vpop.f32.mrb[16].mxu0 }
 0x277   : > { %v745_v49 = vmul.f32 %v6515_v46, %v5585_v44  ;;  %v707_v50 = vpop.f32.mrb[9].mxu1  ;;  %v7997_v51 = vpop.f32.mrb[17].mxu0 }
 0x278   : > { %v743_v53 = vmul.f32 %v5585_v44, %v707_v50  ;;  %v6516_v54 = vpop.f32.mrb[10].mxu1  ;;  %v7999_v55 = vpop.f32.mrb[18].mxu0 }
 0x279   : > { %v753_v57 = vadd.f32 %v745_v49, %v627_v48  ;;  %v746_v58 = vmul.f32 %v6516_v54, %v5585_v44  ;;  %v710_v59 = vpop.f32.mrb[11].mxu1  ;;  %v8001_v60 = vpop.f32.mrb[19].mxu0 }
 0x27a   : > { %v751_v62 = vadd.f32 %v743_v53, %v625_v52  ;;  %v744_v63 = vmul.f32 %v5585_v44, %v710_v59 }
 0x27b   : > { %v754_v0 = vadd.f32 %v746_v58, %v628_v56 }
 0x27c   : > { %v752_v1 = vadd.f32 %v744_v63, %v626_v61 }
 0x27e   : > { %v6519_v2 = vpop.f32.mrb[12].mxu1  ;;  %v8004_v3 = vpop.f32.mrb[20].mxu0 }
 0x27f   : > { %v749_v5 = vmul.f32 %v6519_v2, %v5585_v44  ;;  %v723_v6 = vpop.f32.mrb[13].mxu1  ;;  %v8006_v7 = vpop.f32.mrb[21].mxu0 }
 0x280   : > { %v747_v9 = vmul.f32 %v5585_v44, %v723_v6  ;;  %v6520_v10 = vpop.f32.mrb[14].mxu1  ;;  %v8008_v11 = vpop.f32.mrb[22].mxu0  ;;  %v5603_v6 = vld [vmem:[#allocation5 + $0x13] ss:$0 sm:$0xff] }
 0x281   : > { %v757_v13 = vadd.f32 %v749_v5, %v631_v4  ;;  %v750_v15 = vmul.f32 %v6520_v10, %v5585_v44  ;;  %v726_v16 = vpop.f32.mrb[15].mxu1  ;;  %v8010_v17 = vpop.f32.mrb[23].mxu0  ;;  %v5612_v5 = vld [vmem:[#allocation5 + $0x14] ss:$0 sm:$0xff] }
 0x282   : > { %v755_v19 = vadd.f32 %v747_v9, %v629_v8  ;;  %v748_v20 = vmul.f32 %v5585_v44, %v726_v16  ;;  %v1123_v9 = vmul.f32 %v7963_v25, %v5612_v5 }
 0x283   : > { %v758_v21 = vadd.f32 %v750_v15, %v632_v12  ;;  %v1121_v15 = vmul.f32 %v5612_v5, %v7965_v27  ;;  %v1127_v27 = vmul.f32 %v7979_v35, %v5612_v5  ;;  %v5621_v35 = vld [vmem:[#allocation5 + $0x15] ss:$0 sm:$0xff] }
 0x284   : > { %v756_v22 = vadd.f32 %v748_v20, %v630_v18 }
 0x286   : > { %v6531_v24 = vpop.f32.mrb[16].mxu1  ;;  %v8012_v26 = vpop.f32.mrb[24].mxu0 }
 0x287   : > { %v871_v28 = vmul.f32 %v6531_v24, %v5594_v23  ;;  %v833_v30 = vpop.f32.mrb[17].mxu1  ;;  %v8014_v31 = vpop.f32.mrb[25].mxu0 }
 0x288   : > { %v869_v33 = vmul.f32 %v5594_v23, %v833_v30  ;;  %v6532_v34 = vpop.f32.mrb[18].mxu1  ;;  %v8016_v36 = vpop.f32.mrb[26].mxu0 }
 0x289   : > { %v879_v38 = vadd.f32 %v871_v28, %v753_v57  ;;  %v872_v40 = vmul.f32 %v6532_v34, %v5594_v23  ;;  %v836_v45 = vpop.f32.mrb[19].mxu1  ;;  %v8018_v41 = vpop.f32.mrb[27].mxu0 }
 0x28a   : > { %v877_v43 = vadd.f32 %v869_v33, %v751_v62  ;;  %v870_v44 = vmul.f32 %v5594_v23, %v836_v45 }
 0x28b   : > { %v880_v46 = vadd.f32 %v872_v40, %v754_v0 }
 0x28c   : > { %v878_v48 = vadd.f32 %v870_v44, %v752_v1 }
 0x28e   : > { %v6535_v49 = vpop.f32.mrb[20].mxu1  ;;  %v8020_v50 = vpop.f32.mrb[28].mxu0 }
 0x28f   : > { %v875_v52 = vmul.f32 %v6535_v49, %v5594_v23  ;;  %v849_v53 = vpop.f32.mrb[21].mxu1  ;;  %v8022_v54 = vpop.f32.mrb[29].mxu0 }
 0x290   : > { %v873_v56 = vmul.f32 %v5594_v23, %v849_v53  ;;  %v6536_v58 = vpop.f32.mrb[22].mxu1  ;;  %v8024_v59 = vpop.f32.mrb[30].mxu0 }
 0x291   : > { %v883_v57 = vadd.f32 %v875_v52, %v757_v13  ;;  %v876_v61 = vmul.f32 %v6536_v58, %v5594_v23  ;;  %v852_v63 = vpop.f32.mrb[23].mxu1  ;;  %v8026_v2 = vpop.f32.mrb[31].mxu0 }
 0x292   : > { %v881_v62 = vadd.f32 %v873_v56, %v755_v19  ;;  %v874_v4 = vmul.f32 %v5594_v23, %v852_v63  ;;  %v1124_v19 = vmul.f32 %v7967_v29, %v5612_v5  ;;  %v1122_v23 = vmul.f32 %v5612_v5, %v7972_v32 }
 0x293   : > { %v884_v0 = vadd.f32 %v876_v61, %v758_v21  ;;  %v1128_v32 = vmul.f32 %v7983_v39, %v5612_v5  ;;  %v1126_v63 = vmul.f32 %v5612_v5, %v7988_v42 }
 0x294   : > { %v882_v1 = vadd.f32 %v874_v4, %v756_v22 }
 0x296   : > { %v6547_v8 = vpop.f32.mrb[24].mxu1 }
 0x297   : > { %v997_v10 = vmul.f32 %v6547_v8, %v5603_v6  ;;  %v959_v12 = vpop.f32.mrb[25].mxu1  ;;  %v5630_v8 = vld [vmem:[#allocation5 + $0x16] ss:$0 sm:$0xff] }
 0x298   : > { %v995_v16 = vmul.f32 %v5603_v6, %v959_v12  ;;  %v6548_v18 = vpop.f32.mrb[26].mxu1 }
 0x299   : > { %v1005_v13 = vadd.f32 %v997_v10, %v879_v38  ;;  %v998_v20 = vmul.f32 %v6548_v18, %v5603_v6  ;;  %v962_v24 = vpop.f32.mrb[27].mxu1  ;;  %v1125_v38 = vmul.f32 %v5612_v5, %v7981_v37 }
 0x29a   : > { %v1003_v28 = vadd.f32 %v995_v16, %v877_v43  ;;  %v996_v30 = vmul.f32 %v5603_v6, %v962_v24 }
 0x29b   : > { %v1006_v21 = vadd.f32 %v998_v20, %v880_v46  ;;  %v1131_v22 = vadd.f32 %v1123_v9, %v1005_v13 }
 0x29c   : > { %v1004_v33 = vadd.f32 %v996_v30, %v878_v48  ;;  %v1129_v34 = vadd.f32 %v1121_v15, %v1003_v28  ;;  %v1375_v15 = vmul.f32 %v7995_v47, %v5630_v8  ;;  %v1374_v28 = vmul.f32 %v5630_v8, %v8001_v60 }
 0x29d   : > { %v1132_v25 = vadd.f32 %v1124_v19, %v1006_v21  ;;  %v1380_v60 = vmul.f32 %v8008_v11, %v5630_v8 }
 0x29e   : > { %v6551_v40 = vpop.f32.mrb[28].mxu1  ;;  %v1130_v45 = vadd.f32 %v1122_v23, %v1004_v33 }
 0x29f   : > { %v1001_v44 = vmul.f32 %v6551_v40, %v5603_v6  ;;  %v975_v49 = vpop.f32.mrb[29].mxu1 }
 0x2a0   : > { %v999_v52 = vmul.f32 %v5603_v6, %v975_v49  ;;  %v6552_v43 = vpop.f32.mrb[30].mxu1 }
 0x2a1   : > { %v1009_v53 = vadd.f32 %v1001_v44, %v883_v57  ;;  %v1002_v56 = vmul.f32 %v6552_v43, %v5603_v6  ;;  %v978_v29 = vpop.f32.mrb[31].mxu1  ;;  %v1378_v43 = vmul.f32 %v5630_v8, %v8010_v17 }
 0x2a2   : > { %v1007_v46 = vadd.f32 %v999_v52, %v881_v62  ;;  %v1000_v58 = vmul.f32 %v5603_v6, %v978_v29  ;;  %v1373_v62 = vmul.f32 %v5630_v8, %v7997_v51  ;;  %v1379_v51 = vmul.f32 %v8004_v3, %v5630_v8  ;;  %v5639_v3 = vld [vmem:[#allocation5 + $0x17] ss:$0 sm:$0xff] }
 0x2a3   : > { %v1010_v48 = vadd.f32 %v1002_v56, %v884_v0  ;;  %v1135_v61 = vadd.f32 %v1127_v27, %v1009_v53  ;;  %v5648_v56 = vld [vmem:[#allocation5 + $0x18] ss:$0 sm:$0xff] }
 0x2a4   : > { %v1008_v4 = vadd.f32 %v1000_v58, %v882_v1  ;;  %v1133_v9 = vadd.f32 %v1125_v38, %v1007_v46  ;;  %v1376_v1 = vmul.f32 %v7999_v55, %v5630_v8 }
 0x2a5   : > { %v1136_v10 = vadd.f32 %v1128_v32, %v1010_v48  ;;  %v1627_v32 = vmul.f32 %v8012_v26, %v5648_v56 }
 0x2a6   : > { %v6579_v12 = vpop.f32.mrb[32].mxu1  ;;  %v1134_v37 = vadd.f32 %v1126_v63, %v1008_v4  ;;  %v1625_v63 = vmul.f32 %v5648_v56, %v8014_v31 }
 0x2a7   : > { %v1249_v57 = vmul.f32 %v6579_v12, %v5621_v35  ;;  %v1211_v16 = vpop.f32.mrb[33].mxu1 }
 0x2a8   : > { %v1247_v6 = vmul.f32 %v5621_v35, %v1211_v16  ;;  %v6580_v18 = vpop.f32.mrb[34].mxu1 }
 0x2a9   : > { %v1257_v39 = vadd.f32 %v1249_v57, %v1131_v22  ;;  %v1250_v0 = vmul.f32 %v6580_v18, %v5621_v35  ;;  %v1214_v13 = vpop.f32.mrb[35].mxu1  ;;  %v1377_v22 = vmul.f32 %v5630_v8, %v8006_v7 }
 0x2aa   : > { %v1255_v20 = vadd.f32 %v1247_v6, %v1129_v34  ;;  %v1248_v42 = vmul.f32 %v5621_v35, %v1214_v13 }
 0x2ab   : > { %v1258_v5 = vadd.f32 %v1250_v0, %v1132_v25  ;;  %v1383_v24 = vadd.f32 %v1375_v15, %v1257_v39  ;;  %v1628_v15 = vmul.f32 %v8016_v36, %v5648_v56  ;;  %v1631_v0 = vmul.f32 %v8020_v50, %v5648_v56 }
 0x2ac   : > { %v1256_v30 = vadd.f32 %v1248_v42, %v1130_v45  ;;  %v1381_v19 = vadd.f32 %v1373_v62, %v1255_v20  ;;  %v1626_v62 = vmul.f32 %v5648_v56, %v8018_v41  ;;  %v1629_v36 = vmul.f32 %v5648_v56, %v8022_v54 }
 0x2ad   : > { %v1384_v47 = vadd.f32 %v1376_v1, %v1258_v5 }
 0x2ae   : > { %v6583_v21 = vpop.f32.mrb[36].mxu1  ;;  %v1382_v23 = vadd.f32 %v1374_v28, %v1256_v30 }
 0x2af   : > { %v1253_v33 = vmul.f32 %v6583_v21, %v5621_v35  ;;  %v1227_v40 = vpop.f32.mrb[37].mxu1 }
 0x2b0   : > { %v1251_v27 = vmul.f32 %v5621_v35, %v1227_v40  ;;  %v6584_v34 = vpop.f32.mrb[38].mxu1 }
 0x2b1   : > { %v1261_v44 = vadd.f32 %v1253_v33, %v1135_v61  ;;  %v1254_v49 = vmul.f32 %v6584_v34, %v5621_v35  ;;  %v1230_v55 = vpop.f32.mrb[39].mxu1  ;;  %v1632_v33 = vmul.f32 %v8024_v59, %v5648_v56 }
 0x2b2   : > { %v1259_v25 = vadd.f32 %v1251_v27, %v1133_v9  ;;  %v1252_v38 = vmul.f32 %v5621_v35, %v1230_v55 }
 0x2b3   : > { %v1262_v45 = vadd.f32 %v1254_v49, %v1136_v10  ;;  %v1387_v52 = vadd.f32 %v1379_v51, %v1261_v44 }
 0x2b4   : > { %v1260_v53 = vadd.f32 %v1252_v38, %v1134_v37  ;;  %v1385_v29 = vadd.f32 %v1377_v22, %v1259_v25  ;;  %v5649_v37 = vld [vmem:[#allocation5 + $0x1] ss:$0 sm:$0xff]  ;;  %v1630_v22 = vmul.f32 %v5648_v56, %v8026_v2 }
 0x2b5   : > { %v1388_v46 = vadd.f32 %v1380_v60, %v1262_v45 }
 0x2b6   : > { %v6611_v58 = vpop.f32.mrb[40].mxu1  ;;  %v1386_v7 = vadd.f32 %v1378_v43, %v1260_v53 }
 0x2b7   : > { %v1501_v48 = vmul.f32 %v6611_v58, %v5639_v3  ;;  %v1463_v61 = vpop.f32.mrb[41].mxu1 }
 0x2b8   : > { %v1499_v4 = vmul.f32 %v5639_v3, %v1463_v61  ;;  %v6612_v35 = vpop.f32.mrb[42].mxu1 }
 0x2b9   : > { %v1509_v11 = vadd.f32 %v1501_v48, %v1383_v24  ;;  %v1502_v9 = vmul.f32 %v6612_v35, %v5639_v3  ;;  %v1466_v10 = vpop.f32.mrb[43].mxu1 }
 0x2ba   : > { %v1507_v12 = vadd.f32 %v1499_v4, %v1381_v19  ;;  %v1500_v17 = vmul.f32 %v5639_v3, %v1466_v10  ;;  %v7080_v10 = vld [vmem:[%s8714_s1 + $0xb0] sm:$0xff]  }
 0x2bb   : > { %v1635_v8 = vadd.f32 %v1627_v32, %v1509_v11  ;;  %v1510_v57 = vadd.f32 %v1502_v9, %v1384_v47  ;;  %6666 = vmatpush3.bf16.msra.mxu0 %v7080_v10 }
 0x2bc   : > { %v1633_v16 = vadd.f32 %v1625_v63, %v1507_v12  ;;  %v1508_v26 = vadd.f32 %v1500_v17, %v1382_v23  ;;  %6667 = vmatprep.subr.bf16.mxu0 %v7564_v14  ;;  %v7081_v12 = vld [vmem:[%s8714_s1 + $0xb8] sm:$0xff]   ;;  %v5682_v17 = vld [vmem:[#allocation5 + $0x2] ss:$0 sm:$0xff] }
 0x2bd   : > { %v1636_v6 = vadd.f32 %v1628_v15, %v1510_v57  ;;  %v8051_v42 = vadd.f32 %v5649_v37, %v1635_v8 }
 0x2be   : > { %v8048_v18 = vadd.f32 %v5649_v37, %v1633_v16  ;;  %v1634_v31 = vadd.f32 %v1626_v62, %v1508_v26  ;;  %v6615_v39 = vpop.f32.mrb[44].mxu1 }
 0x2bf   : > { %v1505_v13 = vmul.f32 %v6615_v39, %v5639_v3  ;;  %v1479_v20 = vpop.f32.mrb[45].mxu1  ;;  %v8056_v28 = vadd.f32 %v5649_v37, %v1636_v6  ;;  %v1656_v54 = vmax.f32 %v8051_v42, 0.0  ;;  %6668 = vmatpush3.bf16.msra.mxu0 %v7081_v12  ;;  %v7082_v6 = vld [vmem:[%s8714_s1 + $0xc0] sm:$0xff]   ;;  %v7084_v39 = vld [vmem:[%s8714_s1 + $0xd0] sm:$0xff]  }
 0x2c0   : > { %v8053_v1 = vadd.f32 %v5649_v37, %v1634_v31  ;;  %v1503_v5 = vmul.f32 %v5639_v3, %v1479_v20  ;;  %v6616_v24 = vpop.f32.mrb[46].mxu1  ;;  %v1654_v47 = vmax.f32 %v8048_v18, 0.0  ;;  %6673 = vmatprep.subr.bf16.mxu1 %v7082_v6  ;;  %v7083_v31 = vld [vmem:[%s8714_s1 + $0xc8] sm:$0xff]  }
 0x2c1   : > { %v1513_v41 = vadd.f32 %v1505_v13, %v1387_v52  ;;  %v1506_v30 = vmul.f32 %v6616_v24, %v5639_v3  ;;  %v1482_v19 = vpop.f32.mrb[47].mxu1  ;;  %v1657_v55 = vmax.f32 %v8056_v28, 0.0  ;;  %v7086_v13 = vld [vmem:[%s8714_s1 + $0xe0] sm:$0xff]   ;;  %v7087_v20 = vld [vmem:[%s8714_s1 + $0xe8] sm:$0xff]  }
 0x2c2   : > { %v1655_v21 = vmax.f32 %v8053_v1, 0.0  ;;  %v1511_v50 = vadd.f32 %v1503_v5, %v1385_v29  ;;  %v1504_v23 = vmul.f32 %v5639_v3, %v1482_v19  ;;  %v7089_v5 = vld [vmem:[%s8714_s1 + $0xf8] sm:$0xff]   ;;  %v7090_v24 = vld [vmem:[%s8714_s1 + $0x100] sm:$0xff]  }
 0x2c3   : > { %v1639_v51 = vadd.f32 %v1631_v0, %v1513_v41  ;;  %v1514_v40 = vadd.f32 %v1506_v30, %v1388_v46  ;;  %v7085_v0 = vld [vmem:[%s8714_s1 + $0xd8] sm:$0xff]   ;;  %v7091_v41 = vld [vmem:[%s8714_s1 + $0x108] sm:$0xff]   ;;  %6697 = vmatprep.subr.bf16.mxu0 %v7090_v24  ;;  %v7092_v30 = vld [vmem:[%s8714_s1 + $0x110] sm:$0xff]  }
 0x2c4   : > { %v1698_v27 = vadd.f32 %v1655_v21, %v1654_v47  ;;  %v1637_v34 = vadd.f32 %v1629_v36, %v1511_v50  ;;  %v1512_v44 = vadd.f32 %v1504_v23, %v1386_v7  ;;  %v7088_v36 = vld [vmem:[%s8714_s1 + $0xf0] sm:$0xff]   ;;  %v7093_v19 = vld [vmem:[%s8714_s1 + $0x118] sm:$0xff]   ;;  %v7094_v50 = vld [vmem:[%s8714_s1 + $0x120] sm:$0xff]  }
 0x2c5   : > { %v1640_v49 = vadd.f32 %v1632_v33, %v1514_v40  ;;  %v8072_v60 = vadd.f32 %v5649_v37, %v1639_v51  ;;  %v7095_v23 = vld [vmem:[%s8714_s1 + $0x128] sm:$0xff]   ;;  %v5691_v51 = vld [vmem:[#allocation5 + $0x3] ss:$0 sm:$0xff] }
 0x2c6   : > { %v1699_v25 = vadd.f32 %v1698_v27, %v1656_v54  ;;  %v8070_v38 = vadd.f32 %v5649_v37, %v1637_v34  ;;  %v1638_v59 = vadd.f32 %v1630_v22, %v1512_v44 }
 0x2c7   : > { %v8081_v53 = vadd.f32 %v5649_v37, %v1640_v49  ;;  %v1660_v3 = vmax.f32 %v8072_v60, 0.0 }
 0x2c8   : > { %v1658_v2 = vmax.f32 %v8070_v38, 0.0  ;;  %v1700_v45 = vadd.f32 %v1699_v25, %v1657_v55  ;;  %v8077_v52 = vadd.f32 %v5649_v37, %v1638_v59  ;;  %v1906_v59 = vlaneseq  ;;  %v5717_v38 = vld [vmem:[#allocation5 + $0x4] ss:$0 sm:$0xff] }
 0x2c9   : > { %v1661_v46 = vmax.f32 %v8081_v53, 0.0 }
 0x2ca   : > { %v1701_v43 = vadd.f32 %v1700_v45, %v1658_v2  ;;  %v1659_v56 = vmax.f32 %v8077_v52, 0.0  ;;  %v8141_v45 = vshrl.u32 %v1906_v59, 7 }
 0x2cc   : > { %v1702_v29 = vadd.f32 %v1701_v43, %v1659_v56  ;;  %v8144_v43 = vsub.s32 0, %v8141_v45 }
 0x2ce   : > { %v1703_v58 = vadd.f32 %v1702_v29, %v1660_v3 }
 0x2d0   : > { %v1704_v7 = vadd.f32 %v1703_v58, %v1661_v46 }
 0x2d2   : > { %v1705_v32 = vrot.slane %v1704_v7, 4 }
 0x2d4   : > { %v1706_v48 = vadd.f32 %v1705_v32, %v1704_v7 }
 0x2d6   : > { %v1707_v61 = vrot.slane %v1706_v48, 2 }
 0x2d8   : > { %v1708_v63 = vadd.f32 %v1707_v61, %v1706_v48 }
 0x2da   : > { %v1709_v4 = vrot.slane %v1708_v63, 1 }
 0x2dc   : > { %v1710_v35 = vadd.f32 %v1709_v4, %v1708_v63 }
 0x2de   : > { %v1712_v11 = vmul.f32 0.015625, %v1710_v35 }
 0x2e0   : > { %v1713_v9 = vpack.c.bf16 %v1712_v11, %v1712_v11 }
 0x2e2   : > { %6650 = vmatmul.mubr.bf16.vlgmr.msra.gmra.mrb[48].mxu1 %v1713_v9 }
 0x2e3   : > { %6674 = vmatpush3.bf16.msra.mxu1 %v7082_v6 }
 0x2e4   : > { %6675 = vmatprep.subr.bf16.mxu1 %v7083_v31 }
 0x2e7   : > { %6676 = vmatpush3.bf16.msra.mxu1 %v7083_v31  ;;  %v7331_v31 = vld [vmem:[#allocation2 + $0x20] sm:$0xff]  }
 0x2e8   : > { %6677 = vmatprep.subr.bf16.mxu1 %v7084_v39 }
 0x2eb   : > { %6678 = vmatpush3.bf16.msra.mxu1 %v7084_v39  ;;  %v5742_v39 = vld [vmem:[#allocation5 + $0x5] ss:$0 sm:$0xff] }
 0x2ec   : > { %6679 = vmatprep.subr.bf16.mxu1 %v7085_v0 }
 0x2ef   : > { %6680 = vmatpush3.bf16.msra.mxu1 %v7085_v0 }
 0x2f0   : > { %6681 = vmatprep.subr.bf16.mxu1 %v7086_v13 }
 0x2f3   : > { %6682 = vmatpush3.bf16.msra.mxu1 %v7086_v13 }
 0x2f4   : > { %6683 = vmatprep.subr.bf16.mxu1 %v7087_v20 }
 0x2f7   : > { %6684 = vmatpush3.bf16.msra.mxu1 %v7087_v20 }
 0x2f8   : > { %6685 = vmatprep.subr.bf16.mxu1 %v7088_v36 }
 0x2fb   : > { %6686 = vmatpush3.bf16.msra.mxu1 %v7088_v36 }
 0x2fc   : > { %6687 = vmatprep.subr.bf16.mxu1 %v7089_v5 }
 0x2ff   : > { %6688 = vmatpush3.bf16.msra.mxu1 %v7089_v5 }
 0x3b5   : > { %v1800_v8 = vpop.f32.mrb[48].mxu1 }
 0x3b6   : > { %v1801_v37 = vadd.f32 %v5682_v17, %v1800_v8  ;;  %v6651_v15 = vpop.f32.mrb[49].mxu1 }
 0x3b7   : > { %v1803_v57 = vpop.f32.mrb[50].mxu1 }
 0x3b8   : > { %v1806_v16 = vmax.f32 %v1801_v37, 0.0  ;;  %v6652_v62 = vpop.f32.mrb[51].mxu1 }
 0x3ba   : > { %v1807_v26 = vpack.c.bf16 %v1806_v16, %v1806_v16 }
 0x3bc   : > { %6670 = vmatmul.mubr.bf16.vlgmr.msra.gmra.mrb[32].mxu0 %v1807_v26 }
 0x3bd   : > { %6698 = vmatpush3.bf16.msra.mxu0 %v7090_v24 }
 0x3be   : > { %6699 = vmatprep.subr.bf16.mxu0 %v7091_v41 }
 0x3c1   : > { %6700 = vmatpush3.bf16.msra.mxu0 %v7091_v41 }
 0x3c2   : > { %6701 = vmatprep.subr.bf16.mxu0 %v7092_v30 }
 0x3c5   : > { %6702 = vmatpush3.bf16.msra.mxu0 %v7092_v30 }
 0x3c6   : > { %6703 = vmatprep.subr.bf16.mxu0 %v7093_v19 }
 0x3c9   : > { %6704 = vmatpush3.bf16.msra.mxu0 %v7093_v19 }
 0x3ca   : > { %6705 = vmatprep.subr.bf16.mxu0 %v7094_v50 }
 0x3cd   : > { %6706 = vmatpush3.bf16.msra.mxu0 %v7094_v50 }
 0x3ce   : > { %6707 = vmatprep.subr.bf16.mxu0 %v7095_v23 }
 0x3d1   : > { %6708 = vmatpush3.bf16.msra.mxu0 %v7095_v23 }
 0x48f   : > { %v1894_v33 = vpop.f32.mrb[32].mxu0 }
 0x490   : > { %v1895_v40 = vadd.f32 %v5691_v51, %v1894_v33  ;;  %v6671_v22 = vpop.f32.mrb[33].mxu0 }
 0x491   : > { %v1897_v27 = vpop.f32.mrb[34].mxu0 }
 0x492   : > { %v5700_v34 = vmul.f32 -1.442695, %v1895_v40  ;;  %v6672_v44 = vpop.f32.mrb[35].mxu0 }
 0x494   : > { %7322 = vpow2.f32 %v5700_v34 }
 0x49e   : > { %v7323_v49 = vpop.eup %7322 }
 0x49f   : > { %v1903_v25 = vadd.f32 1.0, %v7323_v49 }
 0x4a1   : > { %7324 = vrcp.f32 %v1903_v25 }
 0x4ab   : > { %v7325_v29 = vpop.eup %7324 }
 0x4ac   : > { %v1909_v58 = vrot.slane %v7325_v29, %v8144_v43 }
 0x4ae   : > { %v1910_v7 = vmul.f32 %v1909_v58, %v1654_v47  ;;  %v1911_v32 = vmul.f32 %v1909_v58, %v1655_v21  ;;  %v1912_v48 = vmul.f32 %v1909_v58, %v1656_v54  ;;  %v1913_v61 = vmul.f32 %v1909_v58, %v1657_v55  ;;  %v7330_v47 = vld [vmem:[#allocation2] sm:$0xff]   ;;  %v7096_v21 = vld [vmem:[%s8714_s1 + $0x130] sm:$0xff]   ;;  %v7097_v54 = vld [vmem:[%s8714_s1 + $0x138] sm:$0xff]  }
 0x4af   : > { %v1914_v63 = vmul.f32 %v1909_v58, %v1658_v2  ;;  %v1915_v4 = vmul.f32 %v1909_v58, %v1659_v56  ;;  %v1916_v1 = vmul.f32 %v1909_v58, %v1660_v3  ;;  %v1917_v42 = vmul.f32 %v1909_v58, %v1661_v46  ;;  %6709 = vmatprep.subr.bf16.mxu0 %v7096_v21 }
 0x4b0   : > { %v1918_v35 = vpack.c.bf16 %v1911_v32, %v1910_v7  ;;  %v1919_v11 = vpack.c.bf16 %v1913_v61, %v1912_v48  ;;  %6710 = vmatpush3.bf16.msra.mxu0 %v7096_v21  ;;  %v7340_v21 = vld [vmem:[#allocation2 + $0x48] sm:$0xff]  }
 0x4b1   : > { %v1920_v18 = vpack.c.bf16 %v1915_v4, %v1914_v63  ;;  %v1921_v28 = vpack.c.bf16 %v1917_v42, %v1916_v1  ;;  %6711 = vmatprep.subr.bf16.mxu0 %v7097_v54  ;;  %v7332_v4 = vld [vmem:[#allocation2 + $0x8] sm:$0xff]   ;;  %v7336_v1 = vld [vmem:[#allocation2 + $0x18] sm:$0xff]  }
 0x4b2   : > { %6689 = vmatprep.mubr.bf16.mxu1 %v1918_v35  ;;  %v7333_v35 = vld [vmem:[#allocation2 + $0x28] sm:$0xff]   ;;  %v7337_v42 = vld [vmem:[#allocation2 + $0x38] sm:$0xff]  }
 0x4b3   : > { %6690 = vmatmul.mubr.bf16.vlgmr.msra.gmra.mrb[52].mxu1 %v1919_v11  ;;  %v7334_v11 = vld [vmem:[#allocation2 + $0x10] sm:$0xff]  }
 0x4b4   : > { %6693 = vmatprep.mubr.bf16.mxu1 %v1920_v18  ;;  %6712 = vmatpush3.bf16.msra.mxu0 %v7097_v54  ;;  %v7335_v18 = vld [vmem:[#allocation2 + $0x30] sm:$0xff]   ;;  %v7341_v54 = vld [vmem:[#allocation2 + $0x68] sm:$0xff]  }
 0x4bb   : > { %6694 = vmatmul.mubr.bf16.gmra.mrb[56].mxu1 %v1921_v28  ;;  %v7338_v28 = vld [vmem:[#allocation2 + $0x40] sm:$0xff]  }
 0x4bc   : > { %6729 = vmatprep.mubr.msk.bf16.mxu1 %vm542_vm0, %v7330_v47  ;;  %v7339_v47 = vld [vmem:[#allocation2 + $0x60] sm:$0xff]  }
 0x586   : > { %v6691_v55 = vpop.f32.mrb[52].mxu1 }
 0x587   : > { %v2026_v60 = vpop.f32.mrb[53].mxu1  ;;  %v8176_v46 = vadd.f32 %v6691_v55, %v5717_v38  ;;  %v7342_v55 = vld [vmem:[#allocation2 + $0x50] sm:$0xff]  }
 0x588   : > { %v6692_v2 = vpop.f32.mrb[54].mxu1  ;;  %v8172_v56 = vadd.f32 %v5717_v38, %v2026_v60  ;;  %v7344_v60 = vld [vmem:[#allocation2 + $0x58] sm:$0xff]  }
 0x589   : > { %v8170_v52 = vadd.f32 %v6692_v2, %v5717_v38  ;;  %v2029_v53 = vpop.f32.mrb[55].mxu1  ;;  %v7345_v2 = vld [vmem:[#allocation2 + $0x78] sm:$0xff]  }
 0x58a   : > { %v8174_v3 = vadd.f32 %v5717_v38, %v2029_v53  ;;  %v7346_v53 = vld [vmem:[#allocation2 + $0x80] sm:$0xff]  }
 0x58b   : > { %v2058_v10 = vpack.c.bf16 %v8170_v52, %v8176_v46 }
 0x58c   : > { %v2057_v9 = vpack.c.bf16 %v8174_v3, %v8172_v56 }
 0x58e   : > { %v6695_v12 = vpop.f32.mrb[56].mxu1  ;;  %6713 = vmatprep.mubr.bf16.mxu0 %v2057_v9  ;;  %v7347_v9 = vld [vmem:[#allocation2 + $0xa0] sm:$0xff]  }
 0x58f   : > { %v2042_v17 = vpop.f32.mrb[57].mxu1  ;;  %6714 = vmatmul.mubr.bf16.vlgmr.msra.gmra.mrb[36].mxu0 %v2058_v10  ;;  %v8188_v62 = vadd.f32 %v6695_v12, %v5717_v38  ;;  %v7348_v10 = vld [vmem:[#allocation2 + $0x88] sm:$0xff]  }
 0x590   : > { %v6696_v8 = vpop.f32.mrb[58].mxu1  ;;  %v8184_v57 = vadd.f32 %v5717_v38, %v2042_v17  ;;  %v7349_v12 = vld [vmem:[#allocation2 + $0xa8] sm:$0xff]   ;;  %v7350_v17 = vld [vmem:[#allocation2 + $0x90] sm:$0xff]  }
 0x591   : > { %v8182_v37 = vadd.f32 %v6696_v8, %v5717_v38  ;;  %v2045_v15 = vpop.f32.mrb[59].mxu1  ;;  %v7351_v8 = vld [vmem:[#allocation2 + $0xb0] sm:$0xff]  }
 0x592   : > { %v8186_v16 = vadd.f32 %v5717_v38, %v2045_v15  ;;  %v7343_v38 = vld [vmem:[#allocation2 + $0x70] sm:$0xff]   ;;  %v7352_v15 = vld [vmem:[#allocation2 + $0x98] sm:$0xff]  }
 0x593   : > { %v2060_v6 = vpack.c.bf16 %v8182_v37, %v8188_v62 }
 0x594   : > { %v2059_v26 = vpack.c.bf16 %v8186_v16, %v8184_v57 }
 0x596   : > { %6717 = vmatprep.mubr.bf16.mxu0 %v2059_v26  ;;  %v7353_v26 = vld [vmem:[#allocation2 + $0xb8] sm:$0xff]  }
 0x597   : > { %6718 = vmatmul.mubr.bf16.gmra.mrb[40].mxu0 %v2060_v6  ;;  %v7354_v6 = vld [vmem:[#allocation2 + $0xc0] sm:$0xff]  }
 0x598   : > { %6745 = vmatprep.mubr.msk.bf16.mxu0 %vm542_vm0, %v7331_v31  ;;  %v7355_v31 = vld [vmem:[#allocation2 + $0xe0] sm:$0xff]  }
 0x662   : > { %v6715_v0 = vpop.f32.mrb[36].mxu0 }
 0x663   : > { %v2174_v13 = vadd.f32 %v6715_v0, %v5742_v39  ;;  %v2165_v20 = vpop.f32.mrb[37].mxu0  ;;  %v7357_v0 = vld [vmem:[#allocation2 + $0xe8] sm:$0xff]  }
 0x664   : > { %v2166_v36 = vadd.f32 %v5742_v39, %v2165_v20  ;;  %v6716_v5 = vpop.f32.mrb[38].mxu0  ;;  %v7359_v20 = vld [vmem:[#allocation2 + $0xf0] sm:$0xff]  }
 0x665   : > { %v2177_v24 = vadd.f32 %v6716_v5, %v5742_v39  ;;  %v2168_v41 = vpop.f32.mrb[39].mxu0  ;;  %v2198_v19 = vmax.f32 %v2174_v13, 0.0  ;;  %v7358_v13 = vld [vmem:[#allocation2 + $0xd0] sm:$0xff]   ;;  %v7361_v5 = vld [vmem:[#allocation2 + $0xf8] sm:$0xff]  }
 0x666   : > { %v2169_v30 = vadd.f32 %v5742_v39, %v2168_v41  ;;  %v2196_v23 = vmax.f32 %v2166_v36, 0.0  ;;  %v7360_v36 = vld [vmem:[#allocation2 + $0xd8] sm:$0xff]   ;;  %v7363_v41 = vld [vmem:[#allocation2 + $0x108] sm:$0xff]  }
 0x667   : > { %v2199_v50 = vmax.f32 %v2177_v24, 0.0  ;;  %v7362_v24 = vld [vmem:[#allocation2 + $0x100] sm:$0xff]  }
 0x668   : > { %v2197_v51 = vmax.f32 %v2169_v30, 0.0  ;;  %v7364_v30 = vld [vmem:[#allocation2 + $0x110] sm:$0xff]  }
 0x669   : > { %v8195_v33 = vpack.c.bf16 %v2199_v50, %v2198_v19  ;;  %v7365_v19 = vld [vmem:[#allocation2 + $0x118] sm:$0xff]   ;;  %v7098_v50 = vld [vmem:[%s8714_s1 + $0x140] sm:$0xff]  }
 0x66a   : > { %v8197_v40 = vpack.c.bf16 %v2197_v51, %v2196_v23  ;;  %v6719_v22 = vpop.f32.mrb[40].mxu0  ;;  %v7099_v23 = vld [vmem:[%s8714_s1 + $0x148] sm:$0xff]   ;;  %v7100_v51 = vld [vmem:[%s8714_s1 + $0x150] sm:$0xff]  }
 0x66b   : > { %v2190_v27 = vadd.f32 %v6719_v22, %v5742_v39  ;;  %v2181_v34 = vpop.f32.mrb[41].mxu0  ;;  %v7103_v22 = vld [vmem:[%s8714_s1 + $0x168] sm:$0xff]  }
 0x66c   : > { %v2182_v44 = vadd.f32 %v5742_v39, %v2181_v34  ;;  %v6720_v49 = vpop.f32.mrb[42].mxu0  ;;  %6721 = vmatprep.subr.bf16.mxu1 %v8197_v40  ;;  %6737 = vmatprep.subr.bf16.mxu0 %v8197_v40  ;;  %v7105_v34 = vld [vmem:[%s8714_s1 + $0x178] sm:$0xff]  }
 0x66d   : > { %v2193_v25 = vadd.f32 %v6720_v49, %v5742_v39  ;;  %v2184_v59 = vpop.f32.mrb[43].mxu0  ;;  %6722 = vmatpush3.bf16.msra.mxu1 %v8197_v40  ;;  %6738 = vmatpush3.bf16.msra.mxu0 %v8197_v40  ;;  %v2202_v58 = vmax.f32 %v2190_v27, 0.0  ;;  %v7104_v27 = vld [vmem:[%s8714_s1 + $0x170] sm:$0xff]   ;;  %v7107_v49 = vld [vmem:[%s8714_s1 + $0x188] sm:$0xff]  }
 0x66e   : > { %v2185_v29 = vadd.f32 %v5742_v39, %v2184_v59  ;;  %6723 = vmatprep.subr.bf16.mxu1 %v8195_v33  ;;  %6739 = vmatprep.subr.bf16.mxu0 %v8195_v33  ;;  %v2200_v32 = vmax.f32 %v2182_v44, 0.0  ;;  %v7356_v39 = vld [vmem:[#allocation2 + $0xc8] sm:$0xff]   ;;  %v7106_v44 = vld [vmem:[%s8714_s1 + $0x180] sm:$0xff]   ;;  %v7109_v59 = vld [vmem:[%s8714_s1 + $0x198] sm:$0xff]  }
 0x66f   : > { %v2203_v7 = vmax.f32 %v2193_v25, 0.0  ;;  %v7108_v25 = vld [vmem:[%s8714_s1 + $0x190] sm:$0xff]  }
 0x670   : > { %v2201_v48 = vmax.f32 %v2185_v29, 0.0  ;;  %v7110_v29 = vld [vmem:[%s8714_s1 + $0x1a0] sm:$0xff]  }
 0x671   : > { %v8205_v61 = vpack.c.bf16 %v2203_v7, %v2202_v58  ;;  %6724 = vmatpush3.bf16.msra.mxu1 %v8195_v33  ;;  %6740 = vmatpush3.bf16.msra.mxu0 %v8195_v33  ;;  %v7111_v58 = vld [vmem:[%s8714_s1 + $0x1a8] sm:$0xff]   ;;  %v5755_v7 = vld [vmem:[#allocation5 + $0x20] ss:$0 sm:$0xff] }
 0x672   : > { %v8209_v63 = vpack.c.bf16 %v2201_v48, %v2200_v32  ;;  %v5760_v32 = vld [vmem:[#allocation5 + $0x21] ss:$0 sm:$0xff] }
 0x674   : > { %6725 = vmatprep.subr.bf16.mxu1 %v8209_v63  ;;  %6741 = vmatprep.subr.bf16.mxu0 %v8209_v63 }
 0x675   : > { %6726 = vmatpush3.bf16.msra.mxu1 %v8209_v63  ;;  %6742 = vmatpush3.bf16.msra.mxu0 %v8209_v63 }
 0x676   : > { %6727 = vmatprep.subr.bf16.mxu1 %v8205_v61  ;;  %6743 = vmatprep.subr.bf16.mxu0 %v8205_v61 }
 0x679   : > { %6728 = vmatpush3.bf16.msra.mxu1 %v8205_v61  ;;  %6744 = vmatpush3.bf16.msra.mxu0 %v8205_v61 }
 0x67a   : > { %6753 = vmatprep.subr.bf16.mxu1 %v8197_v40  ;;  %6769 = vmatprep.subr.bf16.mxu0 %v8197_v40 }
 0x67c   : > { %6730 = vmatmul.mubr.msk.bf16.vlgmr.msra.gmra.mrb[60].mxu1 %vm542_vm0, %v7332_v4  ;;  %6746 = vmatmul.mubr.msk.bf16.vlgmr.msra.gmra.mrb[44].mxu0 %vm542_vm0, %v7333_v35 }
 0x67d   : > { %6754 = vmatpush3.bf16.msra.mxu1 %v8197_v40  ;;  %6770 = vmatpush3.bf16.msra.mxu0 %v8197_v40 }
 0x67e   : > { %6755 = vmatprep.subr.bf16.mxu1 %v8195_v33  ;;  %6771 = vmatprep.subr.bf16.mxu0 %v8195_v33 }
 0x67f   : > { %6733 = vmatprep.mubr.msk.bf16.mxu1 %vm542_vm0, %v7334_v11  ;;  %6749 = vmatprep.mubr.msk.bf16.mxu0 %vm542_vm0, %v7335_v18 }
 0x681   : > { %6756 = vmatpush3.bf16.msra.mxu1 %v8195_v33  ;;  %6772 = vmatpush3.bf16.msra.mxu0 %v8195_v33 }
 0x682   : > { %6757 = vmatprep.subr.bf16.mxu1 %v8209_v63  ;;  %6773 = vmatprep.subr.bf16.mxu0 %v8209_v63 }
 0x684   : > { %6734 = vmatmul.mubr.msk.bf16.gmra.mrb[64].mxu1 %vm542_vm0, %v7336_v1  ;;  %6750 = vmatmul.mubr.msk.bf16.gmra.mrb[48].mxu0 %vm542_vm0, %v7337_v42 }
 0x685   : > { %6758 = vmatpush3.bf16.msra.mxu1 %v8209_v63  ;;  %6774 = vmatpush3.bf16.msra.mxu0 %v8209_v63 }
 0x686   : > { %6759 = vmatprep.subr.bf16.mxu1 %v8205_v61  ;;  %6775 = vmatprep.subr.bf16.mxu0 %v8205_v61 }
 0x687   : > { %6761 = vmatprep.mubr.msk.bf16.mxu1 %vm542_vm0, %v7338_v28  ;;  %6777 = vmatprep.mubr.msk.bf16.mxu0 %vm542_vm0, %v7339_v47 }
 0x689   : > { %6760 = vmatpush3.bf16.msra.mxu1 %v8205_v61  ;;  %6776 = vmatpush3.bf16.msra.mxu0 %v8205_v61 }
 0x68a   : > { %6785 = vmatprep.subr.bf16.mxu1 %v8197_v40  ;;  %6801 = vmatprep.subr.bf16.mxu0 %v8197_v40 }
 0x68c   : > { %6762 = vmatmul.mubr.msk.bf16.vlgmr.msra.gmra.mrb[68].mxu1 %vm542_vm0, %v7340_v21  ;;  %6778 = vmatmul.mubr.msk.bf16.vlgmr.msra.gmra.mrb[52].mxu0 %vm542_vm0, %v7341_v54 }
 0x68d   : > { %6786 = vmatpush3.bf16.msra.mxu1 %v8197_v40  ;;  %6802 = vmatpush3.bf16.msra.mxu0 %v8197_v40 }
 0x68e   : > { %6787 = vmatprep.subr.bf16.mxu1 %v8195_v33  ;;  %6803 = vmatprep.subr.bf16.mxu0 %v8195_v33 }
 0x68f   : > { %6765 = vmatprep.mubr.msk.bf16.mxu1 %vm542_vm0, %v7342_v55  ;;  %6781 = vmatprep.mubr.msk.bf16.mxu0 %vm542_vm0, %v7343_v38 }
 0x691   : > { %6788 = vmatpush3.bf16.msra.mxu1 %v8195_v33  ;;  %6804 = vmatpush3.bf16.msra.mxu0 %v8195_v33 }
 0x692   : > { %6789 = vmatprep.subr.bf16.mxu1 %v8209_v63  ;;  %6805 = vmatprep.subr.bf16.mxu0 %v8209_v63 }
 0x694   : > { %6766 = vmatmul.mubr.msk.bf16.gmra.mrb[72].mxu1 %vm542_vm0, %v7344_v60  ;;  %6782 = vmatmul.mubr.msk.bf16.gmra.mrb[56].mxu0 %vm542_vm0, %v7345_v2 }
 0x695   : > { %6790 = vmatpush3.bf16.msra.mxu1 %v8209_v63  ;;  %6806 = vmatpush3.bf16.msra.mxu0 %v8209_v63 }
 0x696   : > { %6791 = vmatprep.subr.bf16.mxu1 %v8205_v61  ;;  %6807 = vmatprep.subr.bf16.mxu0 %v8205_v61 }
 0x697   : > { %6793 = vmatprep.mubr.msk.bf16.mxu1 %vm542_vm0, %v7346_v53  ;;  %6809 = vmatprep.mubr.msk.bf16.mxu0 %vm542_vm0, %v7347_v9 }
 0x699   : > { %6792 = vmatpush3.bf16.msra.mxu1 %v8205_v61  ;;  %6808 = vmatpush3.bf16.msra.mxu0 %v8205_v61 }
 0x69a   : > { %6817 = vmatprep.subr.bf16.mxu1 %v8197_v40  ;;  %6833 = vmatprep.subr.bf16.mxu0 %v8197_v40 }
 0x69c   : > { %6794 = vmatmul.mubr.msk.bf16.vlgmr.msra.gmra.mrb[76].mxu1 %vm542_vm0, %v7348_v10  ;;  %6810 = vmatmul.mubr.msk.bf16.vlgmr.msra.gmra.mrb[60].mxu0 %vm542_vm0, %v7349_v12 }
 0x69d   : > { %6818 = vmatpush3.bf16.msra.mxu1 %v8197_v40  ;;  %6834 = vmatpush3.bf16.msra.mxu0 %v8197_v40 }
 0x69e   : > { %6819 = vmatprep.subr.bf16.mxu1 %v8195_v33  ;;  %6835 = vmatprep.subr.bf16.mxu0 %v8195_v33 }
 0x69f   : > { %6797 = vmatprep.mubr.msk.bf16.mxu1 %vm542_vm0, %v7350_v17  ;;  %6813 = vmatprep.mubr.msk.bf16.mxu0 %vm542_vm0, %v7351_v8 }
 0x6a1   : > { %6820 = vmatpush3.bf16.msra.mxu1 %v8195_v33  ;;  %6836 = vmatpush3.bf16.msra.mxu0 %v8195_v33 }
 0x6a2   : > { %6821 = vmatprep.subr.bf16.mxu1 %v8209_v63  ;;  %6837 = vmatprep.subr.bf16.mxu0 %v8209_v63 }
 0x6a4   : > { %6798 = vmatmul.mubr.msk.bf16.gmra.mrb[80].mxu1 %vm542_vm0, %v7352_v15  ;;  %6814 = vmatmul.mubr.msk.bf16.gmra.mrb[64].mxu0 %vm542_vm0, %v7353_v26 }
 0x6a5   : > { %6822 = vmatpush3.bf16.msra.mxu1 %v8209_v63  ;;  %6838 = vmatpush3.bf16.msra.mxu0 %v8209_v63 }
 0x6a6   : > { %6823 = vmatprep.subr.bf16.mxu1 %v8205_v61  ;;  %6839 = vmatprep.subr.bf16.mxu0 %v8205_v61 }
 0x6a7   : > { %6825 = vmatprep.mubr.msk.bf16.mxu1 %vm542_vm0, %v7354_v6  ;;  %6841 = vmatprep.mubr.msk.bf16.mxu0 %vm542_vm0, %v7355_v31 }
 0x6a9   : > { %6824 = vmatpush3.bf16.msra.mxu1 %v8205_v61  ;;  %6840 = vmatpush3.bf16.msra.mxu0 %v8205_v61 }
 0x6aa   : > { %6849 = vmatprep.subr.bf16.mxu1 %v8197_v40  ;;  %6865 = vmatprep.subr.bf16.mxu0 %v7564_v14 }
 0x6ac   : > { %6826 = vmatmul.mubr.msk.bf16.vlgmr.msra.gmra.mrb[84].mxu1 %vm542_vm0, %v7356_v39  ;;  %6842 = vmatmul.mubr.msk.bf16.vlgmr.msra.gmra.mrb[68].mxu0 %vm542_vm0, %v7357_v0 }
 0x6ad   : > { %6850 = vmatpush3.bf16.msra.mxu1 %v8197_v40  ;;  %6829 = vmatprep.mubr.msk.bf16.mxu1 %vm542_vm0, %v7358_v13  ;;  %v7102_v40 = vld [vmem:[%s8714_s1 + $0x160] sm:$0xff]  }
 0x6ae   : > { %6851 = vmatprep.subr.bf16.mxu1 %v8195_v33  ;;  %6845 = vmatprep.mubr.msk.bf16.mxu0 %vm542_vm0, %v7359_v20 }
 0x6af   : > { %6866 = vmatpush3.bf16.msra.mxu0 %v7098_v50 }
 0x6b0   : > { %6867 = vmatprep.subr.bf16.mxu0 %v7564_v14 }
 0x6b1   : > { %6852 = vmatpush3.bf16.msra.mxu1 %v8195_v33  ;;  %v7101_v33 = vld [vmem:[%s8714_s1 + $0x158] sm:$0xff]  }
 0x6b2   : > { %6853 = vmatprep.subr.bf16.mxu1 %v8209_v63 }
 0x6b3   : > { %6868 = vmatpush3.bf16.msra.mxu0 %v7099_v23 }
 0x6b4   : > { %6830 = vmatmul.mubr.msk.bf16.gmra.mrb[88].mxu1 %vm542_vm0, %v7360_v36  ;;  %6846 = vmatmul.mubr.msk.bf16.gmra.mrb[72].mxu0 %vm542_vm0, %v7361_v5 }
 0x6b5   : > { %6854 = vmatpush3.bf16.msra.mxu1 %v8209_v63  ;;  %6857 = vmatprep.mubr.msk.bf16.mxu1 %vm542_vm0, %v7362_v24 }
 0x6b6   : > { %6855 = vmatprep.subr.bf16.mxu1 %v8205_v61  ;;  %6881 = vmatprep.mubr.msk.bf16.mxu0 %vm7565_vm1, %v7564_v14 }
 0x6b7   : > { %6869 = vmatprep.subr.bf16.mxu0 %v7564_v14 }
 0x6b8   : > { %6870 = vmatpush3.bf16.msra.mxu0 %v7100_v51 }
 0x6b9   : > { %6856 = vmatpush3.bf16.msra.mxu1 %v8205_v61  ;;  %6871 = vmatprep.subr.bf16.mxu0 %v7564_v14 }
 0x6ba   : > { %6885 = vmatprep.subr.bf16.mxu1 %v7564_v14 }
 0x6bc   : > { %6858 = vmatmul.mubr.msk.bf16.vlgmr.msra.gmra.mrb[92].mxu1 %vm542_vm0, %v7363_v41  ;;  %6872 = vmatpush3.bf16.msra.mxu0 %v7101_v33  ;;  %v5765_v33 = vld [vmem:[#allocation5 + $0x22] ss:$0 sm:$0xff] }
 0x6bd   : > { %6861 = vmatprep.mubr.msk.bf16.mxu1 %vm542_vm0, %v7364_v30  ;;  %6873 = vmatprep.subr.bf16.mxu0 %v7564_v14 }
 0x6be   : > { %6886 = vmatpush3.bf16.msra.mxu1 %v7106_v44 }
 0x6bf   : > { %6887 = vmatprep.subr.bf16.mxu1 %v7564_v14 }
 0x6c0   : > { %6874 = vmatpush3.bf16.msra.mxu0 %v7102_v40  ;;  %v5770_v40 = vld [vmem:[#allocation5 + $0x23] ss:$0 sm:$0xff] }
 0x6c1   : > { %6875 = vmatprep.subr.bf16.mxu0 %v7564_v14 }
 0x6c2   : > { %6888 = vmatpush3.bf16.msra.mxu1 %v7107_v49 }
 0x6c3   : > { %6889 = vmatprep.subr.bf16.mxu1 %v7564_v14 }
 0x6c4   : > { %6862 = vmatmul.mubr.msk.bf16.gmra.mrb[96].mxu1 %vm542_vm0, %v7365_v19  ;;  %6876 = vmatpush3.bf16.msra.mxu0 %v7103_v22 }
 0x6c5   : > { %6901 = vmatprep.mubr.msk.bf16.mxu1 %vm7565_vm1, %v7564_v14  ;;  %6877 = vmatprep.subr.bf16.mxu0 %v7564_v14 }
 0x6c6   : > { %6890 = vmatpush3.bf16.msra.mxu1 %v7108_v25 }
 0x6c7   : > { %6891 = vmatprep.subr.bf16.mxu1 %v7564_v14 }
 0x6c8   : > { %6878 = vmatpush3.bf16.msra.mxu0 %v7104_v27 }
 0x6c9   : > { %6879 = vmatprep.subr.bf16.mxu0 %v7564_v14 }
 0x6ca   : > { %6892 = vmatpush3.bf16.msra.mxu1 %v7109_v59 }
 0x6cb   : > { %6893 = vmatprep.subr.bf16.mxu1 %v7564_v14 }
 0x6cc   : > { %6880 = vmatpush3.bf16.msra.mxu0 %v7105_v34 }
 0x6ce   : > { %6894 = vmatpush3.bf16.msra.mxu1 %v7110_v29 }
 0x6cf   : > { %6895 = vmatprep.subr.bf16.mxu1 %v7564_v14 }
 0x6d2   : > { %6896 = vmatpush3.bf16.msra.mxu1 %v7111_v58 }
 0x6d3   : > { %6897 = vmatprep.subr.bf16.mxu1 %v7564_v14 }
 0x74f   : > { %v6731_v48 = vpop.f32.mrb[60].mxu1  ;;  %v6747_v61 = vpop.f32.mrb[44].mxu0 }
 0x750   : > { %v2280_v63 = vmul.f32 %v6731_v48, %v5755_v7  ;;  %v2358_v4 = vmul.f32 %v6747_v61, %v5760_v32  ;;  %v2242_v35 = vpop.f32.mrb[61].mxu1  ;;  %v2320_v11 = vpop.f32.mrb[45].mxu0 }
 0x751   : > { %v2278_v18 = vmul.f32 %v5755_v7, %v2242_v35  ;;  %v2356_v1 = vmul.f32 %v5760_v32, %v2320_v11  ;;  %v6732_v42 = vpop.f32.mrb[62].mxu1  ;;  %v6748_v28 = vpop.f32.mrb[46].mxu0 }
 0x752   : > { %v2366_v47 = vadd.f32 %v2358_v4, %v2280_v63  ;;  %v2281_v21 = vmul.f32 %v6732_v42, %v5755_v7  ;;  %v2359_v54 = vmul.f32 %v6748_v28, %v5760_v32  ;;  %v2245_v55 = vpop.f32.mrb[63].mxu1  ;;  %v2323_v38 = vpop.f32.mrb[47].mxu0 }
 0x753   : > { %v2364_v60 = vadd.f32 %v2356_v1, %v2278_v18  ;;  %v2279_v2 = vmul.f32 %v5755_v7, %v2245_v55  ;;  %v2357_v53 = vmul.f32 %v5760_v32, %v2323_v38 }
 0x754   : > { %v2367_v9 = vadd.f32 %v2359_v54, %v2281_v21 }
 0x755   : > { %v2365_v10 = vadd.f32 %v2357_v53, %v2279_v2 }
 0x757   : > { %v6735_v12 = vpop.f32.mrb[64].mxu1  ;;  %v6751_v17 = vpop.f32.mrb[48].mxu0 }
 0x758   : > { %v2284_v8 = vmul.f32 %v6735_v12, %v5755_v7  ;;  %v2362_v15 = vmul.f32 %v6751_v17, %v5760_v32  ;;  %v2258_v26 = vpop.f32.mrb[65].mxu1  ;;  %v2336_v6 = vpop.f32.mrb[49].mxu0 }
 0x759   : > { %v2282_v31 = vmul.f32 %v5755_v7, %v2258_v26  ;;  %v2360_v39 = vmul.f32 %v5760_v32, %v2336_v6  ;;  %v6736_v0 = vpop.f32.mrb[66].mxu1  ;;  %v6752_v13 = vpop.f32.mrb[50].mxu0 }
 0x75a   : > { %v2370_v20 = vadd.f32 %v2362_v15, %v2284_v8  ;;  %v2285_v36 = vmul.f32 %v6736_v0, %v5755_v7  ;;  %v2363_v5 = vmul.f32 %v6752_v13, %v5760_v32  ;;  %v2261_v24 = vpop.f32.mrb[67].mxu1  ;;  %v2339_v41 = vpop.f32.mrb[51].mxu0 }
 0x75b   : > { %v2368_v30 = vadd.f32 %v2360_v39, %v2282_v31  ;;  %v2283_v19 = vmul.f32 %v5755_v7, %v2261_v24  ;;  %v2361_v50 = vmul.f32 %v5760_v32, %v2339_v41 }
 0x75c   : > { %v2371_v23 = vadd.f32 %v2363_v5, %v2285_v36 }
 0x75d   : > { %v2369_v51 = vadd.f32 %v2361_v50, %v2283_v19  ;;  %v5775_v50 = vld [vmem:[#allocation5 + $0x24] ss:$0 sm:$0xff] }
 0x75f   : > { %v6763_v22 = vpop.f32.mrb[68].mxu1  ;;  %v6779_v27 = vpop.f32.mrb[52].mxu0 }
 0x760   : > { %v2444_v34 = vmul.f32 %v6763_v22, %v5765_v33  ;;  %v2406_v44 = vpop.f32.mrb[69].mxu1  ;;  %v2530_v49 = vmul.f32 %v6779_v27, %v5770_v40  ;;  %v2492_v25 = vpop.f32.mrb[53].mxu0  ;;  %v5780_v22 = vld [vmem:[#allocation5 + $0x25] ss:$0 sm:$0xff] }
 0x761   : > { %v2442_v59 = vmul.f32 %v5765_v33, %v2406_v44  ;;  %v6764_v29 = vpop.f32.mrb[70].mxu1  ;;  %v2528_v58 = vmul.f32 %v5770_v40, %v2492_v25  ;;  %v6780_v48 = vpop.f32.mrb[54].mxu0 }
 0x762   : > { %v2452_v61 = vadd.f32 %v2444_v34, %v2366_v47  ;;  %v2445_v63 = vmul.f32 %v6764_v29, %v5765_v33  ;;  %v2409_v4 = vpop.f32.mrb[71].mxu1  ;;  %v2531_v35 = vmul.f32 %v6780_v48, %v5770_v40  ;;  %v2495_v7 = vpop.f32.mrb[55].mxu0 }
 0x763   : > { %v2450_v32 = vadd.f32 %v2442_v59, %v2364_v60  ;;  %v2443_v11 = vmul.f32 %v5765_v33, %v2409_v4  ;;  %v2529_v18 = vmul.f32 %v5770_v40, %v2495_v7 }
 0x764   : > { %v2453_v1 = vadd.f32 %v2445_v63, %v2367_v9  ;;  %v2538_v42 = vadd.f32 %v2530_v49, %v2452_v61 }
 0x765   : > { %v2451_v28 = vadd.f32 %v2443_v11, %v2365_v10  ;;  %v2536_v21 = vadd.f32 %v2528_v58, %v2450_v32 }
 0x766   : > { %v2539_v54 = vadd.f32 %v2531_v35, %v2453_v1 }
 0x767   : > { %v2537_v55 = vadd.f32 %v2529_v18, %v2451_v28  ;;  %v6767_v38 = vpop.f32.mrb[72].mxu1  ;;  %v6783_v2 = vpop.f32.mrb[56].mxu0 }
 0x768   : > { %v2448_v53 = vmul.f32 %v6767_v38, %v5765_v33  ;;  %v2422_v12 = vpop.f32.mrb[73].mxu1  ;;  %v2534_v17 = vmul.f32 %v6783_v2, %v5770_v40  ;;  %v2508_v8 = vpop.f32.mrb[57].mxu0 }
 0x769   : > { %v2446_v47 = vmul.f32 %v5765_v33, %v2422_v12  ;;  %v6768_v15 = vpop.f32.mrb[74].mxu1  ;;  %v2532_v26 = vmul.f32 %v5770_v40, %v2508_v8  ;;  %v6784_v6 = vpop.f32.mrb[58].mxu0 }
 0x76a   : > { %v2456_v31 = vadd.f32 %v2448_v53, %v2370_v20  ;;  %v2449_v60 = vmul.f32 %v6768_v15, %v5765_v33  ;;  %v2425_v39 = vpop.f32.mrb[75].mxu1  ;;  %v2535_v0 = vmul.f32 %v6784_v6, %v5770_v40  ;;  %v2511_v9 = vpop.f32.mrb[59].mxu0 }
 0x76b   : > { %v2454_v13 = vadd.f32 %v2446_v47, %v2368_v30  ;;  %v2447_v10 = vmul.f32 %v5765_v33, %v2425_v39  ;;  %v2533_v36 = vmul.f32 %v5770_v40, %v2511_v9 }
 0x76c   : > { %v2457_v5 = vadd.f32 %v2449_v60, %v2371_v23  ;;  %v2542_v24 = vadd.f32 %v2534_v17, %v2456_v31 }
 0x76d   : > { %v2455_v41 = vadd.f32 %v2447_v10, %v2369_v51  ;;  %v2540_v19 = vadd.f32 %v2532_v26, %v2454_v13 }
 0x76e   : > { %v2543_v27 = vadd.f32 %v2535_v0, %v2457_v5 }
 0x76f   : > { %v2541_v34 = vadd.f32 %v2533_v36, %v2455_v41  ;;  %v6795_v44 = vpop.f32.mrb[76].mxu1  ;;  %v6811_v49 = vpop.f32.mrb[60].mxu0  ;;  %v5785_v41 = vld [vmem:[#allocation5 + $0x26] ss:$0 sm:$0xff] }
 0x770   : > { %v2616_v25 = vmul.f32 %v6795_v44, %v5775_v50  ;;  %v2578_v59 = vpop.f32.mrb[77].mxu1  ;;  %v2702_v20 = vmul.f32 %v6811_v49, %v5780_v22  ;;  %v2664_v29 = vpop.f32.mrb[61].mxu0  ;;  %v5790_v44 = vld [vmem:[#allocation5 + $0x27] ss:$0 sm:$0xff] }
 0x771   : > { %v2614_v58 = vmul.f32 %v5775_v50, %v2578_v59  ;;  %v6796_v48 = vpop.f32.mrb[78].mxu1  ;;  %v2700_v61 = vmul.f32 %v5780_v22, %v2664_v29  ;;  %v6812_v30 = vpop.f32.mrb[62].mxu0 }
 0x772   : > { %v2624_v33 = vadd.f32 %v2616_v25, %v2538_v42  ;;  %v2617_v40 = vmul.f32 %v6796_v48, %v5775_v50  ;;  %v2581_v23 = vpop.f32.mrb[79].mxu1  ;;  %v2703_v63 = vmul.f32 %v6812_v30, %v5780_v22  ;;  %v2667_v51 = vpop.f32.mrb[63].mxu0 }
 0x773   : > { %v2622_v4 = vadd.f32 %v2614_v58, %v2536_v21  ;;  %v2615_v35 = vmul.f32 %v5775_v50, %v2581_v23  ;;  %v2701_v7 = vmul.f32 %v5780_v22, %v2667_v51 }
 0x774   : > { %v2625_v32 = vadd.f32 %v2617_v40, %v2539_v54  ;;  %v2710_v11 = vadd.f32 %v2702_v20, %v2624_v33 }
 0x775   : > { %v2623_v18 = vadd.f32 %v2615_v35, %v2537_v55  ;;  %v2708_v1 = vadd.f32 %v2700_v61, %v2622_v4 }
 0x776   : > { %v2711_v28 = vadd.f32 %v2703_v63, %v2625_v32 }
 0x777   : > { %v2709_v38 = vadd.f32 %v2701_v7, %v2623_v18  ;;  %v6799_v2 = vpop.f32.mrb[80].mxu1  ;;  %v6815_v53 = vpop.f32.mrb[64].mxu0 }
 0x778   : > { %v2620_v12 = vmul.f32 %v6799_v2, %v5775_v50  ;;  %v2594_v17 = vpop.f32.mrb[81].mxu1  ;;  %v2706_v8 = vmul.f32 %v6815_v53, %v5780_v22  ;;  %v2680_v47 = vpop.f32.mrb[65].mxu0 }
 0x779   : > { %v2618_v42 = vmul.f32 %v5775_v50, %v2594_v17  ;;  %v6800_v15 = vpop.f32.mrb[82].mxu1  ;;  %v2704_v26 = vmul.f32 %v5780_v22, %v2680_v47  ;;  %v6816_v6 = vpop.f32.mrb[66].mxu0 }
 0x77a   : > { %v2628_v31 = vadd.f32 %v2620_v12, %v2542_v24  ;;  %v2621_v21 = vmul.f32 %v6800_v15, %v5775_v50  ;;  %v2597_v60 = vpop.f32.mrb[83].mxu1  ;;  %v2707_v39 = vmul.f32 %v6816_v6, %v5780_v22  ;;  %v2683_v54 = vpop.f32.mrb[67].mxu0 }
 0x77b   : > { %v2626_v0 = vadd.f32 %v2618_v42, %v2540_v19  ;;  %v2619_v55 = vmul.f32 %v5775_v50, %v2597_v60  ;;  %v2705_v9 = vmul.f32 %v5780_v22, %v2683_v54 }
 0x77c   : > { %v2629_v13 = vadd.f32 %v2621_v21, %v2543_v27  ;;  %v2714_v10 = vadd.f32 %v2706_v8, %v2628_v31 }
 0x77d   : > { %v2627_v36 = vadd.f32 %v2619_v55, %v2541_v34  ;;  %v2712_v5 = vadd.f32 %v2704_v26, %v2626_v0 }
 0x77e   : > { %v2715_v49 = vadd.f32 %v2707_v39, %v2629_v13 }
 0x77f   : > { %v2713_v25 = vadd.f32 %v2705_v9, %v2627_v36  ;;  %v6827_v59 = vpop.f32.mrb[84].mxu1  ;;  %v6843_v20 = vpop.f32.mrb[68].mxu0  ;;  %v5795_v36 = vld [vmem:[#allocation5 + $0x28] ss:$0 sm:$0xff] }
 0x780   : > { %v2788_v29 = vmul.f32 %v6827_v59, %v5785_v41  ;;  %v2750_v58 = vpop.f32.mrb[85].mxu1  ;;  %v2874_v24 = vmul.f32 %v6843_v20, %v5790_v44  ;;  %v2836_v48 = vpop.f32.mrb[69].mxu0 }
 0x781   : > { %v2786_v61 = vmul.f32 %v5785_v41, %v2750_v58  ;;  %v6828_v30 = vpop.f32.mrb[86].mxu1  ;;  %v2872_v33 = vmul.f32 %v5790_v44, %v2836_v48  ;;  %v6844_v19 = vpop.f32.mrb[70].mxu0 }
 0x782   : > { %v2796_v50 = vadd.f32 %v2788_v29, %v2710_v11  ;;  %v2789_v22 = vmul.f32 %v6828_v30, %v5785_v41  ;;  %v2753_v27 = vpop.f32.mrb[87].mxu1  ;;  %v2875_v40 = vmul.f32 %v6844_v19, %v5790_v44  ;;  %v2839_v34 = vpop.f32.mrb[71].mxu0  ;;  %v5796_v30 = vld [vmem:[#allocation5 + $0x6] ss:$0 sm:$0xff] }
 0x783   : > { %v2794_v23 = vadd.f32 %v2786_v61, %v2708_v1  ;;  %v2787_v63 = vmul.f32 %v5785_v41, %v2753_v27  ;;  %v2873_v51 = vmul.f32 %v5790_v44, %v2839_v34 }
 0x784   : > { %v2797_v4 = vadd.f32 %v2789_v22, %v2711_v28  ;;  %v2882_v35 = vadd.f32 %v2874_v24, %v2796_v50 }
 0x785   : > { %v2795_v7 = vadd.f32 %v2787_v63, %v2709_v38  ;;  %v2880_v32 = vadd.f32 %v2872_v33, %v2794_v23 }
 0x786   : > { %v2883_v18 = vadd.f32 %v2875_v40, %v2797_v4 }
 0x787   : > { %v2881_v2 = vadd.f32 %v2873_v51, %v2795_v7  ;;  %v6831_v53 = vpop.f32.mrb[88].mxu1  ;;  %v6847_v12 = vpop.f32.mrb[72].mxu0 }
 0x788   : > { %v2792_v17 = vmul.f32 %v6831_v53, %v5785_v41  ;;  %v2766_v8 = vpop.f32.mrb[89].mxu1  ;;  %v2878_v47 = vmul.f32 %v6847_v12, %v5790_v44  ;;  %v2852_v42 = vpop.f32.mrb[73].mxu0 }
 0x789   : > { %v2790_v11 = vmul.f32 %v5785_v41, %v2766_v8  ;;  %v6832_v15 = vpop.f32.mrb[90].mxu1  ;;  %v2876_v26 = vmul.f32 %v5790_v44, %v2852_v42  ;;  %v6848_v6 = vpop.f32.mrb[74].mxu0 }
 0x78a   : > { %v2800_v31 = vadd.f32 %v2792_v17, %v2714_v10  ;;  %v2793_v1 = vmul.f32 %v6832_v15, %v5785_v41  ;;  %v2769_v21 = vpop.f32.mrb[91].mxu1  ;;  %v2879_v60 = vmul.f32 %v6848_v6, %v5790_v44  ;;  %v2855_v28 = vpop.f32.mrb[75].mxu0 }
 0x78b   : > { %v2798_v39 = vadd.f32 %v2790_v11, %v2712_v5  ;;  %v2791_v38 = vmul.f32 %v5785_v41, %v2769_v21  ;;  %v2877_v54 = vmul.f32 %v5790_v44, %v2855_v28 }
 0x78c   : > { %v2801_v0 = vadd.f32 %v2793_v1, %v2715_v49  ;;  %v2886_v55 = vadd.f32 %v2878_v47, %v2800_v31 }
 0x78d   : > { %v2799_v9 = vadd.f32 %v2791_v38, %v2713_v25  ;;  %v2884_v13 = vadd.f32 %v2876_v26, %v2798_v39 }
 0x78e   : > { %v2887_v59 = vadd.f32 %v2879_v60, %v2801_v0 }
 0x78f   : > { %v2885_v20 = vadd.f32 %v2877_v54, %v2799_v9  ;;  %v6859_v29 = vpop.f32.mrb[92].mxu1 }
 0x790   : > { %v2960_v58 = vmul.f32 %v6859_v29, %v5795_v36  ;;  %v2922_v24 = vpop.f32.mrb[93].mxu1 }
 0x791   : > { %v2958_v48 = vmul.f32 %v5795_v36, %v2922_v24  ;;  %v6860_v61 = vpop.f32.mrb[94].mxu1 }
 0x792   : > { %v2968_v10 = vadd.f32 %v2960_v58, %v2882_v35  ;;  %v2961_v33 = vmul.f32 %v6860_v61, %v5795_v36  ;;  %v2925_v19 = vpop.f32.mrb[95].mxu1  ;;  %v7113_v61 = vld [vmem:[%s8714_s1 + $0x1b8] sm:$0xff]  }
 0x793   : > { %v2966_v50 = vadd.f32 %v2958_v48, %v2880_v32  ;;  %v2959_v5 = vmul.f32 %v5795_v36, %v2925_v19  ;;  %v7112_v48 = vld [vmem:[%s8714_s1 + $0x1b0] sm:$0xff]  }
 0x794   : > { %v2969_v41 = vadd.f32 %v2961_v33, %v2883_v18  ;;  %v8372_v25 = vadd.f32 %v5796_v30, %v2968_v10  ;;  %6898 = vmatpush3.bf16.msra.mxu1 %v7112_v48  ;;  %v5829_v10 = vld [vmem:[#allocation5 + $0x7] ss:$0 sm:$0xff] }
 0x795   : > { %v8370_v44 = vadd.f32 %v5796_v30, %v2966_v50  ;;  %v2967_v49 = vadd.f32 %v2959_v5, %v2881_v2  ;;  %6899 = vmatprep.subr.bf16.mxu1 %v7564_v14  ;;  %v7115_v14 = vld [vmem:[%s8714_s1 + $0x1c8] sm:$0xff]  }
 0x796   : > { %v8377_v63 = vadd.f32 %v5796_v30, %v2969_v41  ;;  %v2989_v2 = vmax.f32 %v8372_v25, 0.0  ;;  %v7131_v25 = vld [vmem:[#allocation7 + $0x58] ss:$40 sps:$4 sm:$0xff]  }
 0x797   : > { %v8374_v22 = vadd.f32 %v5796_v30, %v2967_v49  ;;  %v6863_v27 = vpop.f32.mrb[96].mxu1  ;;  %v2987_v23 = vmax.f32 %v8370_v44, 0.0  ;;  %v7133_v44 = vld [vmem:[#allocation7 + $0x5c] ss:$40 sps:$4 sm:$0xff]  }
 0x798   : > { %v2964_v40 = vmul.f32 %v6863_v27, %v5795_v36  ;;  %v2938_v34 = vpop.f32.mrb[97].mxu1  ;;  %v2990_v47 = vmax.f32 %v8377_v63, 0.0  ;;  %6900 = vmatpush3.bf16.msra.mxu1 %v7113_v61  ;;  %v7114_v27 = vld [vmem:[%s8714_s1 + $0x1c0] sm:$0xff]  }
 0x799   : > { %v2988_v51 = vmax.f32 %v8374_v22, 0.0  ;;  %v2962_v4 = vmul.f32 %v5795_v36, %v2938_v34  ;;  %v6864_v35 = vpop.f32.mrb[98].mxu1  ;;  %6905 = vmatprep.subr.bf16.mxu0 %v7114_v27  ;;  %v7117_v34 = vld [vmem:[%s8714_s1 + $0x1d8] sm:$0xff]  }
 0x79a   : > { %v2972_v7 = vadd.f32 %v2964_v40, %v2886_v55  ;;  %v2965_v32 = vmul.f32 %v6864_v35, %v5795_v36  ;;  %v2941_v18 = vpop.f32.mrb[99].mxu1  ;;  %v7116_v40 = vld [vmem:[%s8714_s1 + $0x1d0] sm:$0xff]   ;;  %v7119_v35 = vld [vmem:[%s8714_s1 + $0x1e8] sm:$0xff]  }
 0x79b   : > { %v3031_v53 = vadd.f32 %v2988_v51, %v2987_v23  ;;  %v2970_v12 = vadd.f32 %v2962_v4, %v2884_v13  ;;  %v2963_v17 = vmul.f32 %v5795_v36, %v2941_v18  ;;  %v7118_v4 = vld [vmem:[%s8714_s1 + $0x1e0] sm:$0xff]   ;;  %v7122_v18 = vld [vmem:[#allocation7] ss:$40 sps:$4 sm:$0xff]  }
 0x79c   : > { %v2973_v8 = vadd.f32 %v2965_v32, %v2887_v59  ;;  %v8390_v26 = vadd.f32 %v5796_v30, %v2972_v7  ;;  %v7120_v7 = vld [vmem:[%s8714_s1 + $0x1f0] sm:$0xff]   ;;  %v7121_v32 = vld [vmem:[%s8714_s1 + $0x1f8] sm:$0xff]  }
 0x79d   : > { %v3032_v42 = vadd.f32 %v3031_v53, %v2989_v2  ;;  %v8388_v11 = vadd.f32 %v5796_v30, %v2970_v12  ;;  %v2971_v15 = vadd.f32 %v2963_v17, %v2885_v20  ;;  %v7124_v53 = vld [vmem:[#allocation7 + $0x4] ss:$40 sps:$4 sm:$0xff]   ;;  %v7130_v17 = vld [vmem:[#allocation7 + $0x54] ss:$40 sps:$4 sm:$0xff]  }
 0x79e   : > { %v8399_v60 = vadd.f32 %v5796_v30, %v2973_v8  ;;  %v2993_v39 = vmax.f32 %v8390_v26, 0.0  ;;  %v7127_v12 = vld [vmem:[#allocation7 + $0xc] ss:$40 sps:$4 sm:$0xff]   ;;  %3509 = vmatprep.subr.bf16.mxu1 %v7124_v53  ;;  %v7128_v8 = vld [vmem:[#allocation7 + $0x50] ss:$40 sps:$4 sm:$0xff]   ;;  %v7566_v53 = vmov 0  }
 0x79f   : > { %v2991_v6 = vmax.f32 %v8388_v11, 0.0  ;;  %v3033_v31 = vadd.f32 %v3032_v42, %v2990_v47  ;;  %v8395_v1 = vadd.f32 %v5796_v30, %v2971_v15  ;;  %v7136_v42 = vld [vmem:[#allocation7 + $0xa4] ss:$40 sps:$4 sm:$0xff]   ;;  %v7134_v15 = vld [vmem:[#allocation7 + $0xa0] ss:$40 sps:$4 sm:$0xff]  }
 0x7a0   : > { %v2994_v54 = vmax.f32 %v8399_v60, 0.0  ;;  %v7145_v11 = vld [vmem:[#allocation7 + $0xfc] ss:$40 sps:$4 sm:$0xff]  }
 0x7a1   : > { %v3034_v21 = vadd.f32 %v3033_v31, %v2991_v6  ;;  %v2992_v28 = vmax.f32 %v8395_v1, 0.0  ;;  %v7142_v31 = vld [vmem:[#allocation7 + $0xf4] ss:$40 sps:$4 sm:$0xff]   ;;  %v7160_v60 = vld [vmem:[#allocation7 + $0x1e4] ss:$40 sps:$4 sm:$0xff]  }
 0x7a2   : > { %v7151_v1 = vld [vmem:[#allocation7 + $0x14c] ss:$40 sps:$4 sm:$0xff]   ;;  %v7157_v26 = vld [vmem:[#allocation7 + $0x19c] ss:$40 sps:$4 sm:$0xff]  }
 0x7a3   : > { %v3035_v38 = vadd.f32 %v3034_v21, %v2992_v28  ;;  %v7140_v21 = vld [vmem:[#allocation7 + $0xf0] ss:$40 sps:$4 sm:$0xff]  }
 0x7a5   : > { %v3036_v0 = vadd.f32 %v3035_v38, %v2993_v39  ;;  %v7148_v38 = vld [vmem:[#allocation7 + $0x144] ss:$40 sps:$4 sm:$0xff]  }
 0x7a7   : > { %v3037_v55 = vadd.f32 %v3036_v0, %v2994_v54  ;;  %v7146_v0 = vld [vmem:[#allocation7 + $0x140] ss:$40 sps:$4 sm:$0xff]  }
 0x7a9   : > { %v3038_v9 = vrot.slane %v3037_v55, 4 }
 0x7ab   : > { %v3039_v13 = vadd.f32 %v3038_v9, %v3037_v55  ;;  %v7154_v55 = vld [vmem:[#allocation7 + $0x194] ss:$40 sps:$4 sm:$0xff]   ;;  %v7152_v9 = vld [vmem:[#allocation7 + $0x190] ss:$40 sps:$4 sm:$0xff]  }
 0x7ad   : > { %v3040_v36 = vrot.slane %v3039_v13, 2 }
 0x7af   : > { %v3041_v59 = vadd.f32 %v3040_v36, %v3039_v13  ;;  %v5838_v13 = vld [vmem:[#allocation5 + $0x8] ss:$0 sm:$0xff] }
 0x7b1   : > { %v3042_v20 = vrot.slane %v3041_v59, 1 }
 0x7b3   : > { %v3043_v29 = vadd.f32 %v3042_v20, %v3041_v59 }
 0x7b5   : > { %v3044_v58 = vmul.f32 0.015625, %v3043_v29 }
 0x7b7   : > { %v3045_v24 = vpack.c.bf16 %v3044_v58, %v3044_v58 }
 0x7b9   : > { %6882 = vmatmul.mubr.bf16.vlgmr.msra.gmra.mrb[76].mxu0 %v3045_v24 }
 0x7ba   : > { %6906 = vmatpush3.bf16.msra.mxu0 %v7114_v27 }
 0x7bb   : > { %6907 = vmatprep.subr.bf16.mxu0 %v7115_v14 }
 0x7be   : > { %6908 = vmatpush3.bf16.msra.mxu0 %v7115_v14 }
 0x7bf   : > { %6909 = vmatprep.subr.bf16.mxu0 %v7116_v40 }
 0x7c2   : > { %6910 = vmatpush3.bf16.msra.mxu0 %v7116_v40  ;;  %v7125_v40 = vld [vmem:[#allocation7 + $0x8] ss:$40 sps:$4 sm:$0xff]  }
 0x7c3   : > { %6911 = vmatprep.subr.bf16.mxu0 %v7117_v34 }
 0x7c6   : > { %6912 = vmatpush3.bf16.msra.mxu0 %v7117_v34  ;;  %v7158_v34 = vld [vmem:[#allocation7 + $0x1e0] ss:$40 sps:$4 sm:$0xff]  }
 0x7c7   : > { %6913 = vmatprep.subr.bf16.mxu0 %v7118_v4 }
 0x7ca   : > { %6914 = vmatpush3.bf16.msra.mxu0 %v7118_v4  ;;  %v7161_v4 = vld [vmem:[#allocation7 + $0x1e8] ss:$40 sps:$4 sm:$0xff]  }
 0x7cb   : > { %6915 = vmatprep.subr.bf16.mxu0 %v7119_v35 }
 0x7ce   : > { %6916 = vmatpush3.bf16.msra.mxu0 %v7119_v35  ;;  %v7166_v35 = vld [vmem:[#allocation7 + $0x234] ss:$40 sps:$4 sm:$0xff]  }
 0x7cf   : > { %6917 = vmatprep.subr.bf16.mxu0 %v7120_v7 }
 0x7d2   : > { %6918 = vmatpush3.bf16.msra.mxu0 %v7120_v7  ;;  %v7169_v7 = vld [vmem:[#allocation7 + $0x23c] ss:$40 sps:$4 sm:$0xff]  }
 0x7d3   : > { %6919 = vmatprep.subr.bf16.mxu0 %v7121_v32 }
 0x7d6   : > { %6920 = vmatpush3.bf16.msra.mxu0 %v7121_v32  ;;  %v7164_v32 = vld [vmem:[#allocation7 + $0x230] ss:$40 sps:$4 sm:$0xff]  }
 0x7d7   : > { %3746 = vmatprep.subr.bf16.mxu0 %v7127_v12  ;;  %v7170_v12 = vld [vmem:[#allocation8 + $0xc0] sm:$0xff]  }
 0x88c   : > { %v3132_v30 = vpop.f32.mrb[76].mxu0 }
 0x88d   : > { %v3133_v33 = vadd.f32 %v5829_v10, %v3132_v30  ;;  %v6883_v19 = vpop.f32.mrb[77].mxu0 }
 0x88e   : > { %v3135_v50 = vpop.f32.mrb[78].mxu0 }
 0x88f   : > { %v3138_v5 = vmax.f32 %v3133_v33, 0.0  ;;  %v6884_v41 = vpop.f32.mrb[79].mxu0 }
 0x891   : > { %v3139_v49 = vpack.c.bf16 %v3138_v5, %v3138_v5 }
 0x893   : > { %6902 = vmatmul.mubr.bf16.vlgmr.msra.gmra.mrb[100].mxu1 %v3139_v49 }
 0x894   : > { %3510 = vmatpush1.bf16.msra.mxu1 %v7122_v18  ;;  %v7167_v18 = vld [vmem:[#allocation7 + $0x238] ss:$40 sps:$4 sm:$0xff]   ;;  %3541 = vmatprep.mubr.bf16.mxu1 %v7566_v53 }
 0x895   : > { %3511 = vmatprep.subr.bf16.mxu1 %v7130_v17  ;;  %v7171_v17 = vld [vmem:[#allocation8 + $0x40] sm:$0xff]  }
 0x898   : > { %3512 = vmatpush1.bf16.msra.mxu1 %v7128_v8  ;;  %v5864_v8 = vld [vmem:[#allocation5 + $0x9] ss:$0 sm:$0xff] }
 0x899   : > { %3513 = vmatprep.subr.bf16.mxu1 %v7136_v42 }
 0x89c   : > { %3514 = vmatpush1.bf16.msra.mxu1 %v7134_v15 }
 0x89d   : > { %3515 = vmatprep.subr.bf16.mxu1 %v7142_v31 }
 0x8a0   : > { %3516 = vmatpush1.bf16.msra.mxu1 %v7140_v21 }
 0x8a1   : > { %3517 = vmatprep.subr.bf16.mxu1 %v7148_v38 }
 0x8a4   : > { %3518 = vmatpush1.bf16.msra.mxu1 %v7146_v0 }
 0x8a5   : > { %3519 = vmatprep.subr.bf16.mxu1 %v7154_v55 }
 0x8a8   : > { %3520 = vmatpush1.bf16.msra.mxu1 %v7152_v9 }
 0x8a9   : > { %3521 = vmatprep.subr.bf16.mxu1 %v7160_v60  ;;  %v7194_v60 = vld [vmem:[#allocation8 + $0xf0] sm:$0xff]  }
 0x8ac   : > { %3522 = vmatpush1.bf16.msra.mxu1 %v7158_v34  ;;  %v7196_v34 = vld [vmem:[#allocation8 + $0xb0] sm:$0xff]  }
 0x8ad   : > { %3523 = vmatprep.subr.bf16.mxu1 %v7166_v35  ;;  %v7198_v35 = vld [vmem:[#allocation8 + $0xf8] sm:$0xff]  }
 0x8b0   : > { %3524 = vmatpush1.bf16.msra.mxu1 %v7164_v32  ;;  %v7200_v32 = vld [vmem:[#allocation8 + $0xb8] sm:$0xff]  }
 0x8b1   : > { %6265 = vmatprep.subr.bf16.mxu1 %v7170_v12  ;;  %v7204_v12 = vld [vmem:[#allocation7 + $0x14] ss:$40 sps:$4 sm:$0xff]  }
 0x966   : > { %v3226_v36 = vpop.f32.mrb[100].mxu1 }
 0x967   : > { %v3227_v59 = vadd.f32 %v5838_v13, %v3226_v36  ;;  %v6903_v20 = vpop.f32.mrb[101].mxu1 }
 0x968   : > { %v3229_v29 = vpop.f32.mrb[102].mxu1 }
 0x969   : > { %v5847_v58 = vmul.f32 -1.442695, %v3227_v59  ;;  %v6904_v24 = vpop.f32.mrb[103].mxu1 }
 0x96b   : > { %7326 = vpow2.f32 %v5847_v58 }
 0x975   : > { %v7327_v48 = vpop.eup %7326 }
 0x976   : > { %v3235_v61 = vadd.f32 1.0, %v7327_v48  ;;  %v7172_v48 = vld [vmem:[#allocation8 + $0x80] sm:$0xff]  }
 0x978   : > { %7328 = vrcp.f32 %v3235_v61  ;;  %v7173_v61 = vld [vmem:[#allocation8] sm:$0xff]  }
 0x982   : > { %v7329_v10 = vpop.eup %7328 }
 0x983   : > { %v3241_v30 = vrot.slane %v7329_v10, %v8144_v43 }
 0x985   : > { %v3242_v33 = vmul.f32 %v3241_v30, %v2987_v23  ;;  %v3243_v19 = vmul.f32 %v3241_v30, %v2988_v51  ;;  %v3244_v50 = vmul.f32 %v3241_v30, %v2989_v2  ;;  %v3245_v5 = vmul.f32 %v3241_v30, %v2990_v47  ;;  %v7139_v51 = vld [vmem:[#allocation7 + $0xac] ss:$40 sps:$4 sm:$0xff]   ;;  %v7137_v2 = vld [vmem:[#allocation7 + $0xa8] ss:$40 sps:$4 sm:$0xff]  }
 0x986   : > { %v3246_v41 = vmul.f32 %v3241_v30, %v2991_v6  ;;  %v3247_v49 = vmul.f32 %v3241_v30, %v2992_v28  ;;  %v3248_v22 = vmul.f32 %v3241_v30, %v2993_v39  ;;  %v3249_v63 = vmul.f32 %v3241_v30, %v2994_v54  ;;  %v7143_v6 = vld [vmem:[#allocation7 + $0xf8] ss:$40 sps:$4 sm:$0xff]   ;;  %v7149_v28 = vld [vmem:[#allocation7 + $0x148] ss:$40 sps:$4 sm:$0xff]   ;;  %v7163_v54 = vld [vmem:[#allocation7 + $0x1ec] ss:$40 sps:$4 sm:$0xff]  }
 0x987   : > { %v3250_v27 = vpack.c.bf16 %v3243_v19, %v3242_v33  ;;  %v3251_v14 = vpack.c.bf16 %v3245_v5, %v3244_v50  ;;  %v7155_v39 = vld [vmem:[#allocation7 + $0x198] ss:$40 sps:$4 sm:$0xff]   ;;  %v7174_v33 = vld [vmem:[#allocation8 + $0xc8] sm:$0xff]  }
 0x988   : > { %v3252_v23 = vpack.c.bf16 %v3247_v49, %v3246_v41  ;;  %v3253_v47 = vpack.c.bf16 %v3249_v63, %v3248_v22  ;;  %v7175_v19 = vld [vmem:[#allocation8 + $0x48] sm:$0xff]   ;;  %v7180_v63 = vld [vmem:[#allocation8 + $0x90] sm:$0xff]  }
 0x989   : > { %6921 = vmatprep.mubr.bf16.mxu0 %v3250_v27  ;;  %v7177_v41 = vld [vmem:[#allocation8 + $0x8] sm:$0xff]  }
 0x98a   : > { %6922 = vmatmul.mubr.bf16.vlgmr.msra.gmra.mrb[80].mxu0 %v3251_v14  ;;  %v7178_v14 = vld [vmem:[#allocation8 + $0xd0] sm:$0xff]  }
 0x98b   : > { %6925 = vmatprep.mubr.bf16.mxu0 %v3252_v23  ;;  %3747 = vmatpush1.bf16.msra.mxu0 %v7125_v40  ;;  %v7179_v40 = vld [vmem:[#allocation8 + $0x50] sm:$0xff]  }
 0x98c   : > { %3748 = vmatprep.subr.bf16.mxu0 %v7133_v44 }
 0x98f   : > { %3749 = vmatpush1.bf16.msra.mxu0 %v7131_v25 }
 0x990   : > { %3750 = vmatprep.subr.bf16.mxu0 %v7139_v51  ;;  %v7181_v51 = vld [vmem:[#allocation8 + $0x10] sm:$0xff]  }
 0x992   : > { %6926 = vmatmul.mubr.bf16.gmra.mrb[84].mxu0 %v3253_v47  ;;  %v7187_v47 = vld [vmem:[#allocation8 + $0x60] sm:$0xff]  }
 0x993   : > { %3751 = vmatpush1.bf16.msra.mxu0 %v7137_v2  ;;  %3778 = vmatprep.mubr.bf16.mxu0 %v7566_v53  ;;  %v7186_v2 = vld [vmem:[#allocation8 + $0xe0] sm:$0xff]  }
 0x994   : > { %3752 = vmatprep.subr.bf16.mxu0 %v7145_v11  ;;  %v7188_v11 = vld [vmem:[#allocation8 + $0xa0] sm:$0xff]  }
 0x997   : > { %3753 = vmatpush1.bf16.msra.mxu0 %v7143_v6  ;;  %v7189_v6 = vld [vmem:[#allocation8 + $0x20] sm:$0xff]  }
 0x998   : > { %3754 = vmatprep.subr.bf16.mxu0 %v7151_v1  ;;  %v7190_v1 = vld [vmem:[#allocation8 + $0xe8] sm:$0xff]  }
 0x99b   : > { %3755 = vmatpush1.bf16.msra.mxu0 %v7149_v28  ;;  %v7191_v28 = vld [vmem:[#allocation8 + $0x68] sm:$0xff]  }
 0x99c   : > { %3756 = vmatprep.subr.bf16.mxu0 %v7157_v26  ;;  %v7192_v26 = vld [vmem:[#allocation8 + $0xa8] sm:$0xff]  }
 0x99f   : > { %3757 = vmatpush1.bf16.msra.mxu0 %v7155_v39  ;;  %v7193_v39 = vld [vmem:[#allocation8 + $0x28] sm:$0xff]  }
 0x9a0   : > { %3758 = vmatprep.subr.bf16.mxu0 %v7163_v54  ;;  %v7195_v54 = vld [vmem:[#allocation8 + $0x70] sm:$0xff]  }
 0x9a3   : > { %3759 = vmatpush1.bf16.msra.mxu0 %v7161_v4  ;;  %v7197_v4 = vld [vmem:[#allocation8 + $0x30] sm:$0xff]  }
 0x9a4   : > { %3760 = vmatprep.subr.bf16.mxu0 %v7169_v7  ;;  %v7199_v7 = vld [vmem:[#allocation8 + $0x78] sm:$0xff]  }
 0x9a7   : > { %3761 = vmatpush1.bf16.msra.mxu0 %v7167_v18  ;;  %v7201_v18 = vld [vmem:[#allocation8 + $0x38] sm:$0xff]  }
 0x9a8   : > { %6305 = vmatprep.subr.bf16.mxu0 %v7171_v17  ;;  %v8491_v17 = vsub.s32 1, %v8141_v45 }
 0xa5d   : > { %v6923_v42 = vpop.f32.mrb[80].mxu0 }
 0xa5e   : > { %v3367_v15 = vadd.f32 %v6923_v42, %v5864_v8  ;;  %v3358_v31 = vpop.f32.mrb[81].mxu0  ;;  %v3654_v42 = vld [vmem:[%s8718_s5 + $0x2] sm:$0x3] }
 0xa5f   : > { %v3359_v21 = vadd.f32 %v5864_v8, %v3358_v31  ;;  %v6924_v38 = vpop.f32.mrb[82].mxu0  ;;  %v8503_v31 = vrot.slane %v3654_v42, %v8144_v43  ;;  %v8509_v45 = vrot.slane %v3654_v42, %v8491_v17 }
 0xa60   : > { %v3370_v0 = vadd.f32 %v6924_v38, %v5864_v8  ;;  %v3361_v55 = vpop.f32.mrb[83].mxu0  ;;  %v3391_v13 = vadd.f32 %v3367_v15, %v8176_v46  ;;  %v7176_v46 = vld [vmem:[#allocation8 + $0x88] sm:$0xff]  }
 0xa61   : > { %v3362_v9 = vadd.f32 %v5864_v8, %v3361_v55  ;;  %v3389_v59 = vadd.f32 %v3359_v21, %v8172_v56 }
 0xa62   : > { %v3392_v36 = vadd.f32 %v3370_v0, %v8170_v52 }
 0xa63   : > { %v3390_v20 = vadd.f32 %v3362_v9, %v8174_v3 }
 0xa64   : > { %v8464_v29 = vpack.c.bf16 %v3392_v36, %v3391_v13 }
 0xa65   : > { %v8466_v58 = vpack.c.bf16 %v3390_v20, %v3389_v59  ;;  %v6927_v24 = vpop.f32.mrb[84].mxu0 }
 0xa66   : > { %v3383_v10 = vadd.f32 %v6927_v24, %v5864_v8  ;;  %v3374_v30 = vpop.f32.mrb[85].mxu0 }
 0xa67   : > { %v3375_v50 = vadd.f32 %v5864_v8, %v3374_v30  ;;  %v6928_v5 = vpop.f32.mrb[86].mxu0  ;;  %3542 = vmatmul.mubr.bf16.vlgmr.msra.gmra.mrb[104].mxu1 %v8466_v58  ;;  %3779 = vmatmul.mubr.bf16.vlgmr.msra.gmra.mrb[88].mxu0 %v8466_v58 }
 0xa68   : > { %v3386_v52 = vadd.f32 %v6928_v5, %v5864_v8  ;;  %v3377_v56 = vpop.f32.mrb[87].mxu0  ;;  %3551 = vmatprep.mubr.bf16.mxu1 %v7566_v53  ;;  %3788 = vmatprep.mubr.bf16.mxu0 %v7566_v53  ;;  %v3395_v49 = vadd.f32 %v3383_v10, %v8188_v62  ;;  %v7182_v62 = vld [vmem:[#allocation8 + $0xd8] sm:$0xff]  }
 0xa69   : > { %v3378_v3 = vadd.f32 %v5864_v8, %v3377_v56  ;;  %6266 = vmatpush3.bf16.msra.mxu1 %v7172_v48  ;;  %6306 = vmatpush3.bf16.msra.mxu0 %v7173_v61  ;;  %v3393_v44 = vadd.f32 %v3375_v50, %v8184_v57  ;;  %v7184_v57 = vld [vmem:[#allocation8 + $0x98] sm:$0xff]   ;;  %v3417_v8 = vld [vmem:[%s8718_s5] sm:$0x3] }
 0xa6a   : > { %v3396_v27 = vadd.f32 %v3386_v52, %v8182_v37  ;;  %6267 = vmatprep.subr.bf16.mxu1 %v7174_v33  ;;  %6307 = vmatprep.subr.bf16.mxu0 %v7175_v19  ;;  %v7183_v37 = vld [vmem:[#allocation8 + $0x58] sm:$0xff]   ;;  %v8500_v15 = vrot.slane %v3417_v8, %v8144_v43  ;;  %v8506_v21 = vrot.slane %v3417_v8, %v8491_v17 }
 0xa6b   : > { %v3394_v23 = vadd.f32 %v3378_v3, %v8186_v16  ;;  %v7185_v16 = vld [vmem:[#allocation8 + $0x18] sm:$0xff]  }
 0xa6c   : > { %v8476_v25 = vpack.c.bf16 %v3396_v27, %v3395_v49  ;;  %v7210_v8 = vld [vmem:[#allocation7 + $0xb4] ss:$40 sps:$4 sm:$0xff]  }
 0xa6d   : > { %v8478_v22 = vpack.c.bf16 %v3394_v23, %v3393_v44  ;;  %6268 = vmatpush3.bf16.msra.mxu1 %v7176_v46  ;;  %6308 = vmatpush3.bf16.msra.mxu0 %v7177_v41 }
 0xa6e   : > { %6269 = vmatprep.subr.bf16.mxu1 %v7178_v14  ;;  %6309 = vmatprep.subr.bf16.mxu0 %v7179_v40 }
 0xa6f   : > { %3552 = vmatmul.mubr.bf16.gmra.mrb[108].mxu1 %v8464_v29  ;;  %3789 = vmatmul.mubr.bf16.gmra.mrb[92].mxu0 %v8464_v29 }
 0xa70   : > { %3561 = vmatprep.mubr.bf16.mxu1 %v7566_v53  ;;  %3798 = vmatprep.mubr.bf16.mxu0 %v7566_v53 }
 0xa71   : > { %6270 = vmatpush3.bf16.msra.mxu1 %v7180_v63  ;;  %6310 = vmatpush3.bf16.msra.mxu0 %v7181_v51 }
 0xa72   : > { %6271 = vmatprep.subr.bf16.mxu1 %v7182_v62  ;;  %6311 = vmatprep.subr.bf16.mxu0 %v7183_v37  ;;  %v7202_v62 = vld [vmem:[#allocation7 + $0x10] ss:$40 sps:$4 sm:$0xff]  }
 0xa75   : > { %6272 = vmatpush3.bf16.msra.mxu1 %v7184_v57  ;;  %6312 = vmatpush3.bf16.msra.mxu0 %v7185_v16 }
 0xa76   : > { %6273 = vmatprep.subr.bf16.mxu1 %v7186_v2  ;;  %6313 = vmatprep.subr.bf16.mxu0 %v7187_v47  ;;  %v7207_v47 = vld [vmem:[#allocation7 + $0x64] ss:$40 sps:$4 sm:$0xff]  }
 0xa77   : > { %3562 = vmatmul.mubr.bf16.gmra.mrb[112].mxu1 %v8478_v22  ;;  %3799 = vmatmul.mubr.bf16.gmra.mrb[96].mxu0 %v8478_v22 }
 0xa78   : > { %3571 = vmatprep.mubr.bf16.mxu1 %v7566_v53  ;;  %3808 = vmatprep.mubr.bf16.mxu0 %v7566_v53 }
 0xa79   : > { %6274 = vmatpush3.bf16.msra.mxu1 %v7188_v11  ;;  %6314 = vmatpush3.bf16.msra.mxu0 %v7189_v6 }
 0xa7a   : > { %6275 = vmatprep.subr.bf16.mxu1 %v7190_v1  ;;  %6315 = vmatprep.subr.bf16.mxu0 %v7191_v28 }
 0xa7d   : > { %6276 = vmatpush3.bf16.msra.mxu1 %v7192_v26  ;;  %6316 = vmatpush3.bf16.msra.mxu0 %v7193_v39 }
 0xa7e   : > { %6277 = vmatprep.subr.bf16.mxu1 %v7194_v60  ;;  %6317 = vmatprep.subr.bf16.mxu0 %v7195_v54 }
 0xa7f   : > { %3572 = vmatmul.mubr.bf16.gmra.mrb[116].mxu1 %v8476_v25  ;;  %3809 = vmatmul.mubr.bf16.gmra.mrb[100].mxu0 %v8476_v25 }
 0xa81   : > { %6278 = vmatpush3.bf16.msra.mxu1 %v7196_v34  ;;  %6318 = vmatpush3.bf16.msra.mxu0 %v7197_v4 }
 0xa82   : > { %6279 = vmatprep.subr.bf16.mxu1 %v7198_v35  ;;  %6319 = vmatprep.subr.bf16.mxu0 %v7199_v7  ;;  %v7205_v35 = vld [vmem:[#allocation7 + $0x60] ss:$40 sps:$4 sm:$0xff]  }
 0xa85   : > { %6280 = vmatpush3.bf16.msra.mxu1 %v7200_v32  ;;  %6320 = vmatpush3.bf16.msra.mxu0 %v7201_v18 }
 0xa86   : > { %4305 = vmatprep.subr.bf16.mxu1 %v7204_v12 }
 0xb3a   : > { %v3543_v38 = vpop.f32.mrb[104].mxu1  ;;  %v3780_v0 = vpop.f32.mrb[88].mxu0 }
 0xb3b   : > { %v3544_v55 = vadd.f32 %v3543_v38, %v8500_v15  ;;  %v3781_v9 = vadd.f32 %v3780_v0, %v8503_v31  ;;  %v3545_v13 = vpop.f32.mrb[105].mxu1  ;;  %v3782_v36 = vpop.f32.mrb[89].mxu0 }
 0xb3c   : > { %v3546_v59 = vadd.f32 %v3545_v13, %v8506_v21  ;;  %v3783_v20 = vadd.f32 %v3782_v36, %v8509_v45  ;;  %v3547_v24 = vpop.f32.mrb[106].mxu1  ;;  %v3784_v48 = vpop.f32.mrb[90].mxu0 }
 0xb3d   : > { %v3548_v61 = vadd.f32 %v3547_v24, %v8500_v15  ;;  %v3785_v10 = vadd.f32 %v3784_v48, %v8503_v31  ;;  %v3549_v30 = vpop.f32.mrb[107].mxu1  ;;  %v3786_v33 = vpop.f32.mrb[91].mxu0  ;;  %v3582_v5 = vmax.f32 %v3544_v55, 0.0  ;;  %v3819_v52 = vmax.f32 %v3781_v9, 0.0  ;;  %v7208_v48 = vld [vmem:[#allocation7 + $0xb0] ss:$40 sps:$4 sm:$0xff]  }
 0xb3e   : > { %v3550_v19 = vadd.f32 %v3549_v30, %v8506_v21  ;;  %v3787_v50 = vadd.f32 %v3786_v33, %v8509_v45  ;;  %v3583_v46 = vmax.f32 %v3546_v59, 0.0  ;;  %v3820_v41 = vmax.f32 %v3783_v20, 0.0 }
 0xb3f   : > { %v3584_v56 = vmax.f32 %v3548_v61, 0.0  ;;  %v3821_v3 = vmax.f32 %v3785_v10, 0.0 }
 0xb40   : > { %v3585_v49 = vmax.f32 %v3550_v19, 0.0  ;;  %v3822_v27 = vmax.f32 %v3787_v50, 0.0  ;;  %v7213_v19 = vld [vmem:[#allocation7 + $0x104] ss:$40 sps:$4 sm:$0xff]  }
 0xb41   : > { %v3598_v14 = vpack.c.bf16 %v3584_v56, %v3582_v5  ;;  %v3835_v40 = vpack.c.bf16 %v3821_v3, %v3819_v52 }
 0xb42   : > { %v3599_v44 = vpack.c.bf16 %v3585_v49, %v3583_v46  ;;  %v3836_v23 = vpack.c.bf16 %v3822_v27, %v3820_v41  ;;  %v3553_v63 = vpop.f32.mrb[108].mxu1  ;;  %v3790_v51 = vpop.f32.mrb[92].mxu0 }
 0xb43   : > { %v3554_v37 = vadd.f32 %v3553_v63, %v8500_v15  ;;  %v3791_v57 = vadd.f32 %v3790_v51, %v8503_v31  ;;  %v3555_v16 = vpop.f32.mrb[109].mxu1  ;;  %v3792_v2 = vpop.f32.mrb[93].mxu0 }
 0xb44   : > { %v3556_v11 = vadd.f32 %v3555_v16, %v8506_v21  ;;  %v3793_v6 = vadd.f32 %v3792_v2, %v8509_v45  ;;  %v3557_v1 = vpop.f32.mrb[110].mxu1  ;;  %v3794_v28 = vpop.f32.mrb[94].mxu0  ;;  %4003 = vmatprep.mubr.bf16.mxu1 %v3836_v23  ;;  %4164 = vmatprep.mubr.bf16.mxu0 %v3599_v44 }
 0xb45   : > { %v3558_v26 = vadd.f32 %v3557_v1, %v8500_v15  ;;  %v3795_v39 = vadd.f32 %v3794_v28, %v8503_v31  ;;  %v3559_v60 = vpop.f32.mrb[111].mxu1  ;;  %v3796_v54 = vpop.f32.mrb[95].mxu0  ;;  %4004 = vmatmul.mubr.bf16.vlgmr.msra.gmra.mrb[120].mxu1 %v3835_v40  ;;  %4165 = vmatmul.mubr.bf16.vlgmr.msra.gmra.mrb[104].mxu0 %v3598_v14  ;;  %v3586_v7 = vmax.f32 %v3554_v37, 0.0  ;;  %v3823_v32 = vmax.f32 %v3791_v57, 0.0  ;;  %v7211_v40 = vld [vmem:[#allocation7 + $0x100] ss:$40 sps:$4 sm:$0xff]  }
 0xb46   : > { %v3560_v34 = vadd.f32 %v3559_v60, %v8506_v21  ;;  %v3797_v4 = vadd.f32 %v3796_v54, %v8509_v45  ;;  %4306 = vmatpush1.bf16.msra.mxu1 %v7202_v62  ;;  %v3587_v42 = vmax.f32 %v3556_v11, 0.0  ;;  %v3824_v38 = vmax.f32 %v3793_v6, 0.0  ;;  %v7216_v62 = vld [vmem:[#allocation7 + $0x154] ss:$40 sps:$4 sm:$0xff]  }
 0xb47   : > { %v3588_v18 = vmax.f32 %v3558_v26, 0.0  ;;  %v3825_v12 = vmax.f32 %v3795_v39, 0.0  ;;  %4307 = vmatprep.subr.bf16.mxu1 %v7207_v47  ;;  %v7214_v39 = vld [vmem:[#allocation7 + $0x150] ss:$40 sps:$4 sm:$0xff]  }
 0xb48   : > { %v3589_v0 = vmax.f32 %v3560_v34, 0.0  ;;  %v3826_v55 = vmax.f32 %v3797_v4, 0.0 }
 0xb49   : > { %v3600_v9 = vpack.c.bf16 %v3588_v18, %v3586_v7  ;;  %v3837_v13 = vpack.c.bf16 %v3825_v12, %v3823_v32 }
 0xb4a   : > { %v3601_v36 = vpack.c.bf16 %v3589_v0, %v3587_v42  ;;  %v3838_v59 = vpack.c.bf16 %v3826_v55, %v3824_v38  ;;  %v3563_v20 = vpop.f32.mrb[112].mxu1  ;;  %v3800_v24 = vpop.f32.mrb[96].mxu0  ;;  %4308 = vmatpush1.bf16.msra.mxu1 %v7205_v35  ;;  %v7219_v35 = vld [vmem:[#allocation7 + $0x1a4] ss:$40 sps:$4 sm:$0xff]  }
 0xb4b   : > { %v3564_v61 = vadd.f32 %v3563_v20, %v8500_v15  ;;  %v3801_v10 = vadd.f32 %v3800_v24, %v8503_v31  ;;  %v3565_v30 = vpop.f32.mrb[113].mxu1  ;;  %v3802_v33 = vpop.f32.mrb[97].mxu0  ;;  %4309 = vmatprep.subr.bf16.mxu1 %v7210_v8 }
 0xb4c   : > { %v3566_v50 = vadd.f32 %v3565_v30, %v8506_v21  ;;  %v3803_v5 = vadd.f32 %v3802_v33, %v8509_v45  ;;  %v3567_v52 = vpop.f32.mrb[114].mxu1  ;;  %v3804_v56 = vpop.f32.mrb[98].mxu0  ;;  %4011 = vmatprep.mubr.bf16.mxu1 %v3838_v59  ;;  %4172 = vmatprep.mubr.bf16.mxu0 %v3601_v36 }
 0xb4d   : > { %v3568_v3 = vadd.f32 %v3567_v52, %v8500_v15  ;;  %v3805_v46 = vadd.f32 %v3804_v56, %v8503_v31  ;;  %v3569_v41 = vpop.f32.mrb[115].mxu1  ;;  %v3806_v49 = vpop.f32.mrb[99].mxu0  ;;  %4012 = vmatmul.mubr.bf16.gmra.mrb[124].mxu1 %v3837_v13  ;;  %4173 = vmatmul.mubr.bf16.gmra.mrb[108].mxu0 %v3600_v9  ;;  %v3590_v44 = vmax.f32 %v3564_v61, 0.0  ;;  %v3827_v23 = vmax.f32 %v3801_v10, 0.0  ;;  %v7217_v13 = vld [vmem:[#allocation7 + $0x1a0] ss:$40 sps:$4 sm:$0xff]  }
 0xb4e   : > { %v3570_v27 = vadd.f32 %v3569_v41, %v8506_v21  ;;  %v3807_v14 = vadd.f32 %v3806_v49, %v8509_v45  ;;  %4310 = vmatpush1.bf16.msra.mxu1 %v7208_v48  ;;  %v3591_v37 = vmax.f32 %v3566_v50, 0.0  ;;  %v3828_v57 = vmax.f32 %v3803_v5, 0.0  ;;  %v7222_v48 = vld [vmem:[#allocation7 + $0x1f4] ss:$40 sps:$4 sm:$0xff]   ;;  %v7223_v5 = vld [vmem:[#allocation7 + $0x240] ss:$40 sps:$4 sm:$0xff]  }
 0xb4f   : > { %v3592_v63 = vmax.f32 %v3568_v3, 0.0  ;;  %v3829_v51 = vmax.f32 %v3805_v46, 0.0  ;;  %4311 = vmatprep.subr.bf16.mxu1 %v7213_v19  ;;  %v7228_v52 = vld [vmem:[#allocation7 + $0x1c] ss:$40 sps:$4 sm:$0xff]   ;;  %v7226_v56 = vld [vmem:[#allocation7 + $0x18] ss:$40 sps:$4 sm:$0xff]  }
 0xb50   : > { %v3593_v16 = vmax.f32 %v3570_v27, 0.0  ;;  %v3830_v2 = vmax.f32 %v3807_v14, 0.0  ;;  %v7231_v3 = vld [vmem:[#allocation7 + $0x6c] ss:$40 sps:$4 sm:$0xff]   ;;  %v7229_v46 = vld [vmem:[#allocation7 + $0x68] ss:$40 sps:$4 sm:$0xff]  }
 0xb51   : > { %v3602_v47 = vpack.c.bf16 %v3592_v63, %v3590_v44  ;;  %v3839_v11 = vpack.c.bf16 %v3829_v51, %v3827_v23  ;;  %v7234_v41 = vld [vmem:[#allocation7 + $0xbc] ss:$40 sps:$4 sm:$0xff]   ;;  %v7232_v49 = vld [vmem:[#allocation7 + $0xb8] ss:$40 sps:$4 sm:$0xff]   ;;  %v7237_v27 = vld [vmem:[#allocation7 + $0x10c] ss:$40 sps:$4 sm:$0xff]  }
 0xb52   : > { %v3603_v6 = vpack.c.bf16 %v3593_v16, %v3591_v37  ;;  %v3840_v1 = vpack.c.bf16 %v3830_v2, %v3828_v57  ;;  %v3573_v28 = vpop.f32.mrb[116].mxu1  ;;  %v3810_v26 = vpop.f32.mrb[100].mxu0  ;;  %4312 = vmatpush1.bf16.msra.mxu1 %v7211_v40  ;;  %v7235_v14 = vld [vmem:[#allocation7 + $0x108] ss:$40 sps:$4 sm:$0xff]   ;;  %v7240_v40 = vld [vmem:[#allocation7 + $0x15c] ss:$40 sps:$4 sm:$0xff]  }
 0xb53   : > { %v3574_v60 = vadd.f32 %v3573_v28, %v8500_v15  ;;  %v3811_v54 = vadd.f32 %v3810_v26, %v8503_v31  ;;  %v3575_v34 = vpop.f32.mrb[117].mxu1  ;;  %v3812_v4 = vpop.f32.mrb[101].mxu0  ;;  %4313 = vmatprep.subr.bf16.mxu1 %v7216_v62  ;;  %v7238_v44 = vld [vmem:[#allocation7 + $0x158] ss:$40 sps:$4 sm:$0xff]   ;;  %v7243_v23 = vld [vmem:[#allocation7 + $0x1ac] ss:$40 sps:$4 sm:$0xff]  }
 0xb54   : > { %v3576_v7 = vadd.f32 %v3575_v34, %v8506_v21  ;;  %v3813_v32 = vadd.f32 %v3812_v4, %v8509_v45  ;;  %v3577_v18 = vpop.f32.mrb[118].mxu1  ;;  %v3814_v12 = vpop.f32.mrb[102].mxu0  ;;  %4019 = vmatprep.mubr.bf16.mxu1 %v3840_v1  ;;  %4180 = vmatprep.mubr.bf16.mxu0 %v3603_v6  ;;  %v7241_v63 = vld [vmem:[#allocation7 + $0x1a8] ss:$40 sps:$4 sm:$0xff]   ;;  %v7246_v51 = vld [vmem:[#allocation7 + $0x1fc] ss:$40 sps:$4 sm:$0xff]  }
 0xb55   : > { %v3578_v8 = vadd.f32 %v3577_v18, %v8500_v15  ;;  %v3815_v42 = vadd.f32 %v3814_v12, %v8503_v31  ;;  %v3579_v38 = vpop.f32.mrb[119].mxu1  ;;  %v3816_v0 = vpop.f32.mrb[103].mxu0  ;;  %4020 = vmatmul.mubr.bf16.gmra.mrb[128].mxu1 %v3839_v11  ;;  %4181 = vmatmul.mubr.bf16.gmra.mrb[112].mxu0 %v3602_v47  ;;  %v3594_v36 = vmax.f32 %v3574_v60, 0.0  ;;  %v3831_v59 = vmax.f32 %v3811_v54, 0.0  ;;  %v7244_v62 = vld [vmem:[#allocation7 + $0x1f8] ss:$40 sps:$4 sm:$0xff]  }
 0xb56   : > { %v3580_v55 = vadd.f32 %v3579_v38, %v8506_v21  ;;  %v3817_v9 = vadd.f32 %v3816_v0, %v8509_v45  ;;  %4314 = vmatpush1.bf16.msra.mxu1 %v7214_v39  ;;  %v3595_v61 = vmax.f32 %v3576_v7, 0.0  ;;  %v3832_v15 = vmax.f32 %v3813_v32, 0.0  ;;  %v7220_v21 = vld [vmem:[#allocation7 + $0x1f0] ss:$40 sps:$4 sm:$0xff]   ;;  %v7225_v45 = vld [vmem:[#allocation7 + $0x244] ss:$40 sps:$4 sm:$0xff]  }
 0xb57   : > { %v3596_v20 = vmax.f32 %v3578_v8, 0.0  ;;  %v3833_v24 = vmax.f32 %v3815_v42, 0.0  ;;  %4315 = vmatprep.subr.bf16.mxu1 %v7219_v35  ;;  %v7249_v37 = vld [vmem:[#allocation7 + $0x24c] ss:$40 sps:$4 sm:$0xff]   ;;  %v7247_v57 = vld [vmem:[#allocation7 + $0x248] ss:$40 sps:$4 sm:$0xff]  }
 0xb58   : > { %v3597_v10 = vmax.f32 %v3580_v55, 0.0  ;;  %v3834_v31 = vmax.f32 %v3817_v9, 0.0  ;;  %v7252_v16 = vld [vmem:[#allocation7 + $0x24] ss:$40 sps:$4 sm:$0xff]   ;;  %v7250_v2 = vld [vmem:[#allocation7 + $0x20] ss:$40 sps:$4 sm:$0xff]  }
 0xb59   : > { %v3604_v30 = vpack.c.bf16 %v3596_v20, %v3594_v36  ;;  %v3841_v33 = vpack.c.bf16 %v3833_v24, %v3831_v59  ;;  %v7255_v47 = vld [vmem:[#allocation7 + $0x74] ss:$40 sps:$4 sm:$0xff]   ;;  %v7253_v11 = vld [vmem:[#allocation7 + $0x70] ss:$40 sps:$4 sm:$0xff]   ;;  %v7258_v6 = vld [vmem:[#allocation7 + $0xc4] ss:$40 sps:$4 sm:$0xff]  }
 0xb5a   : > { %v3605_v19 = vpack.c.bf16 %v3597_v10, %v3595_v61  ;;  %v3842_v50 = vpack.c.bf16 %v3834_v31, %v3832_v15  ;;  %4316 = vmatpush1.bf16.msra.mxu1 %v7217_v13  ;;  %v7256_v1 = vld [vmem:[#allocation7 + $0xc0] ss:$40 sps:$4 sm:$0xff]   ;;  %v7261_v28 = vld [vmem:[#allocation7 + $0x114] ss:$40 sps:$4 sm:$0xff]   ;;  %v7259_v26 = vld [vmem:[#allocation7 + $0x110] ss:$40 sps:$4 sm:$0xff]  }
 0xb5b   : > { %4317 = vmatprep.subr.bf16.mxu1 %v7222_v48  ;;  %v7264_v39 = vld [vmem:[#allocation7 + $0x164] ss:$40 sps:$4 sm:$0xff]   ;;  %v7262_v60 = vld [vmem:[#allocation7 + $0x160] ss:$40 sps:$4 sm:$0xff]   ;;  %v7267_v54 = vld [vmem:[#allocation7 + $0x1b4] ss:$40 sps:$4 sm:$0xff]  }
 0xb5c   : > { %4027 = vmatprep.mubr.bf16.mxu1 %v3842_v50  ;;  %4188 = vmatprep.mubr.bf16.mxu0 %v3605_v19  ;;  %v7265_v34 = vld [vmem:[#allocation7 + $0x1b0] ss:$40 sps:$4 sm:$0xff]   ;;  %v7270_v4 = vld [vmem:[#allocation7 + $0x204] ss:$40 sps:$4 sm:$0xff]   ;;  %v7268_v35 = vld [vmem:[#allocation7 + $0x200] ss:$40 sps:$4 sm:$0xff]  }
 0xb5d   : > { %4028 = vmatmul.mubr.bf16.gmra.mrb[132].mxu1 %v3841_v33  ;;  %4189 = vmatmul.mubr.bf16.gmra.mrb[116].mxu0 %v3604_v30  ;;  %v7273_v7 = vld [vmem:[#allocation7 + $0x254] ss:$40 sps:$4 sm:$0xff]   ;;  %v7271_v32 = vld [vmem:[#allocation7 + $0x250] ss:$40 sps:$4 sm:$0xff]   ;;  %v7274_v18 = vld [vmem:[#allocation8 + $0x140] sm:$0xff]  }
 0xb5e   : > { %4318 = vmatpush1.bf16.msra.mxu1 %v7220_v21  ;;  %4337 = vmatprep.mubr.bf16.mxu1 %v7566_v53  ;;  %v7275_v12 = vld [vmem:[#allocation8 + $0x100] sm:$0xff]   ;;  %v7276_v8 = vld [vmem:[#allocation8 + $0x148] sm:$0xff]   ;;  %v7278_v38 = vld [vmem:[#allocation8 + $0x150] sm:$0xff]  }
 0xb5f   : > { %4319 = vmatprep.subr.bf16.mxu1 %v7225_v45  ;;  %6345 = vmatprep.subr.bf16.mxu0 %v7274_v18  ;;  %v7277_v42 = vld [vmem:[#allocation8 + $0x108] sm:$0xff]   ;;  %v7279_v0 = vld [vmem:[#allocation8 + $0x110] sm:$0xff]   ;;  %v7280_v55 = vld [vmem:[#allocation8 + $0x158] sm:$0xff]  }
 0xb60   : > { %6346 = vmatpush3.bf16.msra.mxu0 %v7275_v12  ;;  %v7281_v9 = vld [vmem:[#allocation8 + $0x118] sm:$0xff]   ;;  %v7283_v13 = vld [vmem:[#allocation8 + $0x120] sm:$0xff]   ;;  %v7284_v36 = vld [vmem:[#allocation8 + $0x168] sm:$0xff]  }
 0xb61   : > { %6347 = vmatprep.subr.bf16.mxu0 %v7276_v8  ;;  %v7285_v59 = vld [vmem:[#allocation8 + $0x128] sm:$0xff]   ;;  %v7287_v20 = vld [vmem:[#allocation8 + $0x130] sm:$0xff]   ;;  %v7288_v24 = vld [vmem:[#allocation8 + $0x178] sm:$0xff]  }
 0xb62   : > { %4320 = vmatpush1.bf16.msra.mxu1 %v7223_v5  ;;  %v7289_v48 = vld [vmem:[#allocation8 + $0x138] sm:$0xff]   ;;  %v7290_v61 = vld [vmem:[#allocation8 + $0x1c0] sm:$0xff]  }
 0xb63   : > { %4711 = vmatprep.subr.bf16.mxu1 %v7228_v52 }
 0xb64   : > { %6348 = vmatpush3.bf16.msra.mxu0 %v7277_v42 }
 0xb65   : > { %4338 = vmatmul.mubr.bf16.vlgmr.msra.gmra.mrb[136].mxu1 %v8466_v58  ;;  %6349 = vmatprep.subr.bf16.mxu0 %v7278_v38 }
 0xb66   : > { %4712 = vmatpush1.bf16.msra.mxu1 %v7226_v56  ;;  %4347 = vmatprep.mubr.bf16.mxu1 %v7566_v53 }
 0xb67   : > { %4713 = vmatprep.subr.bf16.mxu1 %v7231_v3 }
 0xb68   : > { %6350 = vmatpush3.bf16.msra.mxu0 %v7279_v0  ;;  %v4213_v0 = vld [vmem:[%s8718_s5 + $0x4] sm:$0x3] }
 0xb69   : > { %6351 = vmatprep.subr.bf16.mxu0 %v7280_v55 }
 0xb6a   : > { %4714 = vmatpush1.bf16.msra.mxu1 %v7229_v46 }
 0xb6b   : > { %4715 = vmatprep.subr.bf16.mxu1 %v7234_v41 }
 0xb6c   : > { %6352 = vmatpush3.bf16.msra.mxu0 %v7281_v9 }
 0xb6d   : > { %4348 = vmatmul.mubr.bf16.gmra.mrb[140].mxu1 %v8464_v29 }
 0xb6e   : > { %4716 = vmatpush1.bf16.msra.mxu1 %v7232_v49  ;;  %4357 = vmatprep.mubr.bf16.mxu1 %v7566_v53 }
 0xb6f   : > { %4717 = vmatprep.subr.bf16.mxu1 %v7237_v27 }
 0xb72   : > { %4718 = vmatpush1.bf16.msra.mxu1 %v7235_v14 }
 0xb73   : > { %4719 = vmatprep.subr.bf16.mxu1 %v7240_v40 }
 0xb75   : > { %4358 = vmatmul.mubr.bf16.gmra.mrb[144].mxu1 %v8478_v22 }
 0xb76   : > { %4720 = vmatpush1.bf16.msra.mxu1 %v7238_v44  ;;  %4367 = vmatprep.mubr.bf16.mxu1 %v7566_v53 }
 0xb77   : > { %4721 = vmatprep.subr.bf16.mxu1 %v7243_v23 }
 0xb7a   : > { %4722 = vmatpush1.bf16.msra.mxu1 %v7241_v63 }
 0xb7b   : > { %4723 = vmatprep.subr.bf16.mxu1 %v7246_v51 }
 0xb7d   : > { %4368 = vmatmul.mubr.bf16.gmra.mrb[148].mxu1 %v8476_v25 }
 0xb7e   : > { %4724 = vmatpush1.bf16.msra.mxu1 %v7244_v62  ;;  %4743 = vmatprep.mubr.bf16.mxu1 %v7566_v53 }
 0xb7f   : > { %4725 = vmatprep.subr.bf16.mxu1 %v7249_v37 }
 0xb82   : > { %4726 = vmatpush1.bf16.msra.mxu1 %v7247_v57 }
 0xb83   : > { %5117 = vmatprep.subr.bf16.mxu1 %v7252_v16 }
 0xb85   : > { %4744 = vmatmul.mubr.bf16.vlgmr.msra.gmra.mrb[152].mxu1 %v8466_v58 }
 0xb86   : > { %5118 = vmatpush1.bf16.msra.mxu1 %v7250_v2  ;;  %4753 = vmatprep.mubr.bf16.mxu1 %v7566_v53 }
 0xb87   : > { %5119 = vmatprep.subr.bf16.mxu1 %v7255_v47 }
 0xb8a   : > { %5120 = vmatpush1.bf16.msra.mxu1 %v7253_v11 }
 0xb8b   : > { %5121 = vmatprep.subr.bf16.mxu1 %v7258_v6 }
 0xb8d   : > { %4754 = vmatmul.mubr.bf16.gmra.mrb[156].mxu1 %v8464_v29 }
 0xb8e   : > { %5122 = vmatpush1.bf16.msra.mxu1 %v7256_v1  ;;  %4763 = vmatprep.mubr.bf16.mxu1 %v7566_v53 }
 0xb8f   : > { %5123 = vmatprep.subr.bf16.mxu1 %v7261_v28 }
 0xb92   : > { %5124 = vmatpush1.bf16.msra.mxu1 %v7259_v26 }
 0xb93   : > { %5125 = vmatprep.subr.bf16.mxu1 %v7264_v39 }
 0xb95   : > { %4764 = vmatmul.mubr.bf16.gmra.mrb[160].mxu1 %v8478_v22 }
 0xb96   : > { %5126 = vmatpush1.bf16.msra.mxu1 %v7262_v60  ;;  %4773 = vmatprep.mubr.bf16.mxu1 %v7566_v53 }
 0xb97   : > { %5127 = vmatprep.subr.bf16.mxu1 %v7267_v54 }
 0xb9a   : > { %5128 = vmatpush1.bf16.msra.mxu1 %v7265_v34 }
 0xb9b   : > { %5129 = vmatprep.subr.bf16.mxu1 %v7270_v4 }
 0xb9d   : > { %4774 = vmatmul.mubr.bf16.gmra.mrb[164].mxu1 %v8476_v25 }
 0xb9e   : > { %5130 = vmatpush1.bf16.msra.mxu1 %v7268_v35  ;;  %5149 = vmatprep.mubr.bf16.mxu1 %v7566_v53 }
 0xb9f   : > { %5131 = vmatprep.subr.bf16.mxu1 %v7273_v7 }
 0xba2   : > { %5132 = vmatpush1.bf16.msra.mxu1 %v7271_v32 }
 0xba5   : > { %5150 = vmatmul.mubr.bf16.vlgmr.msra.gmra.mrb[168].mxu1 %v8466_v58  ;;  %v7282_v58 = vld [vmem:[#allocation8 + $0x160] sm:$0xff]  }
 0xba6   : > { %5159 = vmatprep.mubr.bf16.mxu1 %v7566_v53  ;;  %6353 = vmatprep.subr.bf16.mxu0 %v7282_v58 }
 0xba7   : > { %6354 = vmatpush3.bf16.msra.mxu0 %v7283_v13 }
 0xba8   : > { %6355 = vmatprep.subr.bf16.mxu0 %v7284_v36 }
 0xbab   : > { %6356 = vmatpush3.bf16.msra.mxu0 %v7285_v59  ;;  %v8585_v59 = vrot.slane %v4213_v0, %v8144_v43 }
 0xbad   : > { %5160 = vmatmul.mubr.bf16.gmra.mrb[172].mxu1 %v8464_v29  ;;  %v7286_v29 = vld [vmem:[#allocation8 + $0x170] sm:$0xff]  }
 0xbae   : > { %5169 = vmatprep.mubr.bf16.mxu1 %v7566_v53  ;;  %6357 = vmatprep.subr.bf16.mxu0 %v7286_v29 }
 0xbaf   : > { %6358 = vmatpush3.bf16.msra.mxu0 %v7287_v20  ;;  %v8590_v20 = vrot.slane %v4213_v0, %v8491_v17 }
 0xbb0   : > { %6359 = vmatprep.subr.bf16.mxu0 %v7288_v24 }
 0xbb3   : > { %6360 = vmatpush3.bf16.msra.mxu0 %v7289_v48 }
 0xbb4   : > { %6385 = vmatprep.subr.bf16.mxu0 %v7290_v61 }
 0xbb5   : > { %5170 = vmatmul.mubr.bf16.gmra.mrb[176].mxu1 %v8478_v22 }
 0xbb6   : > { %5179 = vmatprep.mubr.bf16.mxu1 %v7566_v53 }
 0xbbd   : > { %5180 = vmatmul.mubr.bf16.gmra.mrb[180].mxu1 %v8476_v25 }
 0xc18   : > { %v6281_v22 = vpop.f32.mrb[120].mxu1  ;;  %v6321_v15 = vpop.f32.mrb[104].mxu0 }
 0xc19   : > { %v6282_v10 = vpop.f32.mrb[121].mxu1  ;;  %v6322_v53 = vpop.f32.mrb[105].mxu0 }
 0xc1a   : > { %v6283_v31 = vadd.f32 %v6282_v10, %v6281_v22  ;;  %v6323_v30 = vadd.f32 %v6322_v53, %v6321_v15  ;;  %v6284_v33 = vpop.f32.mrb[122].mxu1  ;;  %v6324_v19 = vpop.f32.mrb[106].mxu0 }
 0xc1b   : > { %v6285_v50 = vpop.f32.mrb[123].mxu1  ;;  %v6325_v21 = vpop.f32.mrb[107].mxu0 }
 0xc1c   : > { %v8567_v45 = vadd.f32 %v6323_v30, %v6283_v31  ;;  %v6286_v25 = vadd.f32 %v6285_v50, %v6284_v33  ;;  %v6326_v5 = vadd.f32 %v6325_v21, %v6324_v19 }
 0xc1e   : > { %v8569_v52 = vadd.f32 %v6326_v5, %v6286_v25 }
 0xc20   : > { %v6287_v56 = vpop.f32.mrb[124].mxu1  ;;  %v6327_v3 = vpop.f32.mrb[108].mxu0 }
 0xc21   : > { %v6288_v46 = vpop.f32.mrb[125].mxu1  ;;  %v6328_v41 = vpop.f32.mrb[109].mxu0 }
 0xc22   : > { %v6289_v49 = vadd.f32 %v6288_v46, %v6287_v56  ;;  %v6329_v27 = vadd.f32 %v6328_v41, %v6327_v3  ;;  %v6290_v14 = vpop.f32.mrb[126].mxu1  ;;  %v6330_v40 = vpop.f32.mrb[110].mxu0  ;;  %v7291_v56 = vld [vmem:[#allocation8 + $0x180] sm:$0xff]   ;;  %v7292_v41 = vld [vmem:[#allocation8 + $0x1c8] sm:$0xff]  }
 0xc23   : > { %v6291_v44 = vpop.f32.mrb[127].mxu1  ;;  %v6331_v23 = vpop.f32.mrb[111].mxu0 }
 0xc24   : > { %v8571_v63 = vadd.f32 %v6329_v27, %v6289_v49  ;;  %v6292_v51 = vadd.f32 %v6291_v44, %v6290_v14  ;;  %v6332_v62 = vadd.f32 %v6331_v23, %v6330_v40  ;;  %v7293_v23 = vld [vmem:[#allocation8 + $0x188] sm:$0xff]  }
 0xc26   : > { %v8573_v37 = vadd.f32 %v6332_v62, %v6292_v51 }
 0xc28   : > { %v6293_v57 = vpop.f32.mrb[128].mxu1  ;;  %v6333_v16 = vpop.f32.mrb[112].mxu0 }
 0xc29   : > { %v6294_v2 = vpop.f32.mrb[129].mxu1  ;;  %v6334_v47 = vpop.f32.mrb[113].mxu0 }
 0xc2a   : > { %v6295_v11 = vadd.f32 %v6294_v2, %v6293_v57  ;;  %v6335_v6 = vadd.f32 %v6334_v47, %v6333_v16  ;;  %v6296_v1 = vpop.f32.mrb[130].mxu1  ;;  %v6336_v28 = vpop.f32.mrb[114].mxu0  ;;  %v7294_v57 = vld [vmem:[#allocation8 + $0x1d0] sm:$0xff]  }
 0xc2b   : > { %v6297_v26 = vpop.f32.mrb[131].mxu1  ;;  %v6337_v39 = vpop.f32.mrb[115].mxu0 }
 0xc2c   : > { %v8575_v60 = vadd.f32 %v6335_v6, %v6295_v11  ;;  %v6298_v54 = vadd.f32 %v6297_v26, %v6296_v1  ;;  %v6338_v34 = vadd.f32 %v6337_v39, %v6336_v28  ;;  %v7295_v1 = vld [vmem:[#allocation8 + $0x190] sm:$0xff]   ;;  %v7296_v39 = vld [vmem:[#allocation8 + $0x1d8] sm:$0xff]  }
 0xc2e   : > { %v8577_v4 = vadd.f32 %v6338_v34, %v6298_v54 }
 0xc30   : > { %v6299_v35 = vpop.f32.mrb[132].mxu1  ;;  %v6339_v7 = vpop.f32.mrb[116].mxu0 }
 0xc31   : > { %v6300_v32 = vpop.f32.mrb[133].mxu1  ;;  %v6340_v18 = vpop.f32.mrb[117].mxu0 }
 0xc32   : > { %v6301_v12 = vadd.f32 %v6300_v32, %v6299_v35  ;;  %v6341_v8 = vadd.f32 %v6340_v18, %v6339_v7  ;;  %v6302_v42 = vpop.f32.mrb[134].mxu1  ;;  %v6342_v38 = vpop.f32.mrb[118].mxu0  ;;  %v7297_v18 = vld [vmem:[#allocation8 + $0x198] sm:$0xff]  }
 0xc33   : > { %v6303_v55 = vpop.f32.mrb[135].mxu1  ;;  %v6343_v9 = vpop.f32.mrb[119].mxu0 }
 0xc34   : > { %v8582_v58 = vadd.f32 %v6341_v8, %v6301_v12  ;;  %v6304_v13 = vadd.f32 %v6303_v55, %v6302_v42  ;;  %v6344_v36 = vadd.f32 %v6343_v9, %v6342_v38  ;;  %v7298_v42 = vld [vmem:[#allocation8 + $0x1e0] sm:$0xff]  }
 0xc36   : > { %v8587_v29 = vadd.f32 %v6344_v36, %v6304_v13  ;;  %v7299_v36 = vld [vmem:[#allocation8 + $0x1a0] sm:$0xff]  }
 0xc38   : > { %v4339_v24 = vpop.f32.mrb[136].mxu1 }
 0xc39   : > { %v4340_v48 = vadd.f32 %v4339_v24, %v8585_v59  ;;  %v4341_v61 = vpop.f32.mrb[137].mxu1 }
 0xc3a   : > { %v4342_v22 = vadd.f32 %v4341_v61, %v8590_v20  ;;  %v4343_v15 = vpop.f32.mrb[138].mxu1  ;;  %v7300_v61 = vld [vmem:[#allocation8 + $0x1e8] sm:$0xff]  }
 0xc3b   : > { %v4344_v10 = vadd.f32 %v4343_v15, %v8585_v59  ;;  %v4345_v53 = vpop.f32.mrb[139].mxu1  ;;  %v4378_v30 = vmax.f32 %v4340_v48, 0.0 }
 0xc3c   : > { %v4346_v31 = vadd.f32 %v4345_v53, %v8590_v20  ;;  %v4379_v19 = vmax.f32 %v4342_v22, 0.0 }
 0xc3d   : > { %v4380_v33 = vmax.f32 %v4344_v10, 0.0  ;;  %v4619_v10 = vld [vmem:[%s8718_s5 + $0x6] sm:$0x3] }
 0xc3e   : > { %v4381_v50 = vmax.f32 %v4346_v31, 0.0 }
 0xc3f   : > { %v4394_v21 = vpack.c.bf16 %v4380_v33, %v4378_v30  ;;  %v7301_v33 = vld [vmem:[#allocation8 + $0x1a8] sm:$0xff]  }
 0xc40   : > { %v4395_v25 = vpack.c.bf16 %v4381_v50, %v4379_v19  ;;  %v4349_v5 = vpop.f32.mrb[140].mxu1 }
 0xc41   : > { %v4350_v3 = vadd.f32 %v4349_v5, %v8585_v59  ;;  %v4351_v46 = vpop.f32.mrb[141].mxu1 }
 0xc42   : > { %v4352_v49 = vadd.f32 %v4351_v46, %v8590_v20  ;;  %v4353_v27 = vpop.f32.mrb[142].mxu1  ;;  %4562 = vmatprep.mubr.bf16.mxu0 %v4395_v25  ;;  %v7302_v25 = vld [vmem:[#allocation8 + $0x1f0] sm:$0xff]  }
 0xc43   : > { %v4354_v14 = vadd.f32 %v4353_v27, %v8585_v59  ;;  %v4355_v40 = vpop.f32.mrb[143].mxu1  ;;  %4563 = vmatmul.mubr.bf16.vlgmr.msra.gmra.mrb[120].mxu0 %v4394_v21  ;;  %v4382_v51 = vmax.f32 %v4350_v3, 0.0  ;;  %v8612_v21 = vrot.slane %v4619_v10, %v8144_v43  ;;  %v8615_v3 = vrot.slane %v4619_v10, %v8491_v17  ;;  %v7312_v10 = vld [vmem:[#allocation8 + $0x258] sm:$0xff]  }
 0xc44   : > { %v4356_v44 = vadd.f32 %v4355_v40, %v8590_v20  ;;  %6386 = vmatpush3.bf16.msra.mxu0 %v7291_v56  ;;  %v4383_v16 = vmax.f32 %v4352_v49, 0.0  ;;  %v7303_v49 = vld [vmem:[#allocation8 + $0x1b0] sm:$0xff]  }
 0xc45   : > { %v4384_v62 = vmax.f32 %v4354_v14, 0.0  ;;  %6387 = vmatprep.subr.bf16.mxu0 %v7292_v41  ;;  %v7304_v14 = vld [vmem:[#allocation8 + $0x1f8] sm:$0xff]  }
 0xc46   : > { %v4385_v2 = vmax.f32 %v4356_v44, 0.0 }
 0xc47   : > { %v4396_v47 = vpack.c.bf16 %v4384_v62, %v4382_v51 }
 0xc48   : > { %v4397_v11 = vpack.c.bf16 %v4385_v2, %v4383_v16  ;;  %v4359_v6 = vpop.f32.mrb[144].mxu1  ;;  %6388 = vmatpush3.bf16.msra.mxu0 %v7293_v23 }
 0xc49   : > { %v4360_v28 = vadd.f32 %v4359_v6, %v8585_v59  ;;  %v4361_v26 = vpop.f32.mrb[145].mxu1  ;;  %6389 = vmatprep.subr.bf16.mxu0 %v7294_v57  ;;  %v7305_v57 = vld [vmem:[#allocation8 + $0x1b8] sm:$0xff]  }
 0xc4a   : > { %v4362_v54 = vadd.f32 %v4361_v26, %v8590_v20  ;;  %v4363_v34 = vpop.f32.mrb[146].mxu1  ;;  %4570 = vmatprep.mubr.bf16.mxu0 %v4397_v11 }
 0xc4b   : > { %v4364_v35 = vadd.f32 %v4363_v34, %v8585_v59  ;;  %v4365_v7 = vpop.f32.mrb[147].mxu1  ;;  %4571 = vmatmul.mubr.bf16.gmra.mrb[124].mxu0 %v4396_v47  ;;  %v4386_v12 = vmax.f32 %v4360_v28, 0.0  ;;  %v7306_v47 = vld [vmem:[#allocation8 + $0x240] sm:$0xff]  }
 0xc4c   : > { %v4366_v32 = vadd.f32 %v4365_v7, %v8590_v20  ;;  %6390 = vmatpush3.bf16.msra.mxu0 %v7295_v1  ;;  %v4387_v38 = vmax.f32 %v4362_v54, 0.0 }
 0xc4d   : > { %v4388_v8 = vmax.f32 %v4364_v35, 0.0  ;;  %6391 = vmatprep.subr.bf16.mxu0 %v7296_v39  ;;  %v7307_v39 = vld [vmem:[#allocation8 + $0x200] sm:$0xff]   ;;  %v7308_v35 = vld [vmem:[#allocation8 + $0x248] sm:$0xff]  }
 0xc4e   : > { %v4389_v0 = vmax.f32 %v4366_v32, 0.0 }
 0xc4f   : > { %v4398_v55 = vpack.c.bf16 %v4388_v8, %v4386_v12 }
 0xc50   : > { %v4399_v9 = vpack.c.bf16 %v4389_v0, %v4387_v38  ;;  %v4369_v13 = vpop.f32.mrb[148].mxu1  ;;  %6392 = vmatpush3.bf16.msra.mxu0 %v7297_v18 }
 0xc51   : > { %v4370_v24 = vadd.f32 %v4369_v13, %v8585_v59  ;;  %v4371_v48 = vpop.f32.mrb[149].mxu1  ;;  %6393 = vmatprep.subr.bf16.mxu0 %v7298_v42  ;;  %v7309_v42 = vld [vmem:[#allocation8 + $0x208] sm:$0xff]  }
 0xc52   : > { %v4372_v22 = vadd.f32 %v4371_v48, %v8590_v20  ;;  %v4373_v15 = vpop.f32.mrb[150].mxu1  ;;  %4578 = vmatprep.mubr.bf16.mxu0 %v4399_v9 }
 0xc53   : > { %v4374_v53 = vadd.f32 %v4373_v15, %v8585_v59  ;;  %v4375_v31 = vpop.f32.mrb[151].mxu1  ;;  %4579 = vmatmul.mubr.bf16.gmra.mrb[128].mxu0 %v4398_v55  ;;  %v4390_v19 = vmax.f32 %v4370_v24, 0.0  ;;  %v7310_v55 = vld [vmem:[#allocation8 + $0x250] sm:$0xff]  }
 0xc54   : > { %v4376_v30 = vadd.f32 %v4375_v31, %v8590_v20  ;;  %6394 = vmatpush3.bf16.msra.mxu0 %v7299_v36  ;;  %v4391_v5 = vmax.f32 %v4372_v22, 0.0 }
 0xc55   : > { %v4392_v50 = vmax.f32 %v4374_v53, 0.0  ;;  %6395 = vmatprep.subr.bf16.mxu0 %v7300_v61  ;;  %v7311_v61 = vld [vmem:[#allocation8 + $0x210] sm:$0xff]  }
 0xc56   : > { %v4393_v56 = vmax.f32 %v4376_v30, 0.0 }
 0xc57   : > { %v4400_v46 = vpack.c.bf16 %v4392_v50, %v4390_v19  ;;  %v7313_v50 = vld [vmem:[#allocation8 + $0x218] sm:$0xff]  }
 0xc58   : > { %v4401_v59 = vpack.c.bf16 %v4393_v56, %v4391_v5  ;;  %v4745_v41 = vpop.f32.mrb[152].mxu1  ;;  %6396 = vmatpush3.bf16.msra.mxu0 %v7301_v33  ;;  %v7314_v56 = vld [vmem:[#allocation8 + $0x260] sm:$0xff]  }
 0xc59   : > { %v4746_v20 = vadd.f32 %v4745_v41, %v8612_v21  ;;  %v4747_v27 = vpop.f32.mrb[153].mxu1  ;;  %6397 = vmatprep.subr.bf16.mxu0 %v7302_v25 }
 0xc5a   : > { %v4748_v40 = vadd.f32 %v4747_v27, %v8615_v3  ;;  %4586 = vmatprep.mubr.bf16.mxu0 %v4401_v59  ;;  %v4749_v44 = vpop.f32.mrb[154].mxu1  ;;  %v7315_v27 = vld [vmem:[#allocation8 + $0x220] sm:$0xff]  }
 0xc5b   : > { %v4750_v23 = vadd.f32 %v4749_v44, %v8612_v21  ;;  %4587 = vmatmul.mubr.bf16.gmra.mrb[132].mxu0 %v4400_v46  ;;  %v4751_v51 = vpop.f32.mrb[155].mxu1  ;;  %v4784_v16 = vmax.f32 %v4746_v20, 0.0  ;;  %v7316_v44 = vld [vmem:[#allocation8 + $0x268] sm:$0xff]  }
 0xc5c   : > { %v4752_v62 = vadd.f32 %v4751_v51, %v8615_v3  ;;  %6398 = vmatpush3.bf16.msra.mxu0 %v7303_v49  ;;  %v4785_v11 = vmax.f32 %v4748_v40, 0.0 }
 0xc5d   : > { %v4786_v2 = vmax.f32 %v4750_v23, 0.0  ;;  %6399 = vmatprep.subr.bf16.mxu0 %v7304_v14 }
 0xc5e   : > { %v4787_v6 = vmax.f32 %v4752_v62, 0.0  ;;  %v5025_v62 = vld [vmem:[%s8718_s5 + $0x8] sm:$0x3] }
 0xc5f   : > { %v4800_v1 = vpack.c.bf16 %v4786_v2, %v4784_v16 }
 0xc60   : > { %v4801_v28 = vpack.c.bf16 %v4787_v6, %v4785_v11  ;;  %v4755_v26 = vpop.f32.mrb[156].mxu1  ;;  %6400 = vmatpush3.bf16.msra.mxu0 %v7305_v57 }
 0xc61   : > { %v4756_v54 = vadd.f32 %v4755_v26, %v8612_v21  ;;  %v4757_v34 = vpop.f32.mrb[157].mxu1  ;;  %6425 = vmatprep.subr.bf16.mxu0 %v7306_v47  ;;  %v7317_v47 = vld [vmem:[#allocation8 + $0x228] sm:$0xff]  }
 0xc62   : > { %v4758_v7 = vadd.f32 %v4757_v34, %v8615_v3  ;;  %v4759_v32 = vpop.f32.mrb[158].mxu1  ;;  %4968 = vmatprep.mubr.bf16.mxu0 %v4801_v28  ;;  %v7318_v28 = vld [vmem:[#allocation8 + $0x270] sm:$0xff]  }
 0xc63   : > { %v4760_v18 = vadd.f32 %v4759_v32, %v8612_v21  ;;  %v4761_v12 = vpop.f32.mrb[159].mxu1  ;;  %4969 = vmatmul.mubr.bf16.vlgmr.msra.gmra.mrb[136].mxu0 %v4800_v1  ;;  %v4788_v38 = vmax.f32 %v4756_v54, 0.0  ;;  %v8637_v1 = vrot.slane %v5025_v62, %v8144_v43  ;;  %v8640_v54 = vrot.slane %v5025_v62, %v8491_v17 }
 0xc64   : > { %v4762_v8 = vadd.f32 %v4761_v12, %v8615_v3  ;;  %6426 = vmatpush3.bf16.msra.mxu0 %v7307_v39  ;;  %v4789_v9 = vmax.f32 %v4758_v7, 0.0  ;;  %v7319_v7 = vld [vmem:[#allocation8 + $0x230] sm:$0xff]  }
 0xc65   : > { %v4790_v0 = vmax.f32 %v4760_v18, 0.0  ;;  %6427 = vmatprep.subr.bf16.mxu0 %v7308_v35  ;;  %v7320_v18 = vld [vmem:[#allocation8 + $0x278] sm:$0xff]  }
 0xc66   : > { %v4791_v13 = vmax.f32 %v4762_v8, 0.0 }
 0xc67   : > { %v4802_v36 = vpack.c.bf16 %v4790_v0, %v4788_v38  ;;  %v7321_v38 = vld [vmem:[#allocation8 + $0x238] sm:$0xff]  }
 0xc68   : > { %v4803_v24 = vpack.c.bf16 %v4791_v13, %v4789_v9  ;;  %v4765_v48 = vpop.f32.mrb[160].mxu1  ;;  %6428 = vmatpush3.bf16.msra.mxu0 %v7309_v42 }
 0xc69   : > { %v4766_v22 = vadd.f32 %v4765_v48, %v8612_v21  ;;  %v4767_v15 = vpop.f32.mrb[161].mxu1  ;;  %6429 = vmatprep.subr.bf16.mxu0 %v7310_v55 }
 0xc6a   : > { %v4768_v53 = vadd.f32 %v4767_v15, %v8615_v3  ;;  %v4769_v31 = vpop.f32.mrb[162].mxu1  ;;  %4976 = vmatprep.mubr.bf16.mxu0 %v4803_v24 }
 0xc6b   : > { %v4770_v30 = vadd.f32 %v4769_v31, %v8612_v21  ;;  %v4771_v33 = vpop.f32.mrb[163].mxu1  ;;  %4977 = vmatmul.mubr.bf16.gmra.mrb[140].mxu0 %v4802_v36  ;;  %v4792_v25 = vmax.f32 %v4766_v22, 0.0 }
 0xc6c   : > { %v4772_v19 = vadd.f32 %v4771_v33, %v8615_v3  ;;  %6430 = vmatpush3.bf16.msra.mxu0 %v7311_v61  ;;  %v4793_v46 = vmax.f32 %v4768_v53, 0.0 }
 0xc6d   : > { %v4794_v5 = vmax.f32 %v4770_v30, 0.0  ;;  %6431 = vmatprep.subr.bf16.mxu0 %v7312_v10 }
 0xc6e   : > { %v4795_v59 = vmax.f32 %v4772_v19, 0.0 }
 0xc6f   : > { %v4804_v41 = vpack.c.bf16 %v4794_v5, %v4792_v25 }
 0xc70   : > { %v4805_v49 = vpack.c.bf16 %v4795_v59, %v4793_v46  ;;  %v4775_v20 = vpop.f32.mrb[164].mxu1  ;;  %6432 = vmatpush3.bf16.msra.mxu0 %v7313_v50 }
 0xc71   : > { %v4776_v14 = vadd.f32 %v4775_v20, %v8612_v21  ;;  %v4777_v40 = vpop.f32.mrb[165].mxu1  ;;  %6433 = vmatprep.subr.bf16.mxu0 %v7314_v56 }
 0xc72   : > { %v4778_v23 = vadd.f32 %v4777_v40, %v8615_v3  ;;  %v4779_v51 = vpop.f32.mrb[166].mxu1  ;;  %4984 = vmatprep.mubr.bf16.mxu0 %v4805_v49 }
 0xc73   : > { %v4780_v57 = vadd.f32 %v4779_v51, %v8612_v21  ;;  %v4781_v16 = vpop.f32.mrb[167].mxu1  ;;  %4985 = vmatmul.mubr.bf16.gmra.mrb[144].mxu0 %v4804_v41  ;;  %v4796_v11 = vmax.f32 %v4776_v14, 0.0 }
 0xc74   : > { %v4782_v2 = vadd.f32 %v4781_v16, %v8615_v3  ;;  %6434 = vmatpush3.bf16.msra.mxu0 %v7315_v27  ;;  %v4797_v26 = vmax.f32 %v4778_v23, 0.0 }
 0xc75   : > { %v4798_v6 = vmax.f32 %v4780_v57, 0.0  ;;  %6435 = vmatprep.subr.bf16.mxu0 %v7316_v44 }
 0xc76   : > { %v4799_v39 = vmax.f32 %v4782_v2, 0.0 }
 0xc77   : > { %v4806_v34 = vpack.c.bf16 %v4798_v6, %v4796_v11 }
 0xc78   : > { %v4807_v21 = vpack.c.bf16 %v4799_v39, %v4797_v26  ;;  %v5151_v35 = vpop.f32.mrb[168].mxu1  ;;  %6436 = vmatpush3.bf16.msra.mxu0 %v7317_v47 }
 0xc79   : > { %v5152_v3 = vadd.f32 %v5151_v35, %v8637_v1  ;;  %v5153_v32 = vpop.f32.mrb[169].mxu1  ;;  %6437 = vmatprep.subr.bf16.mxu0 %v7318_v28 }
 0xc7a   : > { %v5154_v12 = vadd.f32 %v5153_v32, %v8640_v54  ;;  %4992 = vmatprep.mubr.bf16.mxu0 %v4807_v21  ;;  %v5155_v43 = vpop.f32.mrb[170].mxu1 }
 0xc7b   : > { %v5156_v8 = vadd.f32 %v5155_v43, %v8637_v1  ;;  %4993 = vmatmul.mubr.bf16.gmra.mrb[148].mxu0 %v4806_v34  ;;  %v5157_v42 = vpop.f32.mrb[171].mxu1  ;;  %v5190_v0 = vmax.f32 %v5152_v3, 0.0 }
 0xc7c   : > { %v5158_v17 = vadd.f32 %v5157_v42, %v8640_v54  ;;  %6438 = vmatpush3.bf16.msra.mxu0 %v7319_v7  ;;  %v5191_v9 = vmax.f32 %v5154_v12, 0.0 }
 0xc7d   : > { %v5192_v55 = vmax.f32 %v5156_v8, 0.0  ;;  %6439 = vmatprep.subr.bf16.mxu0 %v7320_v18 }
 0xc7e   : > { %v5193_v13 = vmax.f32 %v5158_v17, 0.0 }
 0xc7f   : > { %v5206_v36 = vpack.c.bf16 %v5192_v55, %v5190_v0 }
 0xc80   : > { %v5207_v24 = vpack.c.bf16 %v5193_v13, %v5191_v9  ;;  %v5161_v48 = vpop.f32.mrb[172].mxu1  ;;  %6440 = vmatpush3.bf16.msra.mxu0 %v7321_v38 }
 0xc81   : > { %v5162_v61 = vadd.f32 %v5161_v48, %v8637_v1  ;;  %v5163_v22 = vpop.f32.mrb[173].mxu1 }
 0xc82   : > { %v5164_v15 = vadd.f32 %v5163_v22, %v8640_v54  ;;  %v5165_v10 = vpop.f32.mrb[174].mxu1  ;;  %5374 = vmatprep.mubr.bf16.mxu0 %v5207_v24 }
 0xc83   : > { %v5166_v53 = vadd.f32 %v5165_v10, %v8637_v1  ;;  %v5167_v31 = vpop.f32.mrb[175].mxu1  ;;  %5375 = vmatmul.mubr.bf16.vlgmr.msra.gmra.mrb[152].mxu0 %v5206_v36  ;;  %v5194_v33 = vmax.f32 %v5162_v61, 0.0 }
 0xc84   : > { %v5168_v30 = vadd.f32 %v5167_v31, %v8640_v54  ;;  %v5195_v50 = vmax.f32 %v5164_v15, 0.0 }
 0xc85   : > { %v5196_v19 = vmax.f32 %v5166_v53, 0.0 }
 0xc86   : > { %v5197_v25 = vmax.f32 %v5168_v30, 0.0 }
 0xc87   : > { %v5208_v5 = vpack.c.bf16 %v5196_v19, %v5194_v33 }
 0xc88   : > { %v5209_v56 = vpack.c.bf16 %v5197_v25, %v5195_v50  ;;  %v5171_v46 = vpop.f32.mrb[176].mxu1 }
 0xc89   : > { %v5172_v59 = vadd.f32 %v5171_v46, %v8637_v1  ;;  %v5173_v41 = vpop.f32.mrb[177].mxu1 }
 0xc8a   : > { %v5174_v49 = vadd.f32 %v5173_v41, %v8640_v54  ;;  %v5175_v20 = vpop.f32.mrb[178].mxu1  ;;  %5382 = vmatprep.mubr.bf16.mxu0 %v5209_v56 }
 0xc8b   : > { %v5176_v27 = vadd.f32 %v5175_v20, %v8637_v1  ;;  %v5177_v14 = vpop.f32.mrb[179].mxu1  ;;  %5383 = vmatmul.mubr.bf16.gmra.mrb[156].mxu0 %v5208_v5  ;;  %v5198_v44 = vmax.f32 %v5172_v59, 0.0 }
 0xc8c   : > { %v5178_v40 = vadd.f32 %v5177_v14, %v8640_v54  ;;  %v5199_v51 = vmax.f32 %v5174_v49, 0.0 }
 0xc8d   : > { %v5200_v23 = vmax.f32 %v5176_v27, 0.0 }
 0xc8e   : > { %v5201_v62 = vmax.f32 %v5178_v40, 0.0 }
 0xc8f   : > { %v5210_v57 = vpack.c.bf16 %v5200_v23, %v5198_v44 }
 0xc90   : > { %v5211_v16 = vpack.c.bf16 %v5201_v62, %v5199_v51  ;;  %v5181_v2 = vpop.f32.mrb[180].mxu1 }
 0xc91   : > { %v5182_v47 = vadd.f32 %v5181_v2, %v8637_v1  ;;  %v5183_v11 = vpop.f32.mrb[181].mxu1 }
 0xc92   : > { %v5184_v6 = vadd.f32 %v5183_v11, %v8640_v54  ;;  %v5185_v28 = vpop.f32.mrb[182].mxu1  ;;  %5390 = vmatprep.mubr.bf16.mxu0 %v5211_v16 }
 0xc93   : > { %v5186_v26 = vadd.f32 %v5185_v28, %v8637_v1  ;;  %v5187_v39 = vpop.f32.mrb[183].mxu1  ;;  %5391 = vmatmul.mubr.bf16.gmra.mrb[160].mxu0 %v5210_v57  ;;  %v5202_v21 = vmax.f32 %v5182_v47, 0.0 }
 0xc94   : > { %v5188_v34 = vadd.f32 %v5187_v39, %v8640_v54  ;;  %v5203_v7 = vmax.f32 %v5184_v6, 0.0 }
 0xc95   : > { %v5204_v35 = vmax.f32 %v5186_v26, 0.0 }
 0xc96   : > { %v5205_v3 = vmax.f32 %v5188_v34, 0.0 }
 0xc97   : > { %v5212_v32 = vpack.c.bf16 %v5204_v35, %v5202_v21 }
 0xc98   : > { %v5213_v18 = vpack.c.bf16 %v5205_v3, %v5203_v7 }
 0xc9a   : > { %5398 = vmatprep.mubr.bf16.mxu0 %v5213_v18 }
 0xc9b   : > { %5399 = vmatmul.mubr.bf16.gmra.mrb[164].mxu0 %v5212_v32 }
 0xd16   : > { %v6361_v12 = vpop.f32.mrb[120].mxu0 }
 0xd17   : > { %v6362_v43 = vpop.f32.mrb[121].mxu0 }
 0xd18   : > { %v6363_v8 = vadd.f32 %v6362_v43, %v6361_v12  ;;  %v6364_v42 = vpop.f32.mrb[122].mxu0 }
 0xd19   : > { %v6365_v17 = vpop.f32.mrb[123].mxu0 }
 0xd1a   : > { %v4595_v38 = vadd.f32 %v6363_v8, %v8567_v45  ;;  %v6366_v1 = vadd.f32 %v6365_v17, %v6364_v42 }
 0xd1c   : > { %v4596_v0 = vadd.f32 %v6366_v1, %v8569_v52 }
 0xd1e   : > { %v6367_v55 = vpop.f32.mrb[124].mxu0 }
 0xd1f   : > { %v6368_v54 = vpop.f32.mrb[125].mxu0 }
 0xd20   : > { %v6369_v9 = vadd.f32 %v6368_v54, %v6367_v55  ;;  %v6370_v13 = vpop.f32.mrb[126].mxu0 }
 0xd21   : > { %v6371_v36 = vpop.f32.mrb[127].mxu0 }
 0xd22   : > { %v4597_v24 = vadd.f32 %v6369_v9, %v8571_v63  ;;  %v6372_v48 = vadd.f32 %v6371_v36, %v6370_v13 }
 0xd24   : > { %v4598_v61 = vadd.f32 %v6372_v48, %v8573_v37 }
 0xd26   : > { %v6373_v22 = vpop.f32.mrb[128].mxu0 }
 0xd27   : > { %v6374_v15 = vpop.f32.mrb[129].mxu0 }
 0xd28   : > { %v6375_v10 = vadd.f32 %v6374_v15, %v6373_v22  ;;  %v6376_v53 = vpop.f32.mrb[130].mxu0 }
 0xd29   : > { %v6377_v31 = vpop.f32.mrb[131].mxu0 }
 0xd2a   : > { %v4599_v45 = vadd.f32 %v6375_v10, %v8575_v60  ;;  %v6378_v30 = vadd.f32 %v6377_v31, %v6376_v53 }
 0xd2c   : > { %v4600_v52 = vadd.f32 %v6378_v30, %v8577_v4 }
 0xd2e   : > { %v6379_v33 = vpop.f32.mrb[132].mxu0 }
 0xd2f   : > { %v6380_v19 = vpop.f32.mrb[133].mxu0 }
 0xd30   : > { %v6381_v50 = vadd.f32 %v6380_v19, %v6379_v33  ;;  %v6382_v25 = vpop.f32.mrb[134].mxu0 }
 0xd31   : > { %v6383_v5 = vpop.f32.mrb[135].mxu0 }
 0xd32   : > { %v4601_v63 = vadd.f32 %v6381_v50, %v8582_v58  ;;  %v6384_v56 = vadd.f32 %v6383_v5, %v6382_v25 }
 0xd34   : > { %v4602_v37 = vadd.f32 %v6384_v56, %v8587_v29 }
 0xd36   : > { %v6401_v46 = vpop.f32.mrb[136].mxu0 }
 0xd37   : > { %v6402_v59 = vpop.f32.mrb[137].mxu0 }
 0xd38   : > { %v6403_v41 = vadd.f32 %v6402_v59, %v6401_v46  ;;  %v6404_v49 = vpop.f32.mrb[138].mxu0 }
 0xd39   : > { %v6405_v20 = vpop.f32.mrb[139].mxu0 }
 0xd3a   : > { %v5001_v27 = vadd.f32 %v6403_v41, %v4595_v38  ;;  %v6406_v60 = vadd.f32 %v6405_v20, %v6404_v49 }
 0xd3c   : > { %v5002_v14 = vadd.f32 %v6406_v60, %v4596_v0 }
 0xd3e   : > { %v6407_v40 = vpop.f32.mrb[140].mxu0 }
 0xd3f   : > { %v6408_v4 = vpop.f32.mrb[141].mxu0 }
 0xd40   : > { %v6409_v44 = vadd.f32 %v6408_v4, %v6407_v40  ;;  %v6410_v23 = vpop.f32.mrb[142].mxu0 }
 0xd41   : > { %v6411_v51 = vpop.f32.mrb[143].mxu0 }
 0xd42   : > { %v5003_v62 = vadd.f32 %v6409_v44, %v4597_v24  ;;  %v6412_v57 = vadd.f32 %v6411_v51, %v6410_v23 }
 0xd44   : > { %v5004_v16 = vadd.f32 %v6412_v57, %v4598_v61 }
 0xd46   : > { %v6413_v58 = vpop.f32.mrb[144].mxu0 }
 0xd47   : > { %v6414_v2 = vpop.f32.mrb[145].mxu0 }
 0xd48   : > { %v6415_v47 = vadd.f32 %v6414_v2, %v6413_v58  ;;  %v6416_v29 = vpop.f32.mrb[146].mxu0 }
 0xd49   : > { %v6417_v11 = vpop.f32.mrb[147].mxu0 }
 0xd4a   : > { %v5005_v6 = vadd.f32 %v6415_v47, %v4599_v45  ;;  %v6418_v28 = vadd.f32 %v6417_v11, %v6416_v29 }
 0xd4c   : > { %v5006_v26 = vadd.f32 %v6418_v28, %v4600_v52 }
 0xd4e   : > { %v6419_v39 = vpop.f32.mrb[148].mxu0 }
 0xd4f   : > { %v6420_v34 = vpop.f32.mrb[149].mxu0 }
 0xd50   : > { %v6421_v21 = vadd.f32 %v6420_v34, %v6419_v39  ;;  %v6422_v35 = vpop.f32.mrb[150].mxu0 }
 0xd51   : > { %v6423_v7 = vpop.f32.mrb[151].mxu0 }
 0xd52   : > { %v5007_v3 = vadd.f32 %v6421_v21, %v4601_v63  ;;  %v6424_v32 = vadd.f32 %v6423_v7, %v6422_v35 }
 0xd54   : > { %v5008_v18 = vadd.f32 %v6424_v32, %v4602_v37 }
 0xd56   : > { %v6441_v12 = vpop.f32.mrb[152].mxu0 }
 0xd57   : > { %v6442_v43 = vpop.f32.mrb[153].mxu0 }
 0xd58   : > { %v6443_v8 = vadd.f32 %v6442_v43, %v6441_v12  ;;  %v6444_v42 = vpop.f32.mrb[154].mxu0 }
 0xd59   : > { %v6445_v17 = vpop.f32.mrb[155].mxu0 }
 0xd5a   : > { %v5407_v38 = vadd.f32 %v6443_v8, %v5001_v27  ;;  %v6446_v1 = vadd.f32 %v6445_v17, %v6444_v42 }
 0xd5c   : > { %v5408_v0 = vadd.f32 %v6446_v1, %v5002_v14 }
 0xd5e   : > { %v5415_v55 = vadd.f32 %v5408_v0, %v5407_v38  ;;  %v6447_v54 = vpop.f32.mrb[156].mxu0 }
 0xd5f   : > { %v6448_v9 = vpop.f32.mrb[157].mxu0 }
 0xd60   : > { %v6449_v13 = vadd.f32 %v6448_v9, %v6447_v54  ;;  %v6450_v36 = vpop.f32.mrb[158].mxu0 }
 0xd61   : > { %v6451_v24 = vpop.f32.mrb[159].mxu0 }
 0xd62   : > { %v5409_v48 = vadd.f32 %v6449_v13, %v5003_v62  ;;  %v6452_v61 = vadd.f32 %v6451_v24, %v6450_v36  ;;  %v5429_v62 = vld [vmem:[#allocation5 + $0xa] sm:$0x1] }
 0xd64   : > { %v5416_v22 = vadd.f32 %v5415_v55, %v5409_v48  ;;  %v5410_v15 = vadd.f32 %v6452_v61, %v5004_v16 }
 0xd66   : > { %v5417_v10 = vadd.f32 %v5416_v22, %v5410_v15  ;;  %v6453_v53 = vpop.f32.mrb[160].mxu0 }
 0xd67   : > { %v6454_v31 = vpop.f32.mrb[161].mxu0 }
 0xd68   : > { %v6455_v45 = vadd.f32 %v6454_v31, %v6453_v53  ;;  %v6456_v30 = vpop.f32.mrb[162].mxu0 }
 0xd69   : > { %v6457_v52 = vpop.f32.mrb[163].mxu0 }
 0xd6a   : > { %v5411_v33 = vadd.f32 %v6455_v45, %v5005_v6  ;;  %v6458_v19 = vadd.f32 %v6457_v52, %v6456_v30 }
 0xd6c   : > { %v5418_v50 = vadd.f32 %v5417_v10, %v5411_v33  ;;  %v5412_v25 = vadd.f32 %v6458_v19, %v5006_v26 }
 0xd6e   : > { %v5419_v5 = vadd.f32 %v5418_v50, %v5412_v25  ;;  %v6459_v63 = vpop.f32.mrb[164].mxu0 }
 0xd6f   : > { %v6460_v56 = vpop.f32.mrb[165].mxu0 }
 0xd70   : > { %v6461_v37 = vadd.f32 %v6460_v56, %v6459_v63  ;;  %v6462_v46 = vpop.f32.mrb[166].mxu0 }
 0xd71   : > { %v6463_v59 = vpop.f32.mrb[167].mxu0 }
 0xd72   : > { %v5413_v41 = vadd.f32 %v6461_v37, %v5007_v3  ;;  %v6464_v49 = vadd.f32 %v6463_v59, %v6462_v46 }
 0xd74   : > { %v5420_v20 = vadd.f32 %v5419_v5, %v5413_v41  ;;  %v5414_v27 = vadd.f32 %v6464_v49, %v5008_v18 }
 0xd76   : > { %v5421_v60 = vadd.f32 %v5420_v20, %v5414_v27 }
 0xd78   : > { %v5422_v14 = vrot.slane %v5421_v60, 4 }
 0xd7a   : > { %v5423_v40 = vadd.f32 %v5422_v14, %v5421_v60 }
 0xd7c   : > { %v5424_v4 = vrot.slane %v5423_v40, 2 }
 0xd7e   : > { %v5425_v44 = vadd.f32 %v5424_v4, %v5423_v40 }
 0xd80   : > { %v5426_v23 = vrot.slane %v5425_v44, 1 }
 0xd82   : > { %v5427_v51 = vadd.f32 %v5426_v23, %v5425_v44 }
 0xd84   : > { %v5428_v57 = vmul.f32 0.015625, %v5427_v51 }
 0xd86   : > { %v5430_v16 = vadd.f32 %v5429_v62, %v5428_v57 }
 0xd88   : > { %5431 = vst [vmem:[%s329_s14] sm:$0x1] %v5430_v16 }
 0xd89   : > { %7491 = shalt.err (!%p7488_p0)
}
 0xd8a   : > { %s7492_s16 = scalar_lea.hbm %s8671_s17, 16  ;;  %s7496_s20 = scalar_lea.hbm %s8720_s7, 32 }
 0xd8b   : > { %p7493_p5 = scmp.ne.s32.totalorder %s8671_s17, %s7492_s16  ;;  %p7497_p10 = scmp.lt.u32.totalorder %s8671_s17, %s8720_s7 }
 0xd8c   : > { %p7498_p12 = scmp.lt.u32.totalorder %s7496_s20, %s7492_s16  ;;  %p7500_p2 = scmp.lt.u32.totalorder %s7492_s16, %s8671_s17 }
 0xd8d   : > { %p7494_p6 = pnand %p7493_p5, %p8745_p3 }
 0xd8e   : > { %p7499_p1 = por %p7498_p12, %p7497_p10 }
 0xd8f   : > { %p7495_p9 = pneg %p7494_p6 }
 0xd90   : > { %p7501_p4 = por %p7500_p2, %p7499_p1 }
 0xd92   : > { %p7502_p7 = pnand %p7501_p4, %p7495_p9 }
 0xd94   : > { %7505 = shalt.err (!%p7502_p7)
}
 0xd95   : > { %6945 = dma.vmem_to_hbm [thread:$0]  (%p8745_p3), %s8673_s15, 16, %s8671_s17, %s5433_s19  }
 0xd96 PF: > { %p6972_p8 = scmp.ge.s32.totalorder %s7552_s27, 2  ;;  %s5457_s8 = sand.u32 1, %s7540_s24  }
 0xd97   : > { %p8746_p11 = scmp.ne.s32.totalorder %s8731_s12, 0  ;;  %s5458_s9 = scalar_lea.sflag [#allocation4], %s5457_s8 }
 0xd99   : > { %p6961_p13 = pnand %p6972_p8, %p8746_p11 }
 0xd9b   : > { %7535 = dma.done.wait (!%p6961_p13), %s5458_s9, 16  }
 0xd9c   : > { %7537 = vsyncadd (!%p6961_p13), %s5458_s9, 4294967280  ;;  %s8747_s14 = sld [smem:[#allocation15_spill]]  ;;  %s8748_s26 = sld [smem:[#allocation16_spill]] }
 0xd9d   : > { %p20_p0 = scmp.ge.s32.totalorder %s7633_s30, 4   ;;  %s8749_s24 = smov %s7544_s25 }
 0xd9e   : > { %s8751_s27 = smov %s7633_s30 }
 0xd9f   :  { %22 = sbr.rel (!%p20_p0) target bundleno = 8 (0x8), region = 107 }
 0xda2   : > { %s8750_s25 = smov %s8747_s14 }
 0xda6   :  { %5462 = vsyncpa [#allocation3], 1 }
 0xda7   :  { %5464 = vsyncpa [#allocation3 + $0x1], 1 }
 0xda8   :  { %5465 = vsyncpa [#allocation6], 1 }
 0xda9   :  { %5466 = vsyncpa [#allocation9], 1 }
 0xdaa   :  { %5467 = vsyncpa [#allocation4], 1 }
 0xdab   :  { %5469 = vsyncpa [#allocation4 + $0x1], 1 }

</bundles_post_ra>
